<compile_context>
chip_gen: v5e
topology: v5e:2x2
jax: 0.10.0
libtpu: 0.0.40
codegen_flags: <defaults>
</compile_context>

<pallas_src>
import jax
import jax.numpy as jnp
from jax.experimental import pallas as pl
from jax.experimental.pallas import tpu as pltpu

EPS = 1e-5
LANE = 128


def _round_up(x, m):
    return ((x + m - 1) // m) * m


def _pick_tile_h(H):
    """Largest divisor of H that is <= 8 (gives grid depth for pipelining)."""
    for th in range(min(H, 8), 0, -1):
        if H % th == 0:
            return th
    return H


def _conv3x3(xt, w_ref, TH, W, Co):
    """3x3 conv of a halo'd tile as 9 accumulated MXU dots (no im2col slab).

    xt:    (TH+2, W+2, C) bf16 value (zero halo at image borders)
    w_ref: (9, C, Co) bf16 weight slab ref, tap order (dh, dw)
    returns (TH*W, Co) f32 accumulator.
    """
    M = TH * W
    C = xt.shape[-1]
    acc = jnp.zeros((M, Co), jnp.float32)
    for dh in range(3):
        for dw in range(3):
            lhs = xt[dh:dh + TH, dw:dw + W, :].reshape(M, C)
            acc = acc + jnp.dot(lhs, w_ref[dh * 3 + dw],
                                preferred_element_type=jnp.float32)
    return acc


def _conv1_kernel(x_ref, w_ref, y_ref, s_ref, ss_ref):
    # x_ref: (1, TH+2, W+2, Ci) bf16 halo'd tile (halos supplied by wrapper)
    # w_ref: (9, Ci, Co) bf16   y_ref: (1, TH, W, Co) bf16
    # s_ref / ss_ref: (1, 1, Co) f32 partial BN statistics
    _, TH, W, Co = y_ref.shape
    xt = x_ref[0]                                         # (TH+2, W+2, Ci)
    acc = _conv3x3(xt, w_ref, TH, W, Co)                  # (TH*W, Co) f32
    y_ref[...] = acc.reshape(1, TH, W, Co).astype(y_ref.dtype)
    s_ref[...] = jnp.sum(acc, axis=0).reshape(1, 1, Co)
    ss_ref[...] = jnp.sum(acc * acc, axis=0).reshape(1, 1, Co)


def _conv2_kernel(y1_ref, sc_ref, sh_ref, w_ref, y_ref, s_ref, ss_ref):
    # y1_ref: (1, TH+2, W+2, Co) bf16 halo'd pre-BN conv1 tile
    # sc/sh:  (1, Co) f32 BN1 scale/shift
    _, TH, W, Co = y_ref.shape
    t = pl.program_id(1)
    nt = pl.num_programs(1)

    sc = sc_ref[...].reshape(1, 1, Co)
    sh = sh_ref[...].reshape(1, 1, Co)
    h = jnp.maximum(y1_ref[0].astype(jnp.float32) * sc + sh, 0.0)  # bn1 + relu

    # conv2's zero padding is applied AFTER relu in the reference, so the
    # image-boundary halo must be exactly 0 (not relu(shift)).  Interior halo
    # rows (from neighbouring tiles) keep their bn1+relu values.
    col = jax.lax.broadcasted_iota(jnp.int32, (TH + 2, W + 2, 1), 1)
    row = jax.lax.broadcasted_iota(jnp.int32, (TH + 2, W + 2, 1), 0)
    valid = (col >= 1) & (col <= W)
    valid = valid & ((row >= 1) | (t > 0))
    valid = valid & ((row <= TH) | (t < nt - 1))
    h = jnp.where(valid, h, 0.0).astype(jnp.bfloat16)

    acc = _conv3x3(h, w_ref, TH, W, Co)
    y_ref[...] = acc.reshape(1, TH, W, Co).astype(y_ref.dtype)
    s_ref[...] = jnp.sum(acc, axis=0).reshape(1, 1, Co)
    ss_ref[...] = jnp.sum(acc * acc, axis=0).reshape(1, 1, Co)


def _finalize_kernel(y2_ref, x_ref, sc_ref, sh_ref, o_ref):
    # bn2 + residual add + relu (elementwise, memory-bound -> all bf16 I/O)
    Co = o_ref.shape[-1]
    sc = sc_ref[...].reshape(1, 1, 1, Co)
    sh = sh_ref[...].reshape(1, 1, 1, Co)
    out = y2_ref[...].astype(jnp.float32) * sc + sh + x_ref[...].astype(jnp.float32)
    o_ref[...] = jnp.maximum(out, 0.0).astype(o_ref.dtype)


def basic_block_pallas(x_nchw, params):
    """x_nchw: (N, Cin, H, W) f32; conv weights in PyTorch OIHW layout."""
    w1, g1, b1, w2, g2, b2 = params
    N, Cin, H, W = x_nchw.shape
    Cout = w1.shape[0]
    if Cin != Cout:
        raise ValueError("identity residual path requires in_channels == out_channels")
    # TODO(synk): stride>1 / downsample BasicBlock variants are not implemented
    # (the default config has stride=1, expansion=1, downsample=None).

    Ci = _round_up(Cin, LANE)
    Co = _round_up(Cout, LANE)
    TH = _pick_tile_h(H)
    T = H // TH
    M = N * H * W

    # ---- wrapper-side layout prep: NHWC, channel pad to 128 lanes, bf16 ----
    x_nhwc = jnp.transpose(x_nchw, (0, 2, 3, 1))
    x_bf = jnp.pad(x_nhwc, ((0, 0), (0, 0), (0, 0), (0, Ci - Cin))).astype(jnp.bfloat16)

    def overlap_h(a):
        """(N,H,W,C) -> (N*T, TH+2, W+2, C) overlapped halo tiles, zero image border."""
        a_sp = jnp.pad(a, ((0, 0), (1, 1), (1, 1), (0, 0)))
        idx = jnp.arange(T)[:, None] * TH + jnp.arange(TH + 2)[None, :]
        til = a_sp[:, idx]                                  # (N, T, TH+2, W+2, C)
        return til.reshape(N * T, TH + 2, W + 2, a.shape[-1])

    x_tiles = overlap_h(x_bf)

    def weight_slab(w, cin, cin_p, cout, cout_p):
        w_hwio = jnp.transpose(w, (2, 3, 1, 0))             # (3,3,cin,cout)
        w_p = jnp.pad(w_hwio, ((0, 0), (0, 0), (0, cin_p - cin), (0, cout_p - cout)))
        return w_p.reshape(9, cin_p, cout_p).astype(jnp.bfloat16)

    w1_slab = weight_slab(w1, Cin, Ci, Cout, Co)
    w2_slab = weight_slab(w2, Cout, Co, Cout, Co)

    g1p = jnp.pad(g1.astype(jnp.float32), (0, Co - Cout))
    b1p = jnp.pad(b1.astype(jnp.float32), (0, Co - Cout))
    g2p = jnp.pad(g2.astype(jnp.float32), (0, Co - Cout))
    b2p = jnp.pad(b2.astype(jnp.float32), (0, Co - Cout))

    cparams = pltpu.CompilerParams(
        dimension_semantics=("parallel", "parallel"),
        vmem_limit_bytes=48 * 1024 * 1024)

    tile_spec_i = pl.BlockSpec((1, TH + 2, W + 2, Ci), lambda n, t: (n * T + t, 0, 0, 0))
    tile_spec_o = pl.BlockSpec((1, TH + 2, W + 2, Co), lambda n, t: (n * T + t, 0, 0, 0))
    w1_spec = pl.BlockSpec((9, Ci, Co), lambda n, t: (0, 0, 0))
    w2_spec = pl.BlockSpec((9, Co, Co), lambda n, t: (0, 0, 0))
    act_spec = pl.BlockSpec((1, TH, W, Co), lambda n, t: (n, t, 0, 0))
    res_spec = pl.BlockSpec((1, TH, W, Ci), lambda n, t: (n, t, 0, 0))
    stat_spec = pl.BlockSpec((1, 1, Co), lambda n, t: (n * T + t, 0, 0))
    vec_spec = pl.BlockSpec((1, Co), lambda n, t: (0, 0))

    act_shape = jax.ShapeDtypeStruct((N, H, W, Co), jnp.bfloat16)
    stat_shape = jax.ShapeDtypeStruct((N * T, 1, Co), jnp.float32)

    # ---- pass 1: conv1 + partial BN1 stats -----------------------------------
    y1, s1, ss1 = pl.pallas_call(
        _conv1_kernel,
        grid=(N, T),
        in_specs=[tile_spec_i, w1_spec],
        out_specs=(act_spec, stat_spec, stat_spec),
        out_shape=(act_shape, stat_shape, stat_shape),
        compiler_params=cparams,
    )(x_tiles, w1_slab)

    # global (batch-wide) BN1 statistics from per-tile partial sums.
    # TODO(synk): E[x^2]-E[x]^2 in f32 can cancel for large means; clamped to 0.
    mean1 = jnp.sum(s1, axis=(0, 1)) / M
    var1 = jnp.maximum(jnp.sum(ss1, axis=(0, 1)) / M - mean1 * mean1, 0.0)
    scale1 = g1p * jax.lax.rsqrt(var1 + EPS)
    shift1 = b1p - mean1 * scale1

    y1_tiles = overlap_h(y1)

    # ---- pass 2: bn1 + relu + conv2 + partial BN2 stats -----------------------
    y2, s2, ss2 = pl.pallas_call(
        _conv2_kernel,
        grid=(N, T),
        in_specs=[tile_spec_o, vec_spec, vec_spec, w2_spec],
        out_specs=(act_spec, stat_spec, stat_spec),
        out_shape=(act_shape, stat_shape, stat_shape),
        compiler_params=cparams,
    )(y1_tiles, scale1.reshape(1, Co), shift1.reshape(1, Co), w2_slab)

    mean2 = jnp.sum(s2, axis=(0, 1)) / M
    var2 = jnp.maximum(jnp.sum(ss2, axis=(0, 1)) / M - mean2 * mean2, 0.0)
    scale2 = g2p * jax.lax.rsqrt(var2 + EPS)
    shift2 = b2p - mean2 * scale2

    # ---- pass 3: bn2 + residual add + relu (bf16 in / bf16 out) ---------------
    out_bf = pl.pallas_call(
        _finalize_kernel,
        grid=(N, T),
        in_specs=[act_spec, res_spec, vec_spec, vec_spec],
        out_specs=act_spec,
        out_shape=act_shape,
        compiler_params=cparams,
    )(y2, x_bf, scale2.reshape(1, Co), shift2.reshape(1, Co))

    out = out_bf[:, :, :, :Cout]                    # drop padded channels first
    return jnp.transpose(out, (0, 3, 1, 2)).astype(jnp.float32)   # back to NCHW f32


def basic_block_ref(x_nchw, params):
    """Plain-JAX f32 reference (same math, NCHW) for the correctness check."""
    w1, g1, b1, w2, g2, b2 = params

    def conv(x, w):
        return jax.lax.conv_general_dilated(
            x, w, window_strides=(1, 1), padding=((1, 1), (1, 1)),
            dimension_numbers=('NCHW', 'OIHW', 'NCHW'))

    def bn(x, g, b):
        mean = jnp.mean(x, axis=(0, 2, 3), keepdims=True)
        var = jnp.mean((x - mean) ** 2, axis=(0, 2, 3), keepdims=True)
        return ((x - mean) / jnp.sqrt(var + EPS)) * g.reshape(1, -1, 1, 1) \
            + b.reshape(1, -1, 1, 1)

    out = jnp.maximum(bn(conv(x_nchw, w1), g1, b1), 0.0)
    out = bn(conv(out, w2), g2, b2)
    return jnp.maximum(out + x_nchw, 0.0)


if __name__ == "__main__":
    key = jax.random.PRNGKey(0)
    k1, k2, k3, k4, k5, k6, kx = jax.random.split(key, 7)

    # Default BasicBlock config: stride=1, expansion=1, downsample=None,
    # which requires in_channels == out_channels for the identity add.
    N, Cin, Cout, H, W = 2, 4, 4, 16, 16

    w1 = 0.1 * jax.random.normal(k1, (Cout, Cin, 3, 3), jnp.float32)
    w2 = 0.1 * jax.random.normal(k2, (Cout, Cout, 3, 3), jnp.float32)
    g1 = 1.0 + 0.1 * jax.random.normal(k3, (Cout,), jnp.float32)
    b1 = 0.1 * jax.random.normal(k4, (Cout,), jnp.float32)
    g2 = 1.0 + 0.1 * jax.random.normal(k5, (Cout,), jnp.float32)
    b2 = 0.1 * jax.random.normal(k6, (Cout,), jnp.float32)
    x = jax.random.normal(kx, (N, Cin, H, W), jnp.float32)

    params = (w1, g1, b1, w2, g2, b2)

    fwd = jax.jit(basic_block_pallas)
    out = jax.block_until_ready(fwd(x, params))
    ref = basic_block_ref(x, params)

    assert out.shape == (N, Cout, H, W)
    max_err = float(jnp.max(jnp.abs(out - ref)))
    # bf16 MXU operands / bf16 activations (f32 accumulation + f32 BN math)
    # vs. an all-f32 reference -> looser tolerance.
    assert jnp.allclose(out, ref, rtol=5e-2, atol=5e-2), f"max_err={max_err}"
    print("KERNEL_OK")
</pallas_src>

<mosaic_0001>
module attributes {stable_mosaic.version = 11 : i64} {
  func.func @_conv2_kernel(%arg0: i32, %arg1: i32, %arg2: memref<1x10x18x128xbf16, #tpu.memory_space<vmem>>, %arg3: memref<1x128xf32, #tpu.memory_space<vmem>>, %arg4: memref<1x128xf32, #tpu.memory_space<vmem>>, %arg5: memref<9x128x128xbf16, #tpu.memory_space<vmem>>, %arg6: memref<1x8x16x128xbf16, #tpu.memory_space<vmem>>, %arg7: memref<1x1x128xf32, #tpu.memory_space<vmem>>, %arg8: memref<1x1x128xf32, #tpu.memory_space<vmem>>) attributes {dimension_semantics = [#tpu.dimension_semantics<parallel>, #tpu.dimension_semantics<parallel>], iteration_bounds = array<i64: 2, 2>, scalar_prefetch = 0 : i64, scratch_operands = 0 : i64, tpu.core_type = #tpu.core_type<tc>, window_params = [{transform_indices = @transform_0, window_bounds = array<i64: 1, 10, 18, 128>}, {pipeline_mode = #tpu.pipeline_mode<synchronous>, transform_indices = @transform_1, window_bounds = array<i64: 1, 128>}, {pipeline_mode = #tpu.pipeline_mode<synchronous>, transform_indices = @transform_2, window_bounds = array<i64: 1, 128>}, {pipeline_mode = #tpu.pipeline_mode<synchronous>, transform_indices = @transform_3, window_bounds = array<i64: 9, 128, 128>}, {transform_indices = @transform_4, window_bounds = array<i64: 1, 8, 16, 128>}, {transform_indices = @transform_5, window_bounds = array<i64: 1, 1, 128>}, {transform_indices = @transform_6, window_bounds = array<i64: 1, 1, 128>}]} {
    %c0 = arith.constant 0 : index
    %c0_0 = arith.constant 0 : index
    %0 = vector.load %arg3[%c0, %c0_0] : memref<1x128xf32, #tpu.memory_space<vmem>>, vector<1x128xf32>
    %1 = vector.shape_cast %0 : vector<1x128xf32> to vector<1x1x128xf32>
    %c0_1 = arith.constant 0 : index
    %c0_2 = arith.constant 0 : index
    %2 = vector.load %arg4[%c0_1, %c0_2] : memref<1x128xf32, #tpu.memory_space<vmem>>, vector<1x128xf32>
    %3 = vector.shape_cast %2 : vector<1x128xf32> to vector<1x1x128xf32>
    %c0_3 = arith.constant 0 : index
    %c0_4 = arith.constant 0 : index
    %c0_5 = arith.constant 0 : index
    %c0_6 = arith.constant 0 : index
    %4 = vector.load %arg2[%c0_3, %c0_4, %c0_5, %c0_6] : memref<1x10x18x128xbf16, #tpu.memory_space<vmem>>, vector<1x10x18x128xbf16>
    %5 = vector.shape_cast %4 : vector<1x10x18x128xbf16> to vector<10x18x128xbf16>
    %6 = arith.extf %5 : vector<10x18x128xbf16> to vector<10x18x128xf32>
    %7 = vector.broadcast %1 : vector<1x1x128xf32> to vector<10x18x128xf32>
    %8 = arith.mulf %6, %7 : vector<10x18x128xf32>
    %9 = vector.broadcast %3 : vector<1x1x128xf32> to vector<10x18x128xf32>
    %10 = arith.addf %8, %9 : vector<10x18x128xf32>
    %cst = arith.constant 0.000000e+00 : f32
    %11 = vector.broadcast %cst : f32 to vector<10x18x128xf32>
    %12 = arith.maximumf %10, %11 : vector<10x18x128xf32>
    %13 = tpu.iota {dimensions = array<i32: 1>} : vector<10x18x1xi32>
    %14 = tpu.iota {dimensions = array<i32: 0>} : vector<10x18x1xi32>
    %c1_i32 = arith.constant 1 : i32
    %15 = vector.broadcast %c1_i32 : i32 to vector<10x18x1xi32>
    %16 = arith.cmpi sge, %13, %15 : vector<10x18x1xi32>
    %c16_i32 = arith.constant 16 : i32
    %17 = vector.broadcast %c16_i32 : i32 to vector<10x18x1xi32>
    %18 = arith.cmpi sle, %13, %17 : vector<10x18x1xi32>
    %19 = arith.andi %16, %18 : vector<10x18x1xi1>
    %c1_i32_7 = arith.constant 1 : i32
    %20 = vector.broadcast %c1_i32_7 : i32 to vector<10x18x1xi32>
    %21 = arith.cmpi sge, %14, %20 : vector<10x18x1xi32>
    %c0_i32 = arith.constant 0 : i32
    %22 = arith.cmpi sgt, %arg1, %c0_i32 : i32
    %23 = vector.broadcast %22 : i1 to vector<10x18x1xi1>
    %24 = arith.ori %21, %23 : vector<10x18x1xi1>
    %25 = arith.andi %19, %24 : vector<10x18x1xi1>
    %c8_i32 = arith.constant 8 : i32
    %26 = vector.broadcast %c8_i32 : i32 to vector<10x18x1xi32>
    %27 = arith.cmpi sle, %14, %26 : vector<10x18x1xi32>
    %c1_i32_8 = arith.constant 1 : i32
    %28 = arith.cmpi slt, %arg1, %c1_i32_8 : i32
    %29 = vector.broadcast %28 : i1 to vector<10x18x1xi1>
    %30 = arith.ori %27, %29 : vector<10x18x1xi1>
    %31 = arith.andi %25, %30 : vector<10x18x1xi1>
    %cst_9 = arith.constant 0.000000e+00 : f32
    %32 = vector.shape_cast %31 : vector<10x18x1xi1> to vector<10x18x1xi1>
    %33 = vector.broadcast %32 : vector<10x18x1xi1> to vector<10x18x128xi1>
    %34 = vector.broadcast %cst_9 : f32 to vector<10x18x128xf32>
    %35 = arith.select %33, %12, %34 : vector<10x18x128xi1>, vector<10x18x128xf32>
    %36 = arith.truncf %35 : vector<10x18x128xf32> to vector<10x18x128xbf16>
    %cst_10 = arith.constant 0.000000e+00 : f32
    %37 = vector.broadcast %cst_10 : f32 to vector<128x128xf32>
    %38 = vector.extract_strided_slice %36 {offsets = [0, 0, 0], sizes = [8, 16, 128], strides = [1, 1, 1]} : vector<10x18x128xbf16> to vector<8x16x128xbf16>
    %39 = vector.shape_cast %38 : vector<8x16x128xbf16> to vector<128x128xbf16>
    %c0_11 = arith.constant 0 : index
    %c0_12 = arith.constant 0 : index
    %c0_13 = arith.constant 0 : index
    %40 = vector.load %arg5[%c0_11, %c0_12, %c0_13] : memref<9x128x128xbf16, #tpu.memory_space<vmem>>, vector<1x128x128xbf16>
    %41 = vector.shape_cast %40 : vector<1x128x128xbf16> to vector<128x128xbf16>
    %cst_14 = arith.constant dense<0.000000e+00> : vector<128x128xf32>
    %42 = tpu.matmul %39, %41, %cst_14 {dimension_numbers = #tpu.dot_dimension_numbers<[1], [0], [0], [1], [0, 0, 1, 1], [], []>} : vector<128x128xbf16>, vector<128x128xbf16>, vector<128x128xf32> -> vector<128x128xf32>
    %43 = arith.addf %37, %42 : vector<128x128xf32>
    %44 = vector.extract_strided_slice %36 {offsets = [0, 1, 0], sizes = [8, 16, 128], strides = [1, 1, 1]} : vector<10x18x128xbf16> to vector<8x16x128xbf16>
    %45 = vector.shape_cast %44 : vector<8x16x128xbf16> to vector<128x128xbf16>
    %c1 = arith.constant 1 : index
    %c0_15 = arith.constant 0 : index
    %c0_16 = arith.constant 0 : index
    %46 = vector.load %arg5[%c1, %c0_15, %c0_16] : memref<9x128x128xbf16, #tpu.memory_space<vmem>>, vector<1x128x128xbf16>
    %47 = vector.shape_cast %46 : vector<1x128x128xbf16> to vector<128x128xbf16>
    %cst_17 = arith.constant dense<0.000000e+00> : vector<128x128xf32>
    %48 = tpu.matmul %45, %47, %cst_17 {dimension_numbers = #tpu.dot_dimension_numbers<[1], [0], [0], [1], [0, 0, 1, 1], [], []>} : vector<128x128xbf16>, vector<128x128xbf16>, vector<128x128xf32> -> vector<128x128xf32>
    %49 = arith.addf %43, %48 : vector<128x128xf32>
    %50 = vector.extract_strided_slice %36 {offsets = [0, 2, 0], sizes = [8, 16, 128], strides = [1, 1, 1]} : vector<10x18x128xbf16> to vector<8x16x128xbf16>
    %51 = vector.shape_cast %50 : vector<8x16x128xbf16> to vector<128x128xbf16>
    %c2 = arith.constant 2 : index
    %c0_18 = arith.constant 0 : index
    %c0_19 = arith.constant 0 : index
    %52 = vector.load %arg5[%c2, %c0_18, %c0_19] : memref<9x128x128xbf16, #tpu.memory_space<vmem>>, vector<1x128x128xbf16>
    %53 = vector.shape_cast %52 : vector<1x128x128xbf16> to vector<128x128xbf16>
    %cst_20 = arith.constant dense<0.000000e+00> : vector<128x128xf32>
    %54 = tpu.matmul %51, %53, %cst_20 {dimension_numbers = #tpu.dot_dimension_numbers<[1], [0], [0], [1], [0, 0, 1, 1], [], []>} : vector<128x128xbf16>, vector<128x128xbf16>, vector<128x128xf32> -> vector<128x128xf32>
    %55 = arith.addf %49, %54 : vector<128x128xf32>
    %56 = vector.extract_strided_slice %36 {offsets = [1, 0, 0], sizes = [8, 16, 128], strides = [1, 1, 1]} : vector<10x18x128xbf16> to vector<8x16x128xbf16>
    %57 = vector.shape_cast %56 : vector<8x16x128xbf16> to vector<128x128xbf16>
    %c3 = arith.constant 3 : index
    %c0_21 = arith.constant 0 : index
    %c0_22 = arith.constant 0 : index
    %58 = vector.load %arg5[%c3, %c0_21, %c0_22] : memref<9x128x128xbf16, #tpu.memory_space<vmem>>, vector<1x128x128xbf16>
    %59 = vector.shape_cast %58 : vector<1x128x128xbf16> to vector<128x128xbf16>
    %cst_23 = arith.constant dense<0.000000e+00> : vector<128x128xf32>
    %60 = tpu.matmul %57, %59, %cst_23 {dimension_numbers = #tpu.dot_dimension_numbers<[1], [0], [0], [1], [0, 0, 1, 1], [], []>} : vector<128x128xbf16>, vector<128x128xbf16>, vector<128x128xf32> -> vector<128x128xf32>
    %61 = arith.addf %55, %60 : vector<128x128xf32>
    %62 = vector.extract_strided_slice %36 {offsets = [1, 1, 0], sizes = [8, 16, 128], strides = [1, 1, 1]} : vector<10x18x128xbf16> to vector<8x16x128xbf16>
    %63 = vector.shape_cast %62 : vector<8x16x128xbf16> to vector<128x128xbf16>
    %c4 = arith.constant 4 : index
    %c0_24 = arith.constant 0 : index
    %c0_25 = arith.constant 0 : index
    %64 = vector.load %arg5[%c4, %c0_24, %c0_25] : memref<9x128x128xbf16, #tpu.memory_space<vmem>>, vector<1x128x128xbf16>
    %65 = vector.shape_cast %64 : vector<1x128x128xbf16> to vector<128x128xbf16>
    %cst_26 = arith.constant dense<0.000000e+00> : vector<128x128xf32>
    %66 = tpu.matmul %63, %65, %cst_26 {dimension_numbers = #tpu.dot_dimension_numbers<[1], [0], [0], [1], [0, 0, 1, 1], [], []>} : vector<128x128xbf16>, vector<128x128xbf16>, vector<128x128xf32> -> vector<128x128xf32>
    %67 = arith.addf %61, %66 : vector<128x128xf32>
    %68 = vector.extract_strided_slice %36 {offsets = [1, 2, 0], sizes = [8, 16, 128], strides = [1, 1, 1]} : vector<10x18x128xbf16> to vector<8x16x128xbf16>
    %69 = vector.shape_cast %68 : vector<8x16x128xbf16> to vector<128x128xbf16>
    %c5 = arith.constant 5 : index
    %c0_27 = arith.constant 0 : index
    %c0_28 = arith.constant 0 : index
    %70 = vector.load %arg5[%c5, %c0_27, %c0_28] : memref<9x128x128xbf16, #tpu.memory_space<vmem>>, vector<1x128x128xbf16>
    %71 = vector.shape_cast %70 : vector<1x128x128xbf16> to vector<128x128xbf16>
    %cst_29 = arith.constant dense<0.000000e+00> : vector<128x128xf32>
    %72 = tpu.matmul %69, %71, %cst_29 {dimension_numbers = #tpu.dot_dimension_numbers<[1], [0], [0], [1], [0, 0, 1, 1], [], []>} : vector<128x128xbf16>, vector<128x128xbf16>, vector<128x128xf32> -> vector<128x128xf32>
    %73 = arith.addf %67, %72 : vector<128x128xf32>
    %74 = vector.extract_strided_slice %36 {offsets = [2, 0, 0], sizes = [8, 16, 128], strides = [1, 1, 1]} : vector<10x18x128xbf16> to vector<8x16x128xbf16>
    %75 = vector.shape_cast %74 : vector<8x16x128xbf16> to vector<128x128xbf16>
    %c6 = arith.constant 6 : index
    %c0_30 = arith.constant 0 : index
    %c0_31 = arith.constant 0 : index
    %76 = vector.load %arg5[%c6, %c0_30, %c0_31] : memref<9x128x128xbf16, #tpu.memory_space<vmem>>, vector<1x128x128xbf16>
    %77 = vector.shape_cast %76 : vector<1x128x128xbf16> to vector<128x128xbf16>
    %cst_32 = arith.constant dense<0.000000e+00> : vector<128x128xf32>
    %78 = tpu.matmul %75, %77, %cst_32 {dimension_numbers = #tpu.dot_dimension_numbers<[1], [0], [0], [1], [0, 0, 1, 1], [], []>} : vector<128x128xbf16>, vector<128x128xbf16>, vector<128x128xf32> -> vector<128x128xf32>
    %79 = arith.addf %73, %78 : vector<128x128xf32>
    %80 = vector.extract_strided_slice %36 {offsets = [2, 1, 0], sizes = [8, 16, 128], strides = [1, 1, 1]} : vector<10x18x128xbf16> to vector<8x16x128xbf16>
    %81 = vector.shape_cast %80 : vector<8x16x128xbf16> to vector<128x128xbf16>
    %c7 = arith.constant 7 : index
    %c0_33 = arith.constant 0 : index
    %c0_34 = arith.constant 0 : index
    %82 = vector.load %arg5[%c7, %c0_33, %c0_34] : memref<9x128x128xbf16, #tpu.memory_space<vmem>>, vector<1x128x128xbf16>
    %83 = vector.shape_cast %82 : vector<1x128x128xbf16> to vector<128x128xbf16>
    %cst_35 = arith.constant dense<0.000000e+00> : vector<128x128xf32>
    %84 = tpu.matmul %81, %83, %cst_35 {dimension_numbers = #tpu.dot_dimension_numbers<[1], [0], [0], [1], [0, 0, 1, 1], [], []>} : vector<128x128xbf16>, vector<128x128xbf16>, vector<128x128xf32> -> vector<128x128xf32>
    %85 = arith.addf %79, %84 : vector<128x128xf32>
    %86 = vector.extract_strided_slice %36 {offsets = [2, 2, 0], sizes = [8, 16, 128], strides = [1, 1, 1]} : vector<10x18x128xbf16> to vector<8x16x128xbf16>
    %87 = vector.shape_cast %86 : vector<8x16x128xbf16> to vector<128x128xbf16>
    %c8 = arith.constant 8 : index
    %c0_36 = arith.constant 0 : index
    %c0_37 = arith.constant 0 : index
    %88 = vector.load %arg5[%c8, %c0_36, %c0_37] : memref<9x128x128xbf16, #tpu.memory_space<vmem>>, vector<1x128x128xbf16>
    %89 = vector.shape_cast %88 : vector<1x128x128xbf16> to vector<128x128xbf16>
    %cst_38 = arith.constant dense<0.000000e+00> : vector<128x128xf32>
    %90 = tpu.matmul %87, %89, %cst_38 {dimension_numbers = #tpu.dot_dimension_numbers<[1], [0], [0], [1], [0, 0, 1, 1], [], []>} : vector<128x128xbf16>, vector<128x128xbf16>, vector<128x128xf32> -> vector<128x128xf32>
    %91 = arith.addf %85, %90 : vector<128x128xf32>
    %92 = vector.shape_cast %91 : vector<128x128xf32> to vector<1x8x16x128xf32>
    %93 = arith.truncf %92 : vector<1x8x16x128xf32> to vector<1x8x16x128xbf16>
    %c0_39 = arith.constant 0 : index
    %c0_40 = arith.constant 0 : index
    %c0_41 = arith.constant 0 : index
    %c0_42 = arith.constant 0 : index
    %94 = vector.load %arg6[%c0_39, %c0_40, %c0_41, %c0_42] : memref<1x8x16x128xbf16, #tpu.memory_space<vmem>>, vector<1x8x16x128xbf16>
    tpu.vector_store %arg6[%c0_39, %c0_40, %c0_41, %c0_42], %93 {strides = array<i32>} : memref<1x8x16x128xbf16, #tpu.memory_space<vmem>>, vector<1x8x16x128xbf16>,
    %cst_43 = arith.constant dense<0.000000e+00> : vector<128xf32>
    %95 = vector.multi_reduction <add>, %91, %cst_43 [0] : vector<128x128xf32> to vector<128xf32>
    %96 = vector.shape_cast %95 : vector<128xf32> to vector<1x1x128xf32>
    %c0_44 = arith.constant 0 : index
    %c0_45 = arith.constant 0 : index
    %c0_46 = arith.constant 0 : index
    %97 = vector.load %arg7[%c0_44, %c0_45, %c0_46] : memref<1x1x128xf32, #tpu.memory_space<vmem>>, vector<1x1x128xf32>
    tpu.vector_store %arg7[%c0_44, %c0_45, %c0_46], %96 {strides = array<i32>} : memref<1x1x128xf32, #tpu.memory_space<vmem>>, vector<1x1x128xf32>,
    %98 = arith.mulf %91, %91 : vector<128x128xf32>
    %cst_47 = arith.constant dense<0.000000e+00> : vector<128xf32>
    %99 = vector.multi_reduction <add>, %98, %cst_47 [0] : vector<128x128xf32> to vector<128xf32>
    %100 = vector.shape_cast %99 : vector<128xf32> to vector<1x1x128xf32>
    %c0_48 = arith.constant 0 : index
    %c0_49 = arith.constant 0 : index
    %c0_50 = arith.constant 0 : index
    %101 = vector.load %arg8[%c0_48, %c0_49, %c0_50] : memref<1x1x128xf32, #tpu.memory_space<vmem>>, vector<1x1x128xf32>
    tpu.vector_store %arg8[%c0_48, %c0_49, %c0_50], %100 {strides = array<i32>} : memref<1x1x128xf32, #tpu.memory_space<vmem>>, vector<1x1x128xf32>,
    return
  }
  func.func @transform_0(%arg0: i32, %arg1: i32) -> (i32, i32, i32, i32) {
    %c2_i32 = arith.constant 2 : i32
    %0 = arith.muli %arg0, %c2_i32 : i32
    %1 = arith.addi %0, %arg1 : i32
    %c0_i32 = arith.constant 0 : i32
    %c0_i32_0 = arith.constant 0 : i32
    %c0_i32_1 = arith.constant 0 : i32
    %c0_i32_2 = arith.constant 0 : i32
    return %1, %c0_i32, %c0_i32_0, %c0_i32_1 : i32, i32, i32, i32
  }
  func.func @transform_1(%arg0: i32, %arg1: i32) -> (i32, i32) {
    %c0_i32 = arith.constant 0 : i32
    %c0_i32_0 = arith.constant 0 : i32
    %c0_i32_1 = arith.constant 0 : i32
    return %c0_i32, %c0_i32_0 : i32, i32
  }
  func.func @transform_2(%arg0: i32, %arg1: i32) -> (i32, i32) {
    %c0_i32 = arith.constant 0 : i32
    %c0_i32_0 = arith.constant 0 : i32
    %c0_i32_1 = arith.constant 0 : i32
    return %c0_i32, %c0_i32_0 : i32, i32
  }
  func.func @transform_3(%arg0: i32, %arg1: i32) -> (i32, i32, i32) {
    %c0_i32 = arith.constant 0 : i32
    %c0_i32_0 = arith.constant 0 : i32
    %c0_i32_1 = arith.constant 0 : i32
    %c0_i32_2 = arith.constant 0 : i32
    return %c0_i32, %c0_i32_0, %c0_i32_1 : i32, i32, i32
  }
  func.func @transform_4(%arg0: i32, %arg1: i32) -> (i32, i32, i32, i32) {
    %c0_i32 = arith.constant 0 : i32
    %c0_i32_0 = arith.constant 0 : i32
    %c0_i32_1 = arith.constant 0 : i32
    return %arg0, %arg1, %c0_i32, %c0_i32_0 : i32, i32, i32, i32
  }
  func.func @transform_5(%arg0: i32, %arg1: i32) -> (i32, i32, i32) {
    %c2_i32 = arith.constant 2 : i32
    %0 = arith.muli %arg0, %c2_i32 : i32
    %1 = arith.addi %0, %arg1 : i32
    %c0_i32 = arith.constant 0 : i32
    %c0_i32_0 = arith.constant 0 : i32
    %c0_i32_1 = arith.constant 0 : i32
    return %1, %c0_i32, %c0_i32_0 : i32, i32, i32
  }
  func.func @transform_6(%arg0: i32, %arg1: i32) -> (i32, i32, i32) {
    %c2_i32 = arith.constant 2 : i32
    %0 = arith.muli %arg0, %c2_i32 : i32
    %1 = arith.addi %0, %arg1 : i32
    %c0_i32 = arith.constant 0 : i32
    %c0_i32_0 = arith.constant 0 : i32
    %c0_i32_1 = arith.constant 0 : i32
    return %1, %c0_i32, %c0_i32_0 : i32, i32, i32
  }
}

module attributes {stable_mosaic.version = 11 : i64} {
  func.func @_conv1_kernel(%arg0: i32, %arg1: i32, %arg2: memref<1x10x18x128xbf16, #tpu.memory_space<vmem>>, %arg3: memref<9x128x128xbf16, #tpu.memory_space<vmem>>, %arg4: memref<1x8x16x128xbf16, #tpu.memory_space<vmem>>, %arg5: memref<1x1x128xf32, #tpu.memory_space<vmem>>, %arg6: memref<1x1x128xf32, #tpu.memory_space<vmem>>) attributes {dimension_semantics = [#tpu.dimension_semantics<parallel>, #tpu.dimension_semantics<parallel>], iteration_bounds = array<i64: 2, 2>, scalar_prefetch = 0 : i64, scratch_operands = 0 : i64, tpu.core_type = #tpu.core_type<tc>, window_params = [{transform_indices = @transform_0, window_bounds = array<i64: 1, 10, 18, 128>}, {pipeline_mode = #tpu.pipeline_mode<synchronous>, transform_indices = @transform_1, window_bounds = array<i64: 9, 128, 128>}, {transform_indices = @transform_2, window_bounds = array<i64: 1, 8, 16, 128>}, {transform_indices = @transform_3, window_bounds = array<i64: 1, 1, 128>}, {transform_indices = @transform_4, window_bounds = array<i64: 1, 1, 128>}]} {
    %c0 = arith.constant 0 : index
    %c0_0 = arith.constant 0 : index
    %c0_1 = arith.constant 0 : index
    %c0_2 = arith.constant 0 : index
    %0 = vector.load %arg2[%c0, %c0_0, %c0_1, %c0_2] : memref<1x10x18x128xbf16, #tpu.memory_space<vmem>>, vector<1x10x18x128xbf16>
    %1 = vector.shape_cast %0 : vector<1x10x18x128xbf16> to vector<10x18x128xbf16>
    %cst = arith.constant 0.000000e+00 : f32
    %2 = vector.broadcast %cst : f32 to vector<128x128xf32>
    %3 = vector.extract_strided_slice %1 {offsets = [0, 0, 0], sizes = [8, 16, 128], strides = [1, 1, 1]} : vector<10x18x128xbf16> to vector<8x16x128xbf16>
    %4 = vector.shape_cast %3 : vector<8x16x128xbf16> to vector<128x128xbf16>
    %c0_3 = arith.constant 0 : index
    %c0_4 = arith.constant 0 : index
    %c0_5 = arith.constant 0 : index
    %5 = vector.load %arg3[%c0_3, %c0_4, %c0_5] : memref<9x128x128xbf16, #tpu.memory_space<vmem>>, vector<1x128x128xbf16>
    %6 = vector.shape_cast %5 : vector<1x128x128xbf16> to vector<128x128xbf16>
    %cst_6 = arith.constant dense<0.000000e+00> : vector<128x128xf32>
    %7 = tpu.matmul %4, %6, %cst_6 {dimension_numbers = #tpu.dot_dimension_numbers<[1], [0], [0], [1], [0, 0, 1, 1], [], []>} : vector<128x128xbf16>, vector<128x128xbf16>, vector<128x128xf32> -> vector<128x128xf32>
    %8 = arith.addf %2, %7 : vector<128x128xf32>
    %9 = vector.extract_strided_slice %1 {offsets = [0, 1, 0], sizes = [8, 16, 128], strides = [1, 1, 1]} : vector<10x18x128xbf16> to vector<8x16x128xbf16>
    %10 = vector.shape_cast %9 : vector<8x16x128xbf16> to vector<128x128xbf16>
    %c1 = arith.constant 1 : index
    %c0_7 = arith.constant 0 : index
    %c0_8 = arith.constant 0 : index
    %11 = vector.load %arg3[%c1, %c0_7, %c0_8] : memref<9x128x128xbf16, #tpu.memory_space<vmem>>, vector<1x128x128xbf16>
    %12 = vector.shape_cast %11 : vector<1x128x128xbf16> to vector<128x128xbf16>
    %cst_9 = arith.constant dense<0.000000e+00> : vector<128x128xf32>
    %13 = tpu.matmul %10, %12, %cst_9 {dimension_numbers = #tpu.dot_dimension_numbers<[1], [0], [0], [1], [0, 0, 1, 1], [], []>} : vector<128x128xbf16>, vector<128x128xbf16>, vector<128x128xf32> -> vector<128x128xf32>
    %14 = arith.addf %8, %13 : vector<128x128xf32>
    %15 = vector.extract_strided_slice %1 {offsets = [0, 2, 0], sizes = [8, 16, 128], strides = [1, 1, 1]} : vector<10x18x128xbf16> to vector<8x16x128xbf16>
    %16 = vector.shape_cast %15 : vector<8x16x128xbf16> to vector<128x128xbf16>
    %c2 = arith.constant 2 : index
    %c0_10 = arith.constant 0 : index
    %c0_11 = arith.constant 0 : index
    %17 = vector.load %arg3[%c2, %c0_10, %c0_11] : memref<9x128x128xbf16, #tpu.memory_space<vmem>>, vector<1x128x128xbf16>
    %18 = vector.shape_cast %17 : vector<1x128x128xbf16> to vector<128x128xbf16>
    %cst_12 = arith.constant dense<0.000000e+00> : vector<128x128xf32>
    %19 = tpu.matmul %16, %18, %cst_12 {dimension_numbers = #tpu.dot_dimension_numbers<[1], [0], [0], [1], [0, 0, 1, 1], [], []>} : vector<128x128xbf16>, vector<128x128xbf16>, vector<128x128xf32> -> vector<128x128xf32>
    %20 = arith.addf %14, %19 : vector<128x128xf32>
    %21 = vector.extract_strided_slice %1 {offsets = [1, 0, 0], sizes = [8, 16, 128], strides = [1, 1, 1]} : vector<10x18x128xbf16> to vector<8x16x128xbf16>
    %22 = vector.shape_cast %21 : vector<8x16x128xbf16> to vector<128x128xbf16>
    %c3 = arith.constant 3 : index
    %c0_13 = arith.constant 0 : index
    %c0_14 = arith.constant 0 : index
    %23 = vector.load %arg3[%c3, %c0_13, %c0_14] : memref<9x128x128xbf16, #tpu.memory_space<vmem>>, vector<1x128x128xbf16>
    %24 = vector.shape_cast %23 : vector<1x128x128xbf16> to vector<128x128xbf16>
    %cst_15 = arith.constant dense<0.000000e+00> : vector<128x128xf32>
    %25 = tpu.matmul %22, %24, %cst_15 {dimension_numbers = #tpu.dot_dimension_numbers<[1], [0], [0], [1], [0, 0, 1, 1], [], []>} : vector<128x128xbf16>, vector<128x128xbf16>, vector<128x128xf32> -> vector<128x128xf32>
    %26 = arith.addf %20, %25 : vector<128x128xf32>
    %27 = vector.extract_strided_slice %1 {offsets = [1, 1, 0], sizes = [8, 16, 128], strides = [1, 1, 1]} : vector<10x18x128xbf16> to vector<8x16x128xbf16>
    %28 = vector.shape_cast %27 : vector<8x16x128xbf16> to vector<128x128xbf16>
    %c4 = arith.constant 4 : index
    %c0_16 = arith.constant 0 : index
    %c0_17 = arith.constant 0 : index
    %29 = vector.load %arg3[%c4, %c0_16, %c0_17] : memref<9x128x128xbf16, #tpu.memory_space<vmem>>, vector<1x128x128xbf16>
    %30 = vector.shape_cast %29 : vector<1x128x128xbf16> to vector<128x128xbf16>
    %cst_18 = arith.constant dense<0.000000e+00> : vector<128x128xf32>
    %31 = tpu.matmul %28, %30, %cst_18 {dimension_numbers = #tpu.dot_dimension_numbers<[1], [0], [0], [1], [0, 0, 1, 1], [], []>} : vector<128x128xbf16>, vector<128x128xbf16>, vector<128x128xf32> -> vector<128x128xf32>
    %32 = arith.addf %26, %31 : vector<128x128xf32>
    %33 = vector.extract_strided_slice %1 {offsets = [1, 2, 0], sizes = [8, 16, 128], strides = [1, 1, 1]} : vector<10x18x128xbf16> to vector<8x16x128xbf16>
    %34 = vector.shape_cast %33 : vector<8x16x128xbf16> to vector<128x128xbf16>
    %c5 = arith.constant 5 : index
    %c0_19 = arith.constant 0 : index
    %c0_20 = arith.constant 0 : index
    %35 = vector.load %arg3[%c5, %c0_19, %c0_20] : memref<9x128x128xbf16, #tpu.memory_space<vmem>>, vector<1x128x128xbf16>
    %36 = vector.shape_cast %35 : vector<1x128x128xbf16> to vector<128x128xbf16>
    %cst_21 = arith.constant dense<0.000000e+00> : vector<128x128xf32>
    %37 = tpu.matmul %34, %36, %cst_21 {dimension_numbers = #tpu.dot_dimension_numbers<[1], [0], [0], [1], [0, 0, 1, 1], [], []>} : vector<128x128xbf16>, vector<128x128xbf16>, vector<128x128xf32> -> vector<128x128xf32>
    %38 = arith.addf %32, %37 : vector<128x128xf32>
    %39 = vector.extract_strided_slice %1 {offsets = [2, 0, 0], sizes = [8, 16, 128], strides = [1, 1, 1]} : vector<10x18x128xbf16> to vector<8x16x128xbf16>
    %40 = vector.shape_cast %39 : vector<8x16x128xbf16> to vector<128x128xbf16>
    %c6 = arith.constant 6 : index
    %c0_22 = arith.constant 0 : index
    %c0_23 = arith.constant 0 : index
    %41 = vector.load %arg3[%c6, %c0_22, %c0_23] : memref<9x128x128xbf16, #tpu.memory_space<vmem>>, vector<1x128x128xbf16>
    %42 = vector.shape_cast %41 : vector<1x128x128xbf16> to vector<128x128xbf16>
    %cst_24 = arith.constant dense<0.000000e+00> : vector<128x128xf32>
    %43 = tpu.matmul %40, %42, %cst_24 {dimension_numbers = #tpu.dot_dimension_numbers<[1], [0], [0], [1], [0, 0, 1, 1], [], []>} : vector<128x128xbf16>, vector<128x128xbf16>, vector<128x128xf32> -> vector<128x128xf32>
    %44 = arith.addf %38, %43 : vector<128x128xf32>
    %45 = vector.extract_strided_slice %1 {offsets = [2, 1, 0], sizes = [8, 16, 128], strides = [1, 1, 1]} : vector<10x18x128xbf16> to vector<8x16x128xbf16>
    %46 = vector.shape_cast %45 : vector<8x16x128xbf16> to vector<128x128xbf16>
    %c7 = arith.constant 7 : index
    %c0_25 = arith.constant 0 : index
    %c0_26 = arith.constant 0 : index
    %47 = vector.load %arg3[%c7, %c0_25, %c0_26] : memref<9x128x128xbf16, #tpu.memory_space<vmem>>, vector<1x128x128xbf16>
    %48 = vector.shape_cast %47 : vector<1x128x128xbf16> to vector<128x128xbf16>
    %cst_27 = arith.constant dense<0.000000e+00> : vector<128x128xf32>
    %49 = tpu.matmul %46, %48, %cst_27 {dimension_numbers = #tpu.dot_dimension_numbers<[1], [0], [0], [1], [0, 0, 1, 1], [], []>} : vector<128x128xbf16>, vector<128x128xbf16>, vector<128x128xf32> -> vector<128x128xf32>
    %50 = arith.addf %44, %49 : vector<128x128xf32>
    %51 = vector.extract_strided_slice %1 {offsets = [2, 2, 0], sizes = [8, 16, 128], strides = [1, 1, 1]} : vector<10x18x128xbf16> to vector<8x16x128xbf16>
    %52 = vector.shape_cast %51 : vector<8x16x128xbf16> to vector<128x128xbf16>
    %c8 = arith.constant 8 : index
    %c0_28 = arith.constant 0 : index
    %c0_29 = arith.constant 0 : index
    %53 = vector.load %arg3[%c8, %c0_28, %c0_29] : memref<9x128x128xbf16, #tpu.memory_space<vmem>>, vector<1x128x128xbf16>
    %54 = vector.shape_cast %53 : vector<1x128x128xbf16> to vector<128x128xbf16>
    %cst_30 = arith.constant dense<0.000000e+00> : vector<128x128xf32>
    %55 = tpu.matmul %52, %54, %cst_30 {dimension_numbers = #tpu.dot_dimension_numbers<[1], [0], [0], [1], [0, 0, 1, 1], [], []>} : vector<128x128xbf16>, vector<128x128xbf16>, vector<128x128xf32> -> vector<128x128xf32>
    %56 = arith.addf %50, %55 : vector<128x128xf32>
    %57 = vector.shape_cast %56 : vector<128x128xf32> to vector<1x8x16x128xf32>
    %58 = arith.truncf %57 : vector<1x8x16x128xf32> to vector<1x8x16x128xbf16>
    %c0_31 = arith.constant 0 : index
    %c0_32 = arith.constant 0 : index
    %c0_33 = arith.constant 0 : index
    %c0_34 = arith.constant 0 : index
    %59 = vector.load %arg4[%c0_31, %c0_32, %c0_33, %c0_34] : memref<1x8x16x128xbf16, #tpu.memory_space<vmem>>, vector<1x8x16x128xbf16>
    tpu.vector_store %arg4[%c0_31, %c0_32, %c0_33, %c0_34], %58 {strides = array<i32>} : memref<1x8x16x128xbf16, #tpu.memory_space<vmem>>, vector<1x8x16x128xbf16>,
    %cst_35 = arith.constant dense<0.000000e+00> : vector<128xf32>
    %60 = vector.multi_reduction <add>, %56, %cst_35 [0] : vector<128x128xf32> to vector<128xf32>
    %61 = vector.shape_cast %60 : vector<128xf32> to vector<1x1x128xf32>
    %c0_36 = arith.constant 0 : index
    %c0_37 = arith.constant 0 : index
    %c0_38 = arith.constant 0 : index
    %62 = vector.load %arg5[%c0_36, %c0_37, %c0_38] : memref<1x1x128xf32, #tpu.memory_space<vmem>>, vector<1x1x128xf32>
    tpu.vector_store %arg5[%c0_36, %c0_37, %c0_38], %61 {strides = array<i32>} : memref<1x1x128xf32, #tpu.memory_space<vmem>>, vector<1x1x128xf32>,
    %63 = arith.mulf %56, %56 : vector<128x128xf32>
    %cst_39 = arith.constant dense<0.000000e+00> : vector<128xf32>
    %64 = vector.multi_reduction <add>, %63, %cst_39 [0] : vector<128x128xf32> to vector<128xf32>
    %65 = vector.shape_cast %64 : vector<128xf32> to vector<1x1x128xf32>
    %c0_40 = arith.constant 0 : index
    %c0_41 = arith.constant 0 : index
    %c0_42 = arith.constant 0 : index
    %66 = vector.load %arg6[%c0_40, %c0_41, %c0_42] : memref<1x1x128xf32, #tpu.memory_space<vmem>>, vector<1x1x128xf32>
    tpu.vector_store %arg6[%c0_40, %c0_41, %c0_42], %65 {strides = array<i32>} : memref<1x1x128xf32, #tpu.memory_space<vmem>>, vector<1x1x128xf32>,
    return
  }
  func.func @transform_0(%arg0: i32, %arg1: i32) -> (i32, i32, i32, i32) {
    %c2_i32 = arith.constant 2 : i32
    %0 = arith.muli %arg0, %c2_i32 : i32
    %1 = arith.addi %0, %arg1 : i32
    %c0_i32 = arith.constant 0 : i32
    %c0_i32_0 = arith.constant 0 : i32
    %c0_i32_1 = arith.constant 0 : i32
    %c0_i32_2 = arith.constant 0 : i32
    return %1, %c0_i32, %c0_i32_0, %c0_i32_1 : i32, i32, i32, i32
  }
  func.func @transform_1(%arg0: i32, %arg1: i32) -> (i32, i32, i32) {
    %c0_i32 = arith.constant 0 : i32
    %c0_i32_0 = arith.constant 0 : i32
    %c0_i32_1 = arith.constant 0 : i32
    %c0_i32_2 = arith.constant 0 : i32
    return %c0_i32, %c0_i32_0, %c0_i32_1 : i32, i32, i32
  }
  func.func @transform_2(%arg0: i32, %arg1: i32) -> (i32, i32, i32, i32) {
    %c0_i32 = arith.constant 0 : i32
    %c0_i32_0 = arith.constant 0 : i32
    %c0_i32_1 = arith.constant 0 : i32
    return %arg0, %arg1, %c0_i32, %c0_i32_0 : i32, i32, i32, i32
  }
  func.func @transform_3(%arg0: i32, %arg1: i32) -> (i32, i32, i32) {
    %c2_i32 = arith.constant 2 : i32
    %0 = arith.muli %arg0, %c2_i32 : i32
    %1 = arith.addi %0, %arg1 : i32
    %c0_i32 = arith.constant 0 : i32
    %c0_i32_0 = arith.constant 0 : i32
    %c0_i32_1 = arith.constant 0 : i32
    return %1, %c0_i32, %c0_i32_0 : i32, i32, i32
  }
  func.func @transform_4(%arg0: i32, %arg1: i32) -> (i32, i32, i32) {
    %c2_i32 = arith.constant 2 : i32
    %0 = arith.muli %arg0, %c2_i32 : i32
    %1 = arith.addi %0, %arg1 : i32
    %c0_i32 = arith.constant 0 : i32
    %c0_i32_0 = arith.constant 0 : i32
    %c0_i32_1 = arith.constant 0 : i32
    return %1, %c0_i32, %c0_i32_0 : i32, i32, i32
  }
}

module attributes {stable_mosaic.version = 11 : i64} {
  func.func @_finalize_kernel(%arg0: i32, %arg1: i32, %arg2: memref<1x8x16x128xbf16, #tpu.memory_space<vmem>>, %arg3: memref<1x8x16x128xbf16, #tpu.memory_space<vmem>>, %arg4: memref<1x128xf32, #tpu.memory_space<vmem>>, %arg5: memref<1x128xf32, #tpu.memory_space<vmem>>, %arg6: memref<1x8x16x128xbf16, #tpu.memory_space<vmem>>) attributes {dimension_semantics = [#tpu.dimension_semantics<parallel>, #tpu.dimension_semantics<parallel>], iteration_bounds = array<i64: 2, 2>, scalar_prefetch = 0 : i64, scratch_operands = 0 : i64, tpu.core_type = #tpu.core_type<tc>, window_params = [{transform_indices = @transform_0, window_bounds = array<i64: 1, 8, 16, 128>}, {transform_indices = @transform_1, window_bounds = array<i64: 1, 8, 16, 128>}, {pipeline_mode = #tpu.pipeline_mode<synchronous>, transform_indices = @transform_2, window_bounds = array<i64: 1, 128>}, {pipeline_mode = #tpu.pipeline_mode<synchronous>, transform_indices = @transform_3, window_bounds = array<i64: 1, 128>}, {transform_indices = @transform_4, window_bounds = array<i64: 1, 8, 16, 128>}]} {
    %c0 = arith.constant 0 : index
    %c0_0 = arith.constant 0 : index
    %0 = vector.load %arg4[%c0, %c0_0] : memref<1x128xf32, #tpu.memory_space<vmem>>, vector<1x128xf32>
    %1 = vector.shape_cast %0 : vector<1x128xf32> to vector<1x1x1x128xf32>
    %c0_1 = arith.constant 0 : index
    %c0_2 = arith.constant 0 : index
    %2 = vector.load %arg5[%c0_1, %c0_2] : memref<1x128xf32, #tpu.memory_space<vmem>>, vector<1x128xf32>
    %3 = vector.shape_cast %2 : vector<1x128xf32> to vector<1x1x1x128xf32>
    %c0_3 = arith.constant 0 : index
    %c0_4 = arith.constant 0 : index
    %c0_5 = arith.constant 0 : index
    %c0_6 = arith.constant 0 : index
    %4 = vector.load %arg2[%c0_3, %c0_4, %c0_5, %c0_6] : memref<1x8x16x128xbf16, #tpu.memory_space<vmem>>, vector<1x8x16x128xbf16>
    %5 = arith.extf %4 : vector<1x8x16x128xbf16> to vector<1x8x16x128xf32>
    %6 = vector.broadcast %1 : vector<1x1x1x128xf32> to vector<1x8x16x128xf32>
    %7 = arith.mulf %5, %6 : vector<1x8x16x128xf32>
    %8 = vector.broadcast %3 : vector<1x1x1x128xf32> to vector<1x8x16x128xf32>
    %9 = arith.addf %7, %8 : vector<1x8x16x128xf32>
    %c0_7 = arith.constant 0 : index
    %c0_8 = arith.constant 0 : index
    %c0_9 = arith.constant 0 : index
    %c0_10 = arith.constant 0 : index
    %10 = vector.load %arg3[%c0_7, %c0_8, %c0_9, %c0_10] : memref<1x8x16x128xbf16, #tpu.memory_space<vmem>>, vector<1x8x16x128xbf16>
    %11 = arith.extf %10 : vector<1x8x16x128xbf16> to vector<1x8x16x128xf32>
    %12 = arith.addf %9, %11 : vector<1x8x16x128xf32>
    %cst = arith.constant 0.000000e+00 : f32
    %13 = vector.broadcast %cst : f32 to vector<1x8x16x128xf32>
    %14 = arith.maximumf %12, %13 : vector<1x8x16x128xf32>
    %15 = arith.truncf %14 : vector<1x8x16x128xf32> to vector<1x8x16x128xbf16>
    %c0_11 = arith.constant 0 : index
    %c0_12 = arith.constant 0 : index
    %c0_13 = arith.constant 0 : index
    %c0_14 = arith.constant 0 : index
    %16 = vector.load %arg6[%c0_11, %c0_12, %c0_13, %c0_14] : memref<1x8x16x128xbf16, #tpu.memory_space<vmem>>, vector<1x8x16x128xbf16>
    tpu.vector_store %arg6[%c0_11, %c0_12, %c0_13, %c0_14], %15 {strides = array<i32>} : memref<1x8x16x128xbf16, #tpu.memory_space<vmem>>, vector<1x8x16x128xbf16>,
    return
  }
  func.func @transform_0(%arg0: i32, %arg1: i32) -> (i32, i32, i32, i32) {
    %c0_i32 = arith.constant 0 : i32
    %c0_i32_0 = arith.constant 0 : i32
    %c0_i32_1 = arith.constant 0 : i32
    return %arg0, %arg1, %c0_i32, %c0_i32_0 : i32, i32, i32, i32
  }
  func.func @transform_1(%arg0: i32, %arg1: i32) -> (i32, i32, i32, i32) {
    %c0_i32 = arith.constant 0 : i32
    %c0_i32_0 = arith.constant 0 : i32
    %c0_i32_1 = arith.constant 0 : i32
    return %arg0, %arg1, %c0_i32, %c0_i32_0 : i32, i32, i32, i32
  }
  func.func @transform_2(%arg0: i32, %arg1: i32) -> (i32, i32) {
    %c0_i32 = arith.constant 0 : i32
    %c0_i32_0 = arith.constant 0 : i32
    %c0_i32_1 = arith.constant 0 : i32
    return %c0_i32, %c0_i32_0 : i32, i32
  }
  func.func @transform_3(%arg0: i32, %arg1: i32) -> (i32, i32) {
    %c0_i32 = arith.constant 0 : i32
    %c0_i32_0 = arith.constant 0 : i32
    %c0_i32_1 = arith.constant 0 : i32
    return %c0_i32, %c0_i32_0 : i32, i32
  }
  func.func @transform_4(%arg0: i32, %arg1: i32) -> (i32, i32, i32, i32) {
    %c0_i32 = arith.constant 0 : i32
    %c0_i32_0 = arith.constant 0 : i32
    %c0_i32_1 = arith.constant 0 : i32
    return %arg0, %arg1, %c0_i32, %c0_i32_0 : i32, i32, i32, i32
  }
}

</mosaic_0001>

<bundles_post_ra>
// kernel: basic_block_pallas.5
= control target key start
LH: loop header
LB: loop body
LE: loop exit
PB: predicated region body
PF: predicated region fallthrough
CT: control target
= control target key end

     0   :  { %s820_s15 = smov 0   ;;  %s822_s16 = smov 0   ;;  %s951_s0 = inlined_call_operand.vmem [shape: bf16[2,16,16,128], index: 0, kind: input, shape index: {}]   ;;  %s952_s1 = inlined_call_operand.vmem [shape: bf16[2,16,16,128], index: 1, kind: input, shape index: {}]   ;;  %s953_s2 = inlined_call_operand.vmem [shape: f32[1,128], index: 2, kind: input, shape index: {}]   ;;  %s954_s3 = inlined_call_operand.vmem [shape: f32[1,128], index: 3, kind: input, shape index: {}]   ;;  %s955_s4 = inlined_call_operand.vmem [shape: bf16[2,16,16,128], index: 4, kind: output, shape index: {}]  }
   0x1   :  { %s824_s17 = smov 0   ;;  %s826_s18 = smov 0  }
   0x2   :  { %s828_s19 = smov 0  }
   0x3 LB: > { %s23_s20 = sadd.s32 1, %s785_s17  ;;  %s26_s21 = sadd.s32 1, %s789_s18  ;;  %s793_s19 = sphi %s828_s19, %s14_s19   ;;  %s789_s18 = sphi %s826_s18, %s959_s18   ;;  %s785_s17 = sphi %s824_s17, %s958_s17   ;;  %s781_s16 = sphi %s822_s16, %s957_s16   ;;  %s777_s15 = sphi %s820_s15, %s956_s15  }
   0x4   : > { %p24_p0 = scmp.ge.s32.totalorder %s23_s20, 2  ;;  %p573_p1 = scmp.ge.s32.totalorder %s793_s19, 1 }
   0x5   : > { %p202_p2 = scmp.lt.s32.totalorder %s793_s19, 5 }
   0x6   : > { %s961_s20 = smov (%p24_p0, %s23_s20), 0  ;;  %s963_s21 = smov (!%p24_p0, %s26_s21), %s789_s18 }
   0x7   : > { %p203_p3 = pnand %p573_p1, %p202_p2  ;;  %p28_p4 = scmp.ge.s32.totalorder %s963_s21, 2 }
   0x8   : > { %s574_s22 = sshll.u32 (!%p203_p3), %s777_s15, 3  ;;  %p249_p5 = scmp.lt.s32.totalorder (!%p203_p3), %s781_s16, 1 }
   0x9   : > { %s965_s21 = smov (%p28_p4, %s963_s21), 0  ;;  %206 = sbr.rel (%p203_p3) target bundleno = 53 (0x35), region = 36 }
   0xa   : > { %p251_p6 = scmp.lt.s32.totalorder (!%p203_p3), %s574_s22, 15 }
   0xe   : > { %s967_s16 = smov (!%p249_p5, %s781_s16), 1  ;;  %s969_s22 = smov (!%p251_p6, %s574_s22), 15  ;;  %v867_v0 = vld [vmem:[%s953_s2] ss:$0 sm:$0xff] }
   0xf   : > { %s576_s23 = sshll.u32 %s967_s16, 5  ;;  %s575_s24 = sshll.u32 %s969_s22, 1  ;;  %v872_v1 = vld [vmem:[%s954_s3] ss:$0 sm:$0xff] }
  0x10   : > { %s255_s25 = sadd.s32 %s576_s23, %s575_s24 }
  0x11   : > { %s850_s26 = sshll.u32 %s255_s25, 2 }
  0x12   : > { %s856_s29 = scalar_lea.vmem %s951_s0, %s850_s26  ;;  %s862_s6 = scalar_lea.vmem %s952_s1, %s850_s26 }
  0x13   : > { %v589_v2 = vld [vmem:[%s856_s29] sm:$0xff]   ;;  %v692_v4 = vld [vmem:[%s856_s29 + $0x8] sm:$0xff]   ;;  %v693_v10 = vld [vmem:[%s856_s29 + $0x10] sm:$0xff]   ;;  %s901_s13 = scalar_lea.vmem %s955_s4, %s850_s26 }
  0x14   : > { %v621_v3 = vld [vmem:[%s862_s6] sm:$0xff]   ;;  %v590_v5 = vunpack.c.l.bf16 %v589_v2  ;;  %v591_v6 = vunpack.c.h.bf16 %v589_v2  ;;  %v699_v9 = vld [vmem:[%s862_s6 + $0x8] sm:$0xff]   ;;  %v700_v11 = vld [vmem:[%s862_s6 + $0x10] sm:$0xff]   ;;  %v594_v12 = vunpack.c.l.bf16 %v692_v4  ;;  %v595_v13 = vunpack.c.h.bf16 %v692_v4 }
  0x15   : > { %v622_v7 = vunpack.c.l.bf16 %v621_v3  ;;  %v623_v8 = vunpack.c.h.bf16 %v621_v3  ;;  %v626_v14 = vunpack.c.l.bf16 %v699_v9  ;;  %v627_v15 = vunpack.c.h.bf16 %v699_v9  ;;  %v694_v20 = vld [vmem:[%s856_s29 + $0x18] sm:$0xff]   ;;  %v695_v46 = vld [vmem:[%s856_s29 + $0x20] sm:$0xff]   ;;  %v696_v56 = vld [vmem:[%s856_s29 + $0x28] sm:$0xff]  }
  0x16   : > { %v318_v16 = vmul.f32 %v867_v0, %v590_v5  ;;  %v319_v17 = vmul.f32 %v867_v0, %v591_v6  ;;  %v598_v18 = vunpack.c.l.bf16 %v693_v10  ;;  %v599_v19 = vunpack.c.h.bf16 %v693_v10  ;;  %v701_v41 = vld [vmem:[%s862_s6 + $0x18] sm:$0xff]   ;;  %v702_v51 = vld [vmem:[%s862_s6 + $0x20] sm:$0xff]   ;;  %v703_v61 = vld [vmem:[%s862_s6 + $0x28] sm:$0xff]  }
  0x17   : > { %v320_v21 = vmul.f32 %v867_v0, %v594_v12  ;;  %v321_v22 = vmul.f32 %v867_v0, %v595_v13  ;;  %v630_v23 = vunpack.c.l.bf16 %v700_v11  ;;  %v631_v24 = vunpack.c.h.bf16 %v700_v11  ;;  %v704_v9 = vld [vmem:[%s862_s6 + $0x30] sm:$0xff]  }
  0x18   : > { %v337_v25 = vadd.f32 %v872_v1, %v318_v16  ;;  %v338_v26 = vadd.f32 %v872_v1, %v319_v17  ;;  %v322_v27 = vmul.f32 %v867_v0, %v598_v18  ;;  %v323_v28 = vmul.f32 %v867_v0, %v599_v19 }
  0x19   : > { %v339_v29 = vadd.f32 %v872_v1, %v320_v21  ;;  %v340_v30 = vadd.f32 %v872_v1, %v321_v22  ;;  %v602_v31 = vunpack.c.l.bf16 %v694_v20  ;;  %v603_v32 = vunpack.c.h.bf16 %v694_v20  ;;  %v698_v22 = vld [vmem:[%s856_s29 + $0x38] sm:$0xff]  }
  0x1a   : > { %v385_v33 = vadd.f32 %v622_v7, %v337_v25  ;;  %v386_v34 = vadd.f32 %v623_v8, %v338_v26  ;;  %v341_v35 = vadd.f32 %v872_v1, %v322_v27  ;;  %v342_v36 = vadd.f32 %v872_v1, %v323_v28  ;;  %v697_v8 = vld [vmem:[%s856_s29 + $0x30] sm:$0xff]  }
  0x1b   : > { %v387_v37 = vadd.f32 %v626_v14, %v339_v29  ;;  %v388_v38 = vadd.f32 %v627_v15, %v340_v30  ;;  %v324_v39 = vmul.f32 %v867_v0, %v602_v31  ;;  %v325_v40 = vmul.f32 %v867_v0, %v603_v32  ;;  %v705_v31 = vld [vmem:[%s862_s6 + $0x38] sm:$0xff]  }
  0x1c   : > { %v401_v42 = vmax.f32 %v385_v33, 0.0  ;;  %v402_v43 = vmax.f32 %v386_v34, 0.0  ;;  %v389_v44 = vadd.f32 %v630_v23, %v341_v35  ;;  %v390_v45 = vadd.f32 %v631_v24, %v342_v36 }
  0x1d   : > { %v403_v47 = vmax.f32 %v387_v37, 0.0  ;;  %v404_v48 = vmax.f32 %v388_v38, 0.0  ;;  %v343_v49 = vadd.f32 %v872_v1, %v324_v39  ;;  %v344_v50 = vadd.f32 %v872_v1, %v325_v40 }
  0x1e   : > { %v655_v52 = vpack.c.bf16 %v402_v43, %v401_v42  ;;  %v405_v53 = vmax.f32 %v389_v44, 0.0  ;;  %v406_v54 = vmax.f32 %v390_v45, 0.0  ;;  %v634_v55 = vunpack.c.l.bf16 %v701_v41 }
  0x1f   : > { %v660_v57 = vpack.c.bf16 %v404_v48, %v403_v47  ;;  %v635_v58 = vunpack.c.h.bf16 %v701_v41  ;;  %v606_v59 = vunpack.c.l.bf16 %v695_v46  ;;  %v607_v60 = vunpack.c.h.bf16 %v695_v46 }
  0x20   : > { %656 = vst [vmem:[%s901_s13] sm:$0xff] %v655_v52   ;;  %v665_v62 = vpack.c.bf16 %v406_v54, %v405_v53  ;;  %v391_v63 = vadd.f32 %v634_v55, %v343_v49  ;;  %v638_v2 = vunpack.c.l.bf16 %v702_v51  ;;  %v639_v3 = vunpack.c.h.bf16 %v702_v51 }
  0x21   : > { %706 = vst [vmem:[%s901_s13 + $0x8] sm:$0xff] %v660_v57   ;;  %v392_v4 = vadd.f32 %v635_v58, %v344_v50  ;;  %v326_v5 = vmul.f32 %v867_v0, %v606_v59  ;;  %v327_v6 = vmul.f32 %v867_v0, %v607_v60  ;;  %v610_v7 = vunpack.c.l.bf16 %v696_v56 }
  0x22   : > { %707 = vst [vmem:[%s901_s13 + $0x10] sm:$0xff] %v665_v62   ;;  %v407_v10 = vmax.f32 %v391_v63, 0.0  ;;  %v611_v11 = vunpack.c.h.bf16 %v696_v56  ;;  %v642_v12 = vunpack.c.l.bf16 %v703_v61  ;;  %v643_v13 = vunpack.c.h.bf16 %v703_v61 }
  0x23   : > { %v408_v14 = vmax.f32 %v392_v4, 0.0  ;;  %v345_v15 = vadd.f32 %v872_v1, %v326_v5  ;;  %v346_v16 = vadd.f32 %v872_v1, %v327_v6  ;;  %v328_v17 = vmul.f32 %v867_v0, %v610_v7 }
  0x24   : > { %v329_v18 = vmul.f32 %v867_v0, %v611_v11  ;;  %v614_v19 = vunpack.c.l.bf16 %v697_v8  ;;  %v615_v20 = vunpack.c.h.bf16 %v697_v8  ;;  %v646_v21 = vunpack.c.l.bf16 %v704_v9 }
  0x25   : > { %v670_v23 = vpack.c.bf16 %v408_v14, %v407_v10  ;;  %v393_v24 = vadd.f32 %v638_v2, %v345_v15  ;;  %v394_v25 = vadd.f32 %v639_v3, %v346_v16  ;;  %v347_v26 = vadd.f32 %v872_v1, %v328_v17 }
  0x26   : > { %v348_v27 = vadd.f32 %v872_v1, %v329_v18  ;;  %v330_v28 = vmul.f32 %v867_v0, %v614_v19  ;;  %v331_v29 = vmul.f32 %v867_v0, %v615_v20  ;;  %v647_v30 = vunpack.c.h.bf16 %v704_v9 }
  0x27   : > { %708 = vst [vmem:[%s901_s13 + $0x18] sm:$0xff] %v670_v23   ;;  %v409_v32 = vmax.f32 %v393_v24, 0.0  ;;  %v410_v33 = vmax.f32 %v394_v25, 0.0  ;;  %v395_v34 = vadd.f32 %v642_v12, %v347_v26  ;;  %v618_v35 = vunpack.c.l.bf16 %v698_v22 }
  0x28   : > { %v396_v36 = vadd.f32 %v643_v13, %v348_v27  ;;  %v349_v37 = vadd.f32 %v872_v1, %v330_v28  ;;  %v350_v38 = vadd.f32 %v872_v1, %v331_v29  ;;  %v619_v39 = vunpack.c.h.bf16 %v698_v22 }
  0x29   : > { %v675_v40 = vpack.c.bf16 %v410_v33, %v409_v32  ;;  %v411_v41 = vmax.f32 %v395_v34, 0.0  ;;  %v332_v42 = vmul.f32 %v867_v0, %v618_v35  ;;  %v650_v43 = vunpack.c.l.bf16 %v705_v31 }
  0x2a   : > { %v412_v44 = vmax.f32 %v396_v36, 0.0  ;;  %v397_v45 = vadd.f32 %v646_v21, %v349_v37  ;;  %v398_v46 = vadd.f32 %v647_v30, %v350_v38  ;;  %v333_v47 = vmul.f32 %v867_v0, %v619_v39 }
  0x2b   : > { %709 = vst [vmem:[%s901_s13 + $0x20] sm:$0xff] %v675_v40   ;;  %v351_v48 = vadd.f32 %v872_v1, %v332_v42  ;;  %v651_v49 = vunpack.c.h.bf16 %v705_v31 }
  0x2c   : > { %v680_v50 = vpack.c.bf16 %v412_v44, %v411_v41  ;;  %v413_v51 = vmax.f32 %v397_v45, 0.0  ;;  %v414_v52 = vmax.f32 %v398_v46, 0.0  ;;  %v352_v53 = vadd.f32 %v872_v1, %v333_v47 }
  0x2d   : > { %v399_v54 = vadd.f32 %v650_v43, %v351_v48 }
  0x2e   : > { %710 = vst [vmem:[%s901_s13 + $0x28] sm:$0xff] %v680_v50   ;;  %v685_v55 = vpack.c.bf16 %v414_v52, %v413_v51  ;;  %v400_v56 = vadd.f32 %v651_v49, %v352_v53 }
  0x2f   : > { %v415_v57 = vmax.f32 %v399_v54, 0.0 }
  0x30   : > { %711 = vst [vmem:[%s901_s13 + $0x30] sm:$0xff] %v685_v55   ;;  %v416_v58 = vmax.f32 %v400_v56, 0.0 }
  0x32   : > { %v690_v59 = vpack.c.bf16 %v416_v58, %v415_v57 }
  0x34   : > { %712 = vst [vmem:[%s901_s13 + $0x38] sm:$0xff] %v690_v59  }
  0x35 PF: > { %s14_s19 = sadd.s32 1, %s793_s19   ;;  %s956_s15 = smov %s785_s17 }
  0x36   : > { %p11_p7 = scmp.ge.s32.totalorder %s14_s19, 6   ;;  %s957_s16 = smov %s789_s18 }
  0x37   : > { %s958_s17 = smov %s961_s20  ;;  %s959_s18 = smov %s965_s21 }
  0x38   :  { %13 = sbr.rel (!%p11_p7) target bundleno = 3 (0x3), region = 69 }

// kernel: basic_block_pallas.3
= control target key start
LH: loop header
LB: loop body
LE: loop exit
PB: predicated region body
PF: predicated region fallthrough
CT: control target
= control target key end

     0   :  { %s2897_s15 = smov 0   ;;  %s2899_s16 = smov 0   ;;  %s3645_s0 = inlined_call_operand.vmem [shape: bf16[4,10,18,128], index: 0, kind: input, shape index: {}]   ;;  %s3646_s1 = inlined_call_operand.vmem [shape: bf16[9,128,128], index: 1, kind: input, shape index: {}]   ;;  %s3647_s2 = inlined_call_operand.vmem [shape: bf16[2,16,16,128], index: 2, kind: output, shape index: {0}]   ;;  %s3648_s3 = inlined_call_operand.vmem [shape: f32[4,1,128], index: 3, kind: output, shape index: {1}]   ;;  %s3649_s4 = inlined_call_operand.vmem [shape: f32[4,1,128], index: 4, kind: output, shape index: {2}]  }
   0x1   :  { %s2901_s17 = smov 0   ;;  %s2903_s18 = smov 0  }
   0x2   :  { %s2905_s19 = smov 0  }
   0x3 LB: > { %s24_s20 = sadd.s32 1, %s2862_s17  ;;  %s27_s21 = sadd.s32 1, %s2866_s18  ;;  %s2870_s19 = sphi %s2905_s19, %s15_s19   ;;  %s2866_s18 = sphi %s2903_s18, %s3657_s18   ;;  %s2862_s17 = sphi %s2901_s17, %s3656_s17   ;;  %s2858_s16 = sphi %s2899_s16, %s3655_s16   ;;  %s2854_s15 = sphi %s2897_s15, %s3654_s15  }
   0x4   : > { %p25_p0 = scmp.ge.s32.totalorder %s24_s20, 2  ;;  %p2161_p1 = scmp.ge.s32.totalorder %s2870_s19, 1 }
   0x5   : > { %p197_p2 = scmp.lt.s32.totalorder %s2870_s19, 5 }
   0x6   : > { %s3659_s20 = smov (%p25_p0, %s24_s20), 0  ;;  %s3661_s21 = smov (!%p25_p0, %s27_s21), %s2866_s18 }
   0x7   : > { %p198_p3 = pnand %p2161_p1, %p197_p2  ;;  %p29_p4 = scmp.ge.s32.totalorder %s3661_s21, 2 }
   0x8   : > { %s2162_s24 = sshll.u32 (!%p198_p3), %s2858_s16, 1  ;;  %p250_p6 = scmp.lt.s32.totalorder (!%p198_p3), %s2858_s16, 1 }
   0x9   : > { %s3663_s21 = smov (%p29_p4, %s3661_s21), 0  ;;  %201 = sbr.rel (%p198_p3) target bundleno = 481 (0x1e1), region = 28 }
   0xa   : > { %s241_s25 = sadd.s32 (!%p198_p3), %s2854_s15, %s2162_s24 }
   0xb   : > { %p242_p5 = scmp.lt.s32.totalorder (!%p198_p3), %s241_s25, 3 }
   0xe   : > { %v2663_v0 = vld [vmem:[%s3646_s1 + $0x78] sm:$0xff]  ;;  %v2662_v1 = vld [vmem:[%s3646_s1 + $0x70] sm:$0xff]  ;;  %s3665_s25 = smov (!%p242_p5, %s241_s25), 3  ;;  %v2661_v2 = vld [vmem:[%s3646_s1 + $0x68] sm:$0xff]  ;;  %vm320_vm0 = vsmask.f32 3328 }
   0xf   : > { %2767 = vmatpush.bf16.msra.mxu1 %v2663_v0  ;;  %2768 = vmatpush.bf16.msra.mxu2 %v2663_v0  ;;  %s2791_s30 = smul.u32 120, %s3665_s25  ;;  %v2660_v3 = vld [vmem:[%s3646_s1 + $0x60] sm:$0xff]  ;;  %vm321_vm1 = vsmask.f32 7440  ;;  %v2659_v25 = vld [vmem:[%s3646_s1 + $0x58] sm:$0xff]  ;;  %v2658_v45 = vld [vmem:[%s3646_s1 + $0x50] sm:$0xff]  ;;  %s264_s24 = scalar_lea.vmem %s3648_s3, %s3665_s25 }
  0x10   : > { %2769 = vmatpush.bf16.msra.mxu3 %v2663_v0  ;;  %612 = vmatpush.bf16.msra.mxu0 %v2663_v0  ;;  %vm2992_vm2 = vmor %vm320_vm0, %vm321_vm1  ;;  %v2657_v0 = vld [vmem:[%s3646_s1 + $0x48] sm:$0xff]  ;;  %vm814_vm3 = vcmask 1042432   ;;  %vm815_vm4 = vcmask 1046532   ;;  %s3667_s16 = smov (!%p250_p6, %s2858_s16), 1  ;;  %s271_s28 = scalar_lea.vmem %s3649_s4, %s3665_s25 }
  0x11   : > { %s2951_s9 = scalar_lea.vmem %s3645_s0, %s2791_s30  ;;  %vm3207_vm5 = vmor %vm814_vm3, %vm815_vm4  ;;  %s2166_s11 = sshll.u32 %s3667_s16, 5 }
  0x12   : > { %v2954_v4 = vld [vmem:[%s2951_s9 + $0x18] sm:$0xf]  ;;  %v2957_v5 = vld [vmem:[%s2951_s9 + $0x1c] sm:$0xf]  ;;  %v2960_v6 = vld [vmem:[%s2951_s9 + $0x20] sm:$0x1] }
  0x13   : > { %2770 = vmatpush.bf16.msra.mxu1 %v2662_v1  ;;  %2771 = vmatpush.bf16.msra.mxu2 %v2662_v1  ;;  %v372_v7 = vshrl.u32 %v2954_v4, 16  ;;  %v375_v8 = vshll.u32 %v2954_v4, 16  ;;  %v381_v9 = vshll.u32 %v2957_v5, 16  ;;  %v385_v10 = vshrl.u32 %v2957_v5, 16  ;;  %v2967_v11 = vld [vmem:[%s2951_s9 + $0x30] sm:$0xf] }
  0x14   : > { %2772 = vmatpush.bf16.msra.mxu3 %v2662_v1  ;;  %613 = vmatpush.bf16.msra.mxu0 %v2662_v1  ;;  %v391_v12 = vshll.u32 %v2960_v6, 16  ;;  %v2971_v13 = vld [vmem:[%s2951_s9 + $0x34] sm:$0xf]  ;;  %v2974_v14 = vld [vmem:[%s2951_s9 + $0x38] sm:$0x1]  ;;  %v420_v15 = vshrl.u32 %v2967_v11, 16 }
  0x15   : > { %v374_v16 = vrot.slane %v372_v7, 4  ;;  %v377_v17 = vrot.slane %v375_v8, 5  ;;  %v383_v18 = vrot.slane %v381_v9, 5  ;;  %v387_v19 = vrot.slane %v385_v10, 4  ;;  %v2978_v20 = vld [vmem:[%s2951_s9 + $0x48] sm:$0xf] }
  0x16   : > { %v393_v21 = vrot.slane %v391_v12, 5  ;;  %v422_v22 = vrot.slane %v420_v15, 4  ;;  %v423_v23 = vshll.u32 %v2967_v11, 16  ;;  %v429_v24 = vshll.u32 %v2971_v13, 16  ;;  %v2988_v30 = vld [vmem:[%s2951_s9 + $0x4c] sm:$0xf] }
  0x17   : > { %2773 = vmatpush.bf16.msra.mxu1 %v2661_v2  ;;  %2774 = vmatpush.bf16.msra.mxu2 %v2661_v2  ;;  %v378_v26 = vor.u32 %v377_v17, %v374_v16  ;;  %v388_v27 = vor.u32 %v387_v19, %v383_v18  ;;  %v433_v28 = vshrl.u32 %v2971_v13, 16  ;;  %v439_v29 = vshll.u32 %v2974_v14, 16  ;;  %v2999_v41 = vld [vmem:[%s2951_s9 + $0x50] sm:$0x1]  ;;  %v3011_v50 = vld [vmem:[%s2951_s9] sm:$0xf] }
  0x18   : > { %2775 = vmatpush.bf16.msra.mxu3 %v2661_v2  ;;  %614 = vmatpush.bf16.msra.mxu0 %v2661_v2  ;;  %v425_v32 = vrot.slane %v423_v23, 5  ;;  %v431_v33 = vrot.slane %v429_v24, 5  ;;  %v468_v34 = vshrl.u32 %v2978_v20, 16  ;;  %v471_v35 = vshll.u32 %v2978_v20, 16  ;;  %v3019_v62 = vld [vmem:[%s2951_s9 + $0x4] sm:$0xf] }
  0x19   : > { %v379_v36 = vrot.slane %v378_v26, 4  ;;  %v389_v37 = vrot.slane %v388_v27, 4  ;;  %v435_v38 = vrot.slane %v433_v28, 4  ;;  %v441_v39 = vrot.slane %v439_v29, 5  ;;  %v3028_v8 = vld [vmem:[%s2951_s9 + $0x8] sm:$0x1] }
  0x1a   : > { %v426_v40 = vor.u32 %v425_v32, %v422_v22  ;;  %v470_v42 = vrot.slane %v468_v34, 4  ;;  %v473_v43 = vrot.slane %v471_v35, 5  ;;  %v477_v44 = vshll.u32 %v2988_v30, 16  ;;  %v3031_v9 = vld [vmem:[%s2951_s9 + $0x24] sm:$0xf] }
  0x1b   : > { %2776 = vmatpush.bf16.msra.mxu1 %v2660_v3  ;;  %2777 = vmatpush.bf16.msra.mxu2 %v2660_v3  ;;  %v384_v46 = vsel %vm2992_vm2, %v379_v36, %v383_v18  ;;  %v394_v47 = vsel %vm2992_vm2, %v389_v37, %v393_v21  ;;  %v436_v48 = vor.u32 %v435_v38, %v431_v33  ;;  %v481_v49 = vshrl.u32 %v2988_v30, 16  ;;  %v3039_v22 = vld [vmem:[%s2951_s9 + $0x28] sm:$0xf]  ;;  %v3045_v26 = vld [vmem:[%s2951_s9 + $0x2c] sm:$0x1]  ;;  %v2656_v28 = vld [vmem:[%s3646_s1 + $0x40] sm:$0xff] }
  0x1c   : > { %2778 = vmatpush.bf16.msra.mxu3 %v2660_v3  ;;  %615 = vmatpush.bf16.msra.mxu0 %v2660_v3  ;;  %v536_v51 = vunpack.c.l.b16 %v384_v46  ;;  %v537_v52 = vunpack.c.l.b16 %v394_v47  ;;  %v427_v53 = vrot.slane %v426_v40, 4  ;;  %v474_v54 = vor.u32 %v473_v43, %v470_v42  ;;  %v3055_v35 = vld [vmem:[%s2951_s9 + $0x3c] sm:$0xf] }
  0x1d   : > { %v437_v55 = vrot.slane %v436_v48, 4  ;;  %v479_v56 = vrot.slane %v477_v44, 5  ;;  %v483_v57 = vrot.slane %v481_v49, 4  ;;  %v487_v58 = vshll.u32 %v2999_v41, 16  ;;  %v2671_v40 = vld [vmem:[%s3646_s1 + $0xb8] sm:$0xff] }
  0x1e   : > { %v3014_v59 = vpack.c.b16 %v537_v52, %v536_v51  ;;  %v432_v60 = vsel %vm2992_vm2, %v427_v53, %v431_v33  ;;  %v475_v61 = vrot.slane %v474_v54, 4  ;;  %v324_v63 = vshrl.u32 %v3011_v50, 16  ;;  %v2655_v42 = vld [vmem:[%s3646_s1 + $0x38] sm:$0xff]  ;;  %v3069_v51 = vld [vmem:[%s2951_s9 + $0x40] sm:$0xf] }
  0x1f   : > { %2779 = vmatpush.bf16.msra.mxu1 %v2659_v25  ;;  %2780 = vmatpush.bf16.msra.mxu2 %v2659_v25  ;;  %v442_v1 = vsel %vm2992_vm2, %v437_v55, %v441_v39  ;;  %v540_v2 = vunpack.c.l.b16 %v432_v60  ;;  %v484_v3 = vor.u32 %v483_v57, %v479_v56  ;;  %v489_v7 = vrot.slane %v487_v58, 5  ;;  %v2687_v54 = vld [vmem:[%s3646_s1 + $0x138] sm:$0xff]  ;;  %v3076_v58 = vld [vmem:[%s2951_s9 + $0x44] sm:$0x1] }
  0x20   : > { %2781 = vmatpush.bf16.msra.mxu3 %v2659_v25  ;;  %616 = vmatpush.bf16.msra.mxu0 %v2659_v25  ;;  %v541_v10 = vunpack.c.l.b16 %v442_v1  ;;  %v480_v12 = vsel %vm2992_vm2, %v475_v61, %v479_v56  ;;  %v326_v15 = vrot.slane %v324_v63, 4  ;;  %v327_v16 = vshll.u32 %v3011_v50, 16  ;;  %v2679_v60 = vld [vmem:[%s3646_s1 + $0xf8] sm:$0xff] }
  0x21   : > { %v485_v17 = vrot.slane %v484_v3, 4  ;;  %v544_v18 = vunpack.c.l.b16 %v480_v12  ;;  %v333_v19 = vshll.u32 %v3019_v62, 16  ;;  %v337_v21 = vshrl.u32 %v3019_v62, 16  ;;  %v2654_v12 = vld [vmem:[%s3646_s1 + $0x30] sm:$0xff] }
  0x22   : > { %v3041_v23 = vpack.c.b16 %v541_v10, %v540_v2  ;;  %v329_v24 = vrot.slane %v327_v16, 5  ;;  %v343_v25 = vshll.u32 %v3028_v8, 16  ;;  %v396_v27 = vshrl.u32 %v3031_v9, 16  ;;  %v3085_v2 = vld [vmem:[%s2951_s9 + $0x54] sm:$0xf] }
  0x23   : > { %2782 = vmatpush.bf16.msra.mxu1 %v2658_v45  ;;  %2783 = vmatpush.bf16.msra.mxu2 %v2658_v45  ;;  %v490_v29 = vsel %vm2992_vm2, %v485_v17, %v489_v7  ;;  %v335_v32 = vrot.slane %v333_v19, 5  ;;  %v339_v33 = vrot.slane %v337_v21, 4  ;;  %v399_v34 = vshll.u32 %v3031_v9, 16  ;;  %v2670_v10 = vld [vmem:[%s3646_s1 + $0xb0] sm:$0xff] }
  0x24   : > { %2784 = vmatpush.bf16.msra.mxu3 %v2658_v45  ;;  %617 = vmatpush.bf16.msra.mxu0 %v2658_v45  ;;  %v545_v36 = vunpack.c.l.b16 %v490_v29  ;;  %v330_v37 = vor.u32 %v329_v24, %v326_v15  ;;  %v345_v38 = vrot.slane %v343_v25, 5  ;;  %v398_v39 = vrot.slane %v396_v27, 4  ;;  %v2686_v24 = vld [vmem:[%s3646_s1 + $0x130] sm:$0xff]  ;;  %v3107_v29 = vld [vmem:[%s2951_s9 + $0x58] sm:$0xf] }
  0x25   : > { %v340_v43 = vor.u32 %v339_v33, %v335_v32  ;;  %v401_v44 = vrot.slane %v399_v34, 5  ;;  %v405_v45 = vshll.u32 %v3039_v22, 16  ;;  %v409_v46 = vshrl.u32 %v3039_v22, 16  ;;  %v2678_v34 = vld [vmem:[%s3646_s1 + $0xf0] sm:$0xff] }
  0x26   : > { %v3065_v47 = vpack.c.b16 %v545_v36, %v544_v18  ;;  %v331_v48 = vrot.slane %v330_v37, 4  ;;  %v415_v49 = vshll.u32 %v3045_v26, 16  ;;  %v444_v52 = vshrl.u32 %v3055_v35, 16 }
  0x27   : > { %2785 = vmatpush.bf16.msra.mxu1 %v2657_v0  ;;  %2786 = vmatpush.bf16.msra.mxu2 %v2657_v0  ;;  %v341_v53 = vrot.slane %v340_v43, 4  ;;  %v402_v55 = vor.u32 %v401_v44, %v398_v39  ;;  %v407_v56 = vrot.slane %v405_v45, 5  ;;  %v411_v57 = vrot.slane %v409_v46, 4  ;;  %v3117_v39 = vld [vmem:[%s2951_s9 + $0xc] sm:$0xf] }
  0x28   : > { %2787 = vmatpush.bf16.msra.mxu3 %v2657_v0  ;;  %618 = vmatpush.bf16.msra.mxu0 %v2657_v0  ;;  %v336_v61 = vsel %vm2992_vm2, %v331_v48, %v335_v32  ;;  %v417_v63 = vrot.slane %v415_v49, 5  ;;  %v446_v0 = vrot.slane %v444_v52, 4  ;;  %v447_v1 = vshll.u32 %v3055_v35, 16 }
  0x29   : > { %v346_v3 = vsel %vm2992_vm2, %v341_v53, %v345_v38  ;;  %v532_v7 = vunpack.c.l.b16 %v336_v61  ;;  %v403_v15 = vrot.slane %v402_v55, 4  ;;  %v412_v16 = vor.u32 %v411_v57, %v407_v56  ;;  %v3114_v38 = vld [vmem:[%s2951_s9 + $0x5c] sm:$0x1] }
  0x2a   : > { %v533_v17 = vunpack.c.l.b16 %v346_v3  ;;  %v449_v18 = vrot.slane %v447_v1, 5  ;;  %v453_v19 = vshll.u32 %v3069_v51, 16  ;;  %v457_v21 = vshrl.u32 %v3069_v51, 16 }
  0x2b   : > { %2788 = vmatpush.bf16.msra.mxu1 %v2656_v28  ;;  %2789 = vmatpush.bf16.msra.mxu2 %v2656_v28  ;;  %v408_v25 = vsel %vm2992_vm2, %v403_v15, %v407_v56  ;;  %v413_v27 = vrot.slane %v412_v16, 4  ;;  %v492_v32 = vshrl.u32 %v3085_v2, 16  ;;  %v495_v52 = vshll.u32 %v3085_v2, 16  ;;  %v2652_v15 = vld [vmem:[%s3646_s1 + $0x20] sm:$0xff] }
  0x2c   : > { %2790 = vmatpush.bf16.msra.mxu3 %v2656_v28  ;;  %619 = vmatpush.bf16.msra.mxu0 %v2656_v28  ;;  %v463_v28 = vshll.u32 %v3076_v58, 16  ;;  %v548_v33 = vpack.c.b16 %v533_v17, %v532_v7  ;;  %v450_v36 = vor.u32 %v449_v18, %v446_v0  ;;  %v455_v37 = vrot.slane %v453_v19, 5 }
  0x2d   : > { %v418_v43 = vsel %vm2992_vm2, %v413_v27, %v417_v63  ;;  %v538_v44 = vunpack.c.l.b16 %v408_v25  ;;  %v459_v45 = vrot.slane %v457_v21, 4  ;;  %v494_v49 = vrot.slane %v492_v32, 4  ;;  %v2677_v63 = vld [vmem:[%s3646_s1 + $0xe8] sm:$0xff] }
  0x2e   : > { %630 = vmatmul.bf16.vlgmr.msra.gmra.mxu1 %v3014_v59  ;;  %640 = vmatmul.bf16.vlgmr.msra.gmra.mxu2 %v3041_v23  ;;  %v465_v46 = vrot.slane %v463_v28, 5  ;;  %v451_v48 = vrot.slane %v450_v36, 4  ;;  %v501_v53 = vshll.u32 %v3107_v29, 16  ;;  %v505_v56 = vshrl.u32 %v3107_v29, 16  ;;  %v2684_v28 = vld [vmem:[%s3646_s1 + $0x120] sm:$0xff] }
  0x2f   : > { %970 = vmatpush.bf16.msrb.mxu2 %v2671_v40  ;;  %757 = vmatpush.bf16.msrb.mxu1 %v2655_v42  ;;  %v2669_v40 = vld [vmem:[%s3646_s1 + $0xa8] sm:$0xff]  ;;  %v460_v55 = vor.u32 %v459_v45, %v455_v37  ;;  %v511_v57 = vshll.u32 %v3114_v38, 16  ;;  %v348_v61 = vshrl.u32 %v3117_v39, 16  ;;  %v539_v0 = vunpack.c.l.b16 %v418_v43 }
  0x30   : > { %650 = vmatmul.bf16.vlgmr.msra.gmra.mxu3 %v3065_v47  ;;  %1264 = vmatpush.bf16.msrb.mxu0 %v2687_v54  ;;  %v2653_v42 = vld [vmem:[%s3646_s1 + $0x28] sm:$0xff]  ;;  %v456_v1 = vsel %vm2992_vm2, %v451_v48, %v455_v37  ;;  %v497_v3 = vrot.slane %v495_v52, 5  ;;  %v503_v7 = vrot.slane %v501_v53, 5  ;;  %v507_v18 = vrot.slane %v505_v56, 4  ;;  %v2676_v37 = vld [vmem:[%s3646_s1 + $0xe0] sm:$0xff] }
  0x31   : > { %1106 = vmatpush.bf16.msrb.mxu3 %v2679_v60  ;;  %620 = vmatmul.bf16.vlgmr.msra.gmra.mxu0 %v548_v33  ;;  %v2685_v54 = vld [vmem:[%s3646_s1 + $0x128] sm:$0xff]  ;;  %v3135_v60 = vld [vmem:[%s2951_s9 + $0x10] sm:$0xf]  ;;  %v461_v16 = vrot.slane %v460_v55, 4  ;;  %v542_v17 = vunpack.c.l.b16 %v456_v1  ;;  %v513_v19 = vrot.slane %v511_v57, 5  ;;  %v351_v25 = vshll.u32 %v3117_v39, 16 }
  0x32   : > { %v498_v21 = vor.u32 %v497_v3, %v494_v49  ;;  %v357_v27 = vshll.u32 %v3135_v60, 16  ;;  %v508_v33 = vor.u32 %v507_v18, %v503_v7  ;;  %v2651_v49 = vld [vmem:[%s3646_s1 + $0x18] sm:$0xff]  ;;  %v3170_v53 = vpack.c.b16 %v539_v0, %v538_v44  ;;  %v2650_v18 = vld [vmem:[%s3646_s1 + $0x10] sm:$0xff] }
  0x33   : > { %971 = vmatpush.bf16.msrb.mxu2 %v2670_v10  ;;  %758 = vmatpush.bf16.msrb.mxu1 %v2654_v12  ;;  %v3144_v10 = vld [vmem:[%s2951_s9 + $0x14] sm:$0x1]  ;;  %v2668_v12 = vld [vmem:[%s3646_s1 + $0xa0] sm:$0xff]  ;;  %v466_v32 = vsel %vm2992_vm2, %v461_v16, %v465_v46  ;;  %v353_v43 = vrot.slane %v351_v25, 5  ;;  %v2667_v46 = vld [vmem:[%s3646_s1 + $0x98] sm:$0xff] }
  0x34   : > { %1265 = vmatpush.bf16.msrb.mxu0 %v2686_v24  ;;  %v350_v24 = vrot.slane %v348_v61, 4  ;;  %v367_v36 = vshll.u32 %v3144_v10, 16  ;;  %v359_v45 = vrot.slane %v357_v27, 5  ;;  %v509_v48 = vrot.slane %v508_v33, 4  ;;  %v2683_v3 = vld [vmem:[%s3646_s1 + $0x118] sm:$0xff]  ;;  %v2666_v16 = vld [vmem:[%s3646_s1 + $0x90] sm:$0xff] }
  0x35   : > { %1107 = vmatpush.bf16.msrb.mxu3 %v2678_v34  ;;  %v361_v34 = vshrl.u32 %v3135_v60, 16  ;;  %v2682_v25 = vld [vmem:[%s3646_s1 + $0x110] sm:$0xff] }
  0x36   : > { %v354_v56 = vor.u32 %v353_v43, %v350_v24  ;;  %v514_v57 = vsel %vm2992_vm2, %v509_v48, %v513_v19  ;;  %v369_v1 = vrot.slane %v367_v36, 5  ;;  %v2282_v19 = vrot.slane %v3011_v50, 9  ;;  %v2674_v50 = vld [vmem:[%s3646_s1 + $0xd0] sm:$0xff]  ;;  %v2649_v36 = vld [vmem:[%s3646_s1 + $0x8] sm:$0xff]  ;;  %v2648_v48 = vld [vmem:[%s3646_s1] sm:$0xff] }
  0x37   : > { %972 = vmatpush.bf16.msrb.mxu2 %v2669_v40  ;;  %759 = vmatpush.bf16.msrb.mxu1 %v2653_v42  ;;  %v543_v40 = vunpack.c.l.b16 %v466_v32  ;;  %v499_v42 = vrot.slane %v498_v21, 4  ;;  %v363_v52 = vrot.slane %v361_v34, 4  ;;  %v547_v44 = vunpack.c.l.b16 %v514_v57  ;;  %v2665_v34 = vld [vmem:[%s3646_s1 + $0x88] sm:$0xff]  ;;  %v2719_v57 = vld [vmem:[%s3646_s1 + $0x238] sm:$0xff] }
  0x38   : > { %1266 = vmatpush.bf16.msrb.mxu0 %v2685_v54  ;;  %v355_v0 = vrot.slane %v354_v56, 4  ;;  %v2673_v43 = vld [vmem:[%s3646_s1 + $0xc8] sm:$0xff]  ;;  %v2695_v56 = vld [vmem:[%s3646_s1 + $0x178] sm:$0xff] }
  0x39   : > { %1108 = vmatpush.bf16.msrb.mxu3 %v2677_v63  ;;  %v3172_v54 = vpack.c.b16 %v543_v40, %v542_v17  ;;  %v504_v55 = vsel %vm2992_vm2, %v499_v42, %v503_v7  ;;  %v364_v63 = vor.u32 %v363_v52, %v359_v45  ;;  %v2675_v7 = vld [vmem:[%s3646_s1 + $0xd8] sm:$0xff] }
  0x3a   : > { %v546_v61 = vunpack.c.l.b16 %v504_v55  ;;  %v2703_v52 = vld [vmem:[%s3646_s1 + $0x1b8] sm:$0xff]  ;;  %v2680_v55 = vld [vmem:[%s3646_s1 + $0x100] sm:$0xff] }
  0x3b   : > { %973 = vmatpush.bf16.msrb.mxu2 %v2668_v12  ;;  %760 = vmatpush.bf16.msrb.mxu1 %v2652_v15  ;;  %v819_v12 = vrot.slane %v3019_v62, 5  ;;  %v365_v15 = vrot.slane %v364_v63, 4  ;;  %v360_v62 = vsel %vm2992_vm2, %v355_v0, %v359_v45  ;;  %v2664_v45 = vld [vmem:[%s3646_s1 + $0x80] sm:$0xff]  ;;  %v833_v63 = vrot.slane %v2957_v5, 5 }
  0x3c   : > { %1267 = vmatpush.bf16.msrb.mxu0 %v2684_v28  ;;  %v3190_v17 = vpack.c.b16 %v547_v44, %v546_v61  ;;  %v534_v24 = vunpack.c.l.b16 %v360_v62  ;;  %v822_v28 = vrot.slane %v3028_v8, 5  ;;  %v2672_v61 = vld [vmem:[%s3646_s1 + $0xc0] sm:$0xff]  ;;  %v2711_v44 = vld [vmem:[%s3646_s1 + $0x1f8] sm:$0xff]  ;;  %v826_v0 = vrot.slane %v3135_v60, 5  ;;  %v2694_v62 = vld [vmem:[%s3646_s1 + $0x170] sm:$0xff] }
  0x3d   : > { %1109 = vmatpush.bf16.msrb.mxu3 %v2676_v37  ;;  %v370_v21 = vsel %vm2992_vm2, %v365_v15, %v369_v1  ;;  %v821_v27 = vrot.slane %v819_v12, 4  ;;  %v2681_v37 = vld [vmem:[%s3646_s1 + $0x108] sm:$0xff]  ;;  %v820_v40 = vsel %vm3207_vm5, %v2282_v19, %v819_v12  ;;  %v2638_v1 = vld [vmem:[%s2951_s9] sm:$0xff]  ;;  %v2702_v12 = vld [vmem:[%s3646_s1 + $0x1b0] sm:$0xff]  ;;  %v835_v15 = vrot.slane %v833_v63, 4 }
  0x3e   : > { %635 = vmatmul.bf16.gmra.mxu1 %v3170_v53  ;;  %645 = vmatmul.bf16.gmra.mxu2 %v3172_v54  ;;  %v535_v32 = vunpack.c.l.b16 %v370_v21  ;;  %v836_v5 = vrot.slane %v2960_v6, 5  ;;  %v2718_v60 = vld [vmem:[%s3646_s1 + $0x230] sm:$0xff]  ;;  %v2283_v21 = vrot.slane %v3117_v39, 9 }
  0x3f   : > { %974 = vmatpush.bf16.msrb.mxu2 %v2667_v46  ;;  %761 = vmatpush.bf16.msrb.mxu1 %v2651_v49  ;;  %v823_v42 = vsel %vm3207_vm5, %v821_v27, %v822_v28  ;;  %v890_v46 = vunpack.c.l.b16 %v820_v40  ;;  %v2710_v27 = vld [vmem:[%s3646_s1 + $0x1f0] sm:$0xff] }
  0x40   : > { %1268 = vmatpush.bf16.msrb.mxu0 %v2683_v3  ;;  %655 = vmatmul.bf16.gmra.mxu3 %v3190_v17  ;;  %v549_v8 = vpack.c.b16 %v535_v32, %v534_v24  ;;  %v891_v49 = vunpack.c.l.b16 %v823_v42  ;;  %v828_v24 = vrot.slane %v826_v0, 4  ;;  %v2701_v32 = vld [vmem:[%s3646_s1 + $0x1a8] sm:$0xff]  ;;  %v827_v39 = vsel %vm3207_vm5, %v2283_v21, %v826_v0  ;;  %v2715_v0 = vld [vmem:[%s3646_s1 + $0x218] sm:$0xff] }
  0x41   : > { %1110 = vmatpush.bf16.msrb.mxu3 %v2675_v7  ;;  %v2284_v7 = vrot.slane %v2954_v4, 9  ;;  %v837_v4 = vsel %vm3207_vm5, %v835_v15, %v836_v5  ;;  %v840_v42 = vrot.slane %v3039_v22, 5  ;;  %v2286_v15 = vrot.slane %v2967_v11, 9  ;;  %v2706_v11 = vld [vmem:[%s3646_s1 + $0x1d0] sm:$0xff] }
  0x42   : > { %625 = vmatmul.bf16.gmra.mxu0 %v549_v8  ;;  %v906_v3 = vpack.c.b16 %v891_v49, %v890_v46  ;;  %v895_v19 = vunpack.c.l.b16 %v837_v4  ;;  %v3302_v46 = vld [vmem:[%s2951_s9 + $0x18] sm:$0xff]  ;;  %v854_v21 = vrot.slane %v3069_v51, 5 }
  0x43   : > { %975 = vmatpush.bf16.msrb.mxu2 %v2666_v16  ;;  %762 = vmatpush.bf16.msrb.mxu1 %v2650_v18  ;;  %v2639_v16 = vld [vmem:[%s2951_s9 + $0xc] sm:$0xff]  ;;  %v834_v18 = vsel %vm3207_vm5, %v2284_v7, %v833_v63  ;;  %v3326_v63 = vld [vmem:[%s2951_s9 + $0x24] sm:$0xff] }
  0x44   : > { %1269 = vmatpush.bf16.msrb.mxu0 %v2682_v25  ;;  %v894_v6 = vunpack.c.l.b16 %v834_v18  ;;  %v829_v25 = vrot.slane %v3144_v10, 5  ;;  %v3346_v7 = vld [vmem:[%s2951_s9 + $0x30] sm:$0xff] }
  0x45   : > { %1111 = vmatpush.bf16.msrb.mxu3 %v2674_v50  ;;  %v2709_v50 = vld [vmem:[%s3646_s1 + $0x1e8] sm:$0xff]  ;;  %v2714_v18 = vld [vmem:[%s3646_s1 + $0x210] sm:$0xff] }
  0x46   : > { %v3278_v28 = vpack.c.b16 %v895_v19, %v894_v6  ;;  %v830_v10 = vsel %vm3207_vm5, %v828_v24, %v829_v25  ;;  %v3374_v24 = vld [vmem:[%s2951_s9 + $0x3c] sm:$0xff]  ;;  %v2287_v25 = vrot.slane %v3055_v35, 9  ;;  %v2705_v35 = vld [vmem:[%s3646_s1 + $0x1c8] sm:$0xff] }
  0x47   : > { %976 = vmatpush.bf16.msrb.mxu2 %v2665_v34  ;;  %763 = vmatpush.bf16.msrb.mxu1 %v2649_v36  ;;  %v2693_v34 = vld [vmem:[%s3646_s1 + $0x168] sm:$0xff]  ;;  %v893_v40 = vunpack.c.l.b16 %v830_v10 }
  0x48   : > { %1270 = vmatpush.bf16.msrb.mxu0 %v2681_v37  ;;  %v2717_v36 = vld [vmem:[%s3646_s1 + $0x228] sm:$0xff]  ;;  %v892_v37 = vunpack.c.l.b16 %v827_v39  ;;  %v855_v51 = vsel %vm3207_vm5, %v2287_v25, %v854_v21 }
  0x49   : > { %1112 = vmatpush.bf16.msrb.mxu3 %v2673_v43  ;;  %v2285_v43 = vrot.slane %v3031_v9, 9  ;;  %v2697_v39 = vld [vmem:[%s3646_s1 + $0x188] sm:$0xff] }
  0x4b   : > { %977 = vmatpush.bf16.msrb.mxu2 %v2664_v45  ;;  %764 = vmatpush.bf16.msrb.mxu1 %v2648_v48  ;;  %v842_v45 = vrot.slane %v840_v42, 4  ;;  %v843_v48 = vrot.slane %v3045_v26, 5  ;;  %v841_v49 = vsel %vm3207_vm5, %v2285_v43, %v840_v42  ;;  %v2700_v26 = vld [vmem:[%s3646_s1 + $0x1a0] sm:$0xff]  ;;  %v3402_v42 = vld [vmem:[%s2951_s9 + $0x48] sm:$0xff]  ;;  %v2288_v43 = vrot.slane %v2978_v20, 9 }
  0x4c   : > { %1271 = vmatpush.bf16.msrb.mxu0 %v2680_v55  ;;  %v896_v22 = vunpack.c.l.b16 %v841_v49  ;;  %v2696_v49 = vld [vmem:[%s3646_s1 + $0x180] sm:$0xff] }
  0x4d   : > { %1113 = vmatpush.bf16.msrb.mxu3 %v2672_v61  ;;  %v2716_v61 = vld [vmem:[%s3646_s1 + $0x220] sm:$0xff] }
  0x4e   : > { %765 = vmatmul.bf16.vlgmr.msrb.gmra.mxu1 %v2638_v1  ;;  %978 = vmatmul.bf16.vlgmr.msrb.gmra.mxu2 %v906_v3  ;;  %v2699_v1 = vld [vmem:[%s3646_s1 + $0x198] sm:$0xff]  ;;  %v2704_v20 = vld [vmem:[%s3646_s1 + $0x1c0] sm:$0xff] }
  0x4f   : > { %1542 = vmatpush.bf16.msra.mxu2 %v2703_v52  ;;  %1406 = vmatpush.bf16.msra.mxu1 %v2695_v56  ;;  %v844_v52 = vsel %vm3207_vm5, %v842_v45, %v843_v48  ;;  %v2708_v56 = vld [vmem:[%s3646_s1 + $0x1e0] sm:$0xff]  ;;  %v2707_v3 = vld [vmem:[%s3646_s1 + $0x1d8] sm:$0xff]  ;;  %v864_v48 = vrot.slane %v2999_v41, 5 }
  0x50   : > { %1842 = vmatpush.bf16.msra.mxu0 %v2719_v57  ;;  %1114 = vmatmul.bf16.vlgmr.msrb.gmra.mxu3 %v2639_v16  ;;  %v897_v55 = vunpack.c.l.b16 %v844_v52  ;;  %v2692_v57 = vld [vmem:[%s3646_s1 + $0x160] sm:$0xff] }
  0x51   : > { %1700 = vmatpush.bf16.msra.mxu3 %v2711_v44  ;;  %v2691_v44 = vld [vmem:[%s3646_s1 + $0x158] sm:$0xff]  ;;  %v2688_v41 = vld [vmem:[%s3646_s1 + $0x140] sm:$0xff] }
  0x52   : > { %1272 = vmatmul.bf16.vlgmr.msrb.gmra.mxu0 %v549_v8  ;;  %v3297_v8 = vpack.c.b16 %v893_v40, %v892_v37  ;;  %v3310_v9 = vpack.c.b16 %v897_v55, %v896_v22  ;;  %v861_v40 = vrot.slane %v2988_v30, 5 }
  0x53   : > { %1543 = vmatpush.bf16.msra.mxu2 %v2702_v12  ;;  %1407 = vmatpush.bf16.msra.mxu1 %v2694_v62  ;;  %v847_v12 = vrot.slane %v2971_v13, 5  ;;  %v2698_v62 = vld [vmem:[%s3646_s1 + $0x190] sm:$0xff] }
  0x54   : > { %1843 = vmatpush.bf16.msra.mxu0 %v2718_v60  ;;  %v863_v45 = vrot.slane %v861_v40, 4  ;;  %v862_v30 = vsel %vm3207_vm5, %v2288_v43, %v861_v40 }
  0x55   : > { %1701 = vmatpush.bf16.msra.mxu3 %v2710_v27  ;;  %v849_v5 = vrot.slane %v847_v12, 4  ;;  %v848_v13 = vsel %vm3207_vm5, %v2286_v15, %v847_v12  ;;  %v856_v27 = vrot.slane %v854_v21, 4  ;;  %v902_v22 = vunpack.c.l.b16 %v862_v30  ;;  %v3477_v30 = vld [vmem:[%s2951_s9 + $0x60] sm:$0xff] }
  0x56   : > { %v898_v4 = vunpack.c.l.b16 %v848_v13  ;;  %v865_v52 = vsel %vm3207_vm5, %v863_v45, %v864_v48  ;;  %v868_v15 = vrot.slane %v3107_v29, 5 }
  0x57   : > { %1544 = vmatpush.bf16.msra.mxu2 %v2701_v32  ;;  %1408 = vmatpush.bf16.msra.mxu1 %v2693_v34  ;;  %v857_v32 = vrot.slane %v3076_v58, 5  ;;  %v2689_v58 = vld [vmem:[%s3646_s1 + $0x148] sm:$0xff]  ;;  %v903_v55 = vunpack.c.l.b16 %v865_v52 }
  0x58   : > { %1844 = vmatpush.bf16.msra.mxu0 %v2717_v36  ;;  %v2713_v36 = vld [vmem:[%s3646_s1 + $0x208] sm:$0xff] }
  0x59   : > { %1702 = vmatpush.bf16.msra.mxu3 %v2709_v50  ;;  %v858_v10 = vsel %vm3207_vm5, %v856_v27, %v857_v32  ;;  %v900_v50 = vunpack.c.l.b16 %v855_v51 }
  0x5a   : > { %v901_v34 = vunpack.c.l.b16 %v858_v10 }
  0x5b   : > { %1545 = vmatpush.bf16.msra.mxu2 %v2700_v26  ;;  %1409 = vmatpush.bf16.msra.mxu1 %v2692_v57  ;;  %v3424_v26 = vld [vmem:[%s2951_s9 + $0x60] sm:$0xf] }
  0x5c   : > { %1845 = vmatpush.bf16.msra.mxu0 %v2716_v61  ;;  %v3398_v37 = vpack.c.b16 %v901_v34, %v900_v50  ;;  %v1172_v57 = vshrl.u32 %v3424_v26, 16  ;;  %v1175_v61 = vshll.u32 %v3424_v26, 16 }
  0x5d   : > { %1703 = vmatpush.bf16.msra.mxu3 %v2708_v56  ;;  %v3427_v56 = vld [vmem:[%s2951_s9 + $0x64] sm:$0xf] }
  0x5e   : > { %770 = vmatmul.bf16.gmra.mxu1 %v2639_v16  ;;  %983 = vmatmul.bf16.gmra.mxu2 %v3297_v8  ;;  %v850_v16 = vrot.slane %v2974_v14, 5  ;;  %v2690_v14 = vld [vmem:[%s3646_s1 + $0x150] sm:$0xff] }
  0x5f   : > { %1546 = vmatpush.bf16.msra.mxu2 %v2699_v1  ;;  %1410 = vmatpush.bf16.msra.mxu1 %v2691_v44  ;;  %v1181_v1 = vshll.u32 %v3427_v56, 16  ;;  %v2712_v44 = vld [vmem:[%s3646_s1 + $0x200] sm:$0xff] }
  0x60   : > { %1119 = vmatmul.bf16.gmra.mxu3 %v3302_v46  ;;  %1846 = vmatpush.bf16.msra.mxu0 %v2715_v0  ;;  %v851_v60 = vsel %vm3207_vm5, %v849_v5, %v850_v16  ;;  %v3436_v0 = vpack.c.b16 %v903_v55, %v902_v22  ;;  %v3442_v5 = vld [vmem:[%s2951_s9 + $0x54] sm:$0xff]  ;;  %v1174_v16 = vrot.slane %v1172_v57, 4 }
  0x61   : > { %1704 = vmatpush.bf16.msra.mxu3 %v2707_v3  ;;  %v899_v6 = vunpack.c.l.b16 %v851_v60  ;;  %v1185_v3 = vshrl.u32 %v3427_v56, 16  ;;  %v1183_v13 = vrot.slane %v1181_v1, 5 }
  0x62   : > { %1277 = vmatmul.bf16.gmra.mxu0 %v3014_v59 }
  0x63   : > { %1547 = vmatpush.bf16.msra.mxu2 %v2698_v62  ;;  %1411 = vmatpush.bf16.msra.mxu1 %v2690_v14  ;;  %v3370_v19 = vpack.c.b16 %v899_v6, %v898_v4  ;;  %v1177_v62 = vrot.slane %v1175_v61, 5  ;;  %v1187_v60 = vrot.slane %v1185_v3, 4  ;;  %v870_v4 = vrot.slane %v868_v15, 4 }
  0x64   : > { %1847 = vmatpush.bf16.msra.mxu0 %v2714_v18  ;;  %v2289_v18 = vrot.slane %v3085_v2, 9  ;;  %v871_v6 = vrot.slane %v3114_v38, 5 }
  0x65   : > { %1705 = vmatpush.bf16.msra.mxu3 %v2706_v11  ;;  %v3447_v11 = vld [vmem:[%s2951_s9 + $0x68] sm:$0x1]  ;;  %v1178_v21 = vor.u32 %v1177_v62, %v1174_v16  ;;  %v1188_v25 = vor.u32 %v1187_v60, %v1183_v13 }
  0x66   : > { %v1191_v27 = vshll.u32 %v3447_v11, 16  ;;  %v869_v51 = vsel %vm3207_vm5, %v2289_v18, %v868_v15  ;;  %v872_v2 = vsel %vm3207_vm5, %v870_v4, %v871_v6 }
  0x67   : > { %1548 = vmatpush.bf16.msra.mxu2 %v2697_v39  ;;  %1412 = vmatpush.bf16.msra.mxu1 %v2689_v58  ;;  %v1179_v38 = vrot.slane %v1178_v21, 4  ;;  %v1189_v10 = vrot.slane %v1188_v25, 4  ;;  %v904_v58 = vunpack.c.l.b16 %v869_v51  ;;  %v905_v50 = vunpack.c.l.b16 %v872_v2 }
  0x68   : > { %1848 = vmatpush.bf16.msra.mxu0 %v2713_v36 }
  0x69   : > { %1706 = vmatpush.bf16.msra.mxu3 %v2705_v35  ;;  %v1193_v35 = vrot.slane %v1191_v27, 5  ;;  %v1184_v40 = vsel %vm2992_vm2, %v1179_v38, %v1183_v13  ;;  %v3472_v48 = vpack.c.b16 %v905_v50, %v904_v58 }
  0x6a   : > { %v1212_v52 = vunpack.c.l.b16 %v1184_v40 }
  0x6b   : > { %1549 = vmatpush.bf16.msra.mxu2 %v2696_v49  ;;  %1413 = vmatpush.bf16.msra.mxu1 %v2688_v41  ;;  %v1194_v43 = vsel %vm2992_vm2, %v1189_v10, %v1193_v35 }
  0x6c   : > { %1849 = vmatpush.bf16.msra.mxu0 %v2712_v44 }
  0x6d   : > { %1707 = vmatpush.bf16.msra.mxu3 %v2704_v20  ;;  %v1213_v20 = vunpack.c.l.b16 %v1194_v43 }
  0x6e   : > { %775 = vmatmul.bf16.gmra.mxu1 %v3302_v46  ;;  %988 = vmatmul.bf16.gmra.mxu2 %v3278_v28 }
  0x6f   : > { %v3482_v41 = vpack.c.b16 %v1213_v20, %v1212_v52 }
  0x70   : > { %1124 = vmatmul.bf16.gmra.mxu3 %v3326_v63 }
  0x72   : > { %1282 = vmatmul.bf16.gmra.mxu0 %v3170_v53 }
  0x7e   : > { %780 = vmatmul.bf16.gmra.mxu1 %v3326_v63  ;;  %993 = vmatmul.bf16.gmra.mxu2 %v3310_v9 }
  0x80   : > { %1129 = vmatmul.bf16.gmra.mxu3 %v3346_v7 }
  0x82   : > { %1287 = vmatmul.bf16.gmra.mxu0 %v3041_v23 }
  0x8e   : > { %785 = vmatmul.bf16.gmra.mxu1 %v3346_v7  ;;  %998 = vmatmul.bf16.gmra.mxu2 %v3370_v19 }
  0x90   : > { %1134 = vmatmul.bf16.gmra.mxu3 %v3374_v24 }
  0x92   : > { %1292 = vmatmul.bf16.gmra.mxu0 %v3172_v54 }
  0x9e   : > { %790 = vmatmul.bf16.gmra.mxu1 %v3374_v24  ;;  %1003 = vmatmul.bf16.gmra.mxu2 %v3398_v37 }
  0xa0   : > { %1139 = vmatmul.bf16.gmra.mxu3 %v3402_v42 }
  0xa2   : > { %1297 = vmatmul.bf16.gmra.mxu0 %v3065_v47 }
  0xab   : > { %v3438_v12 = vpop.f32.mrf.mxu1 }
  0xae   : > { %795 = vmatmul.bf16.gmra.mxu1 %v3402_v42  ;;  %1008 = vmatmul.bf16.gmra.mxu2 %v3436_v0  ;;  %v621_v14 = vpop.f32.mrf.mxu0 }
  0xb0   : > { %1144 = vmatmul.bf16.gmra.mxu3 %v3442_v5 }
  0xb1   : > { %v3452_v29 = vpop.f32.mrf.mxu2 }
  0xb2   : > { %1302 = vmatmul.bf16.gmra.mxu0 %v3190_v17 }
  0xb3   : > { %v3455_v32 = vpop.f32.mrf.mxu3  ;;  %v3457_v39 = vpop.f32.mrf.mxu1 }
  0xb6   : > { %v623_v34 = vpop.f32.mrf.mxu0 }
  0xb9   : > { %v3464_v36 = vpop.f32.mrf.mxu2 }
  0xbb   : > { %v3470_v45 = vpop.f32.mrf.mxu3  ;;  %v3474_v49 = vpop.f32.mrf.mxu1 }
  0xbe   : > { %800 = vmatmul.bf16.gmra.mxu1 %v3442_v5  ;;  %1013 = vmatmul.bf16.gmra.mxu2 %v3472_v48 }
  0xbf   : > { %v626_v22 = vpop.f32.mrf.mxu0 }
  0xc0   : > { %1149 = vmatmul.bf16.gmra.mxu3 %v3477_v30 }
  0xc1   : > { %v3484_v55 = vpop.f32.mrf.mxu2 }
  0xc2   : > { %1307 = vmatmul.bf16.gmra.mxu0 %v3482_v41 }
  0xc3   : > { %v3486_v57 = vpop.f32.mrf.mxu3  ;;  %v3488_v61 = vpop.f32.mrf.mxu1 }
  0xc7   : > { %v628_v1 = vpop.f32.mrf.mxu0 }
  0xc9   : > { %v3491_v3 = vpop.f32.mrf.mxu2 }
  0xcb   : > { %v3493_v44 = vpop.f32.mrf.mxu3  ;;  %v766_v15 = vpop.f32.mrf.mxu1 }
  0xcc   : > { %v767_v16 = vadd.f32 %v766_v15, %v621_v14 }
  0xce   : > { %1414 = vmatmul.bf16.vlgmr.msra.gmra.mxu1 %v3297_v8  ;;  %1550 = vmatmul.bf16.vlgmr.msra.gmra.mxu2 %v3302_v46 }
  0xcf   : > { %v1273_v62 = vpop.f32.mrf.mxu0 }
  0xd0   : > { %1708 = vmatmul.bf16.vlgmr.msra.gmra.mxu3 %v3014_v59 }
  0xd1   : > { %v979_v13 = vpop.f32.mrf.mxu2 }
  0xd2   : > { %v1019_v60 = vadd.f32 %v979_v13, %v767_v16  ;;  %1850 = vmatmul.bf16.vlgmr.msra.gmra.mxu0 %v3278_v28 }
  0xd3   : > { %v1115_v18 = vpop.f32.mrf.mxu3  ;;  %v768_v4 = vpop.f32.mrf.mxu1 }
  0xd4   : > { %v1155_v6 = vadd.f32 %v1115_v18, %v1019_v60  ;;  %v769_v21 = vadd.f32 %v768_v4, %v623_v34 }
  0xd6   : > { %v3499_v25 = vadd.f32 %v1273_v62, %v1155_v6 }
  0xd7   : > { %v1275_v27 = vpop.f32.mrf.mxu0 }
  0xd9   : > { %v981_v51 = vpop.f32.mrf.mxu2 }
  0xda   : > { %v1020_v14 = vadd.f32 %v981_v51, %v769_v21 }
  0xdb   : > { %v1117_v2 = vpop.f32.mrf.mxu3  ;;  %v771_v8 = vpop.f32.mrf.mxu1 }
  0xdc   : > { %v1156_v38 = vadd.f32 %v1117_v2, %v1020_v14  ;;  %v772_v46 = vadd.f32 %v771_v8, %v626_v22 }
  0xde   : > { %1419 = vmatmul.bf16.gmra.mxu1 %v3278_v28  ;;  %1555 = vmatmul.bf16.gmra.mxu2 %v3326_v63  ;;  %v3503_v59 = vadd.f32 %v1275_v27, %v1156_v38 }
  0xdf   : > { %v1278_v10 = vpop.f32.mrf.mxu0 }
  0xe0   : > { %1713 = vmatmul.bf16.gmra.mxu3 %v3170_v53 }
  0xe1   : > { %v984_v35 = vpop.f32.mrf.mxu2 }
  0xe2   : > { %v1021_v58 = vadd.f32 %v984_v35, %v772_v46  ;;  %1855 = vmatmul.bf16.gmra.mxu0 %v3310_v9 }
  0xe3   : > { %v1120_v50 = vpop.f32.mrf.mxu3  ;;  %v773_v34 = vpop.f32.mrf.mxu1 }
  0xe4   : > { %v1157_v40 = vadd.f32 %v1120_v50, %v1021_v58  ;;  %v774_v43 = vadd.f32 %v773_v34, %v628_v1 }
  0xe6   : > { %v3507_v52 = vadd.f32 %v1278_v10, %v1157_v40 }
  0xe7   : > { %v1280_v20 = vpop.f32.mrf.mxu0 }
  0xe9   : > { %v986_v22 = vpop.f32.mrf.mxu2 }
  0xea   : > { %v1022_v28 = vadd.f32 %v986_v22, %v774_v43 }
  0xeb   : > { %v1122_v15 = vpop.f32.mrf.mxu3  ;;  %v776_v63 = vpop.f32.mrf.mxu1 }
  0xec   : > { %v1158_v16 = vadd.f32 %v1122_v15, %v1022_v28  ;;  %v777_v62 = vadd.f32 %v776_v63, %v3438_v12 }
  0xee   : > { %1424 = vmatmul.bf16.gmra.mxu1 %v3310_v9  ;;  %1560 = vmatmul.bf16.gmra.mxu2 %v3346_v7  ;;  %v3512_v53 = vadd.f32 %v1280_v20, %v1158_v16 }
  0xef   : > { %v1283_v13 = vpop.f32.mrf.mxu0 }
  0xf0   : > { %1718 = vmatmul.bf16.gmra.mxu3 %v3041_v23 }
  0xf1   : > { %v989_v1 = vpop.f32.mrf.mxu2 }
  0xf2   : > { %v1023_v60 = vadd.f32 %v989_v1, %v777_v62  ;;  %1860 = vmatmul.bf16.gmra.mxu0 %v3370_v19 }
  0xf3   : > { %v1125_v18 = vpop.f32.mrf.mxu3  ;;  %v778_v4 = vpop.f32.mrf.mxu1 }
  0xf4   : > { %v1159_v6 = vadd.f32 %v1125_v18, %v1023_v60  ;;  %v779_v21 = vadd.f32 %v778_v4, %v3457_v39 }
  0xf6   : > { %v3517_v27 = vadd.f32 %v1283_v13, %v1159_v6 }
  0xf7   : > { %v1285_v12 = vpop.f32.mrf.mxu0 }
  0xf9   : > { %v991_v9 = vpop.f32.mrf.mxu2 }
  0xfa   : > { %v1024_v51 = vadd.f32 %v991_v9, %v779_v21  ;;  %v3547_v9 = vld [vmem:[%s2951_s9 + $0x6c] sm:$0xf] }
  0xfb   : > { %v1127_v7 = vpop.f32.mrf.mxu3  ;;  %v781_v14 = vpop.f32.mrf.mxu1 }
  0xfc   : > { %v1160_v2 = vadd.f32 %v1127_v7, %v1024_v51  ;;  %v782_v23 = vadd.f32 %v781_v14, %v3474_v49  ;;  %v302_v7 = vld [vmem:[%s2951_s9 + $0x70] sm:$0xf] }
  0xfe   : > { %1429 = vmatmul.bf16.gmra.mxu1 %v3370_v19  ;;  %1565 = vmatmul.bf16.gmra.mxu2 %v3374_v24  ;;  %v3522_v8 = vadd.f32 %v1285_v12, %v1160_v2 }
  0xff   : > { %v1288_v38 = vpop.f32.mrf.mxu0 }
 0x100   : > { %1723 = vmatmul.bf16.gmra.mxu3 %v3172_v54 }
 0x101   : > { %v994_v39 = vpop.f32.mrf.mxu2 }
 0x102   : > { %v1025_v46 = vadd.f32 %v994_v39, %v782_v23  ;;  %1865 = vmatmul.bf16.gmra.mxu0 %v3398_v37  ;;  %v1608_v23 = vshrl.u32 %v3547_v9, 16  ;;  %v1621_v39 = vshrl.u32 %v302_v7, 16 }
 0x103   : > { %v1130_v10 = vpop.f32.mrf.mxu3  ;;  %v783_v35 = vpop.f32.mrf.mxu1 }
 0x104   : > { %v1161_v58 = vadd.f32 %v1130_v10, %v1025_v46  ;;  %v784_v50 = vadd.f32 %v783_v35, %v3488_v61  ;;  %v1610_v35 = vrot.slane %v1608_v23, 4 }
 0x106   : > { %v3527_v34 = vadd.f32 %v1288_v38, %v1161_v58  ;;  %v1335_v38 = vrot.slane %v3447_v11, 5  ;;  %v303_v11 = vld [vmem:[%s2951_s9 + $0x74] sm:$0x1] }
 0x107   : > { %v1290_v49 = vpop.f32.mrf.mxu0 }
 0x109   : > { %v996_v19 = vpop.f32.mrf.mxu2 }
 0x10a   : > { %v1026_v40 = vadd.f32 %v996_v19, %v784_v50 }
 0x10b   : > { %v1132_v24 = vpop.f32.mrf.mxu3  ;;  %v786_v43 = vpop.f32.mrf.mxu1 }
 0x10c   : > { %v1162_v20 = vadd.f32 %v1132_v24, %v1026_v40  ;;  %v787_v22 = vadd.f32 %v786_v43, %v3452_v29  ;;  %v1623_v24 = vrot.slane %v1621_v39, 4 }
 0x10e   : > { %1434 = vmatmul.bf16.gmra.mxu1 %v3398_v37  ;;  %1570 = vmatmul.bf16.gmra.mxu2 %v3402_v42  ;;  %v3531_v54 = vadd.f32 %v1290_v49, %v1162_v20 }
 0x10f   : > { %v1293_v28 = vpop.f32.mrf.mxu0 }
 0x110   : > { %1728 = vmatmul.bf16.gmra.mxu3 %v3065_v47 }
 0x111   : > { %v999_v61 = vpop.f32.mrf.mxu2 }
 0x112   : > { %v1027_v15 = vadd.f32 %v999_v61, %v787_v22  ;;  %1870 = vmatmul.bf16.gmra.mxu0 %v3436_v0 }
 0x113   : > { %v1135_v63 = vpop.f32.mrf.mxu3  ;;  %v788_v16 = vpop.f32.mrf.mxu1 }
 0x114   : > { %v1163_v62 = vadd.f32 %v1135_v63, %v1027_v15  ;;  %v789_v37 = vadd.f32 %v788_v16, %v3464_v36  ;;  %v1332_v36 = vrot.slane %v3427_v56, 5  ;;  %v1617_v56 = vshll.u32 %v302_v7, 16 }
 0x115   : > { %v1627_v16 = vshll.u32 %v303_v11, 16 }
 0x116   : > { %v3536_v13 = vadd.f32 %v1293_v28, %v1163_v62  ;;  %v1619_v40 = vrot.slane %v1617_v56, 5  ;;  %v2647_v56 = vld [vmem:[%s2951_s9 + $0x6c] sm:$0xff]  ;;  %s2164_s9 = sshll.u32 %s2854_s15, 3 }
 0x117   : > { %v1295_v42 = vpop.f32.mrf.mxu0  ;;  %p252_p7 = scmp.lt.s32.totalorder %s2164_s9, 15 }
 0x118   : > { %v1624_v63 = vor.u32 %v1623_v24, %v1619_v40 }
 0x119   : > { %v1001_v1 = vpop.f32.mrf.mxu2  ;;  %s3669_s9 = smov (!%p252_p7, %s2164_s9), 15 }
 0x11a   : > { %v1028_v60 = vadd.f32 %v1001_v1, %v789_v37  ;;  %s2165_s10 = sshll.u32 %s3669_s9, 1 }
 0x11b   : > { %v1137_v29 = vpop.f32.mrf.mxu3  ;;  %v791_v18 = vpop.f32.mrf.mxu1  ;;  %s256_s15 = sadd.s32 %s2166_s11, %s2165_s10 }
 0x11c   : > { %v1164_v47 = vadd.f32 %v1137_v29, %v1028_v60  ;;  %v792_v6 = vadd.f32 %v791_v18, %v3484_v55  ;;  %v1611_v55 = vshll.u32 %v3547_v9, 16  ;;  %v1625_v18 = vrot.slane %v1624_v63, 4  ;;  %s2167_s12 = sshll.u32 %s256_s15, 2 }
 0x11d   : > { %s3598_s22 = scalar_lea.vmem %s3647_s2, %s2167_s12 }
 0x11e   : > { %1439 = vmatmul.bf16.gmra.mxu1 %v3436_v0  ;;  %1575 = vmatmul.bf16.gmra.mxu2 %v3442_v5  ;;  %v3541_v4 = vadd.f32 %v1295_v42, %v1164_v47  ;;  %v2438_v5 = vrot.slane %v3424_v26, 9  ;;  %v1613_v58 = vrot.slane %v1611_v55, 5  ;;  %v1629_v47 = vrot.slane %v1627_v16, 5 }
 0x11f   : > { %v1298_v21 = vpop.f32.mrf.mxu0 }
 0x120   : > { %1733 = vmatmul.bf16.gmra.mxu3 %v3190_v17  ;;  %v1334_v17 = vrot.slane %v1332_v36, 4  ;;  %v1333_v26 = vsel %vm3207_vm5, %v2438_v5, %v1332_v36 }
 0x121   : > { %v1004_v12 = vpop.f32.mrf.mxu2  ;;  %v1354_v61 = vunpack.c.l.b16 %v1333_v26 }
 0x122   : > { %v1029_v51 = vadd.f32 %v1004_v12, %v792_v6  ;;  %1875 = vmatmul.bf16.gmra.mxu0 %v3472_v48  ;;  %v1336_v19 = vsel %vm3207_vm5, %v1334_v17, %v1335_v38  ;;  %v1768_v6 = vrot.slane %v302_v7, 5 }
 0x123   : > { %v1140_v14 = vpop.f32.mrf.mxu3  ;;  %v793_v2 = vpop.f32.mrf.mxu1  ;;  %v1355_v15 = vunpack.c.l.b16 %v1336_v19 }
 0x124   : > { %v1165_v0 = vadd.f32 %v1140_v14, %v1029_v51  ;;  %v794_v10 = vadd.f32 %v793_v2, %v3491_v3  ;;  %v1614_v3 = vor.u32 %v1613_v58, %v1610_v35  ;;  %v1770_v51 = vrot.slane %v1768_v6, 4 }
 0x125   : > { %v1356_v42 = vpack.c.b16 %v1355_v15, %v1354_v61  ;;  %v1771_v14 = vrot.slane %v303_v11, 5 }
 0x126   : > { %v3555_v46 = vadd.f32 %v1298_v21, %v1165_v0  ;;  %v1615_v1 = vrot.slane %v1614_v3, 4 }
 0x127   : > { %v1300_v50 = vpop.f32.mrf.mxu0  ;;  %v1772_v38 = vsel %vm3207_vm5, %v1770_v51, %v1771_v14 }
 0x129   : > { %v1006_v49 = vpop.f32.mrf.mxu2 }
 0x12a   : > { %v1030_v43 = vadd.f32 %v1006_v49, %v794_v10 }
 0x12b   : > { %v1142_v20 = vpop.f32.mrf.mxu3  ;;  %v796_v22 = vpop.f32.mrf.mxu1 }
 0x12c   : > { %v1166_v28 = vadd.f32 %v1142_v20, %v1030_v43  ;;  %v797_v37 = vadd.f32 %v796_v22, %v3455_v32  ;;  %v1630_v32 = vsel %vm2992_vm2, %v1625_v18, %v1629_v47 }
 0x12d   : > { %v1649_v5 = vunpack.c.l.b16 %v1630_v32 }
 0x12e   : > { %1444 = vmatmul.bf16.gmra.mxu1 %v3472_v48  ;;  %1580 = vmatmul.bf16.gmra.mxu2 %v3477_v30  ;;  %v3565_v62 = vadd.f32 %v1300_v50, %v1166_v28  ;;  %v1620_v30 = vsel %vm2992_vm2, %v1615_v1, %v1619_v40  ;;  %v1791_v50 = vunpack.c.l.b16 %v1772_v38 }
 0x12f   : > { %v1303_v60 = vpop.f32.mrf.mxu0  ;;  %v1648_v0 = vunpack.c.l.b16 %v1620_v30 }
 0x130   : > { %1738 = vmatmul.bf16.gmra.mxu3 %v3482_v41  ;;  %v2587_v41 = vrot.slane %v3547_v9, 9 }
 0x131   : > { %v1009_v29 = vpop.f32.mrf.mxu2  ;;  %v1650_v35 = vpack.c.b16 %v1649_v5, %v1648_v0 }
 0x132   : > { %v1031_v21 = vadd.f32 %v1009_v29, %v797_v37  ;;  %1880 = vmatmul.bf16.gmra.mxu0 %v1356_v42  ;;  %v1769_v17 = vsel %vm3207_vm5, %v2587_v41, %v1768_v6 }
 0x133   : > { %v1145_v12 = vpop.f32.mrf.mxu3  ;;  %v798_v36 = vpop.f32.mrf.mxu1  ;;  %v1790_v58 = vunpack.c.l.b16 %v1769_v17 }
 0x134   : > { %v1167_v48 = vadd.f32 %v1145_v12, %v1031_v21  ;;  %v799_v7 = vadd.f32 %v798_v36, %v3470_v45 }
 0x135   : > { %v1792_v26 = vpack.c.b16 %v1791_v50, %v1790_v58 }
 0x136   : > { %v3574_v2 = vadd.f32 %v1303_v60, %v1167_v48 }
 0x137   : > { %v1305_v23 = vpop.f32.mrf.mxu0 }
 0x139   : > { %v1011_v55 = vpop.f32.mrf.mxu2 }
 0x13a   : > { %v1032_v31 = vadd.f32 %v1011_v55, %v799_v7 }
 0x13b   : > { %v1147_v39 = vpop.f32.mrf.mxu3  ;;  %v801_v9 = vpop.f32.mrf.mxu1 }
 0x13c   : > { %v1168_v10 = vadd.f32 %v1147_v39, %v1032_v31  ;;  %v802_v49 = vadd.f32 %v801_v9, %v3486_v57 }
 0x13e   : > { %1449 = vmatmul.bf16.gmra.mxu1 %v1356_v42  ;;  %1585 = vmatmul.bf16.gmra.mxu2 %v2647_v56  ;;  %v3582_v45 = vadd.f32 %v1305_v23, %v1168_v10 }
 0x13f   : > { %v1308_v19 = vpop.f32.mrf.mxu0 }
 0x140   : > { %1743 = vmatmul.bf16.gmra.mxu3 %v1650_v35 }
 0x141   : > { %v1014_v33 = vpop.f32.mrf.mxu2 }
 0x142   : > { %v1033_v40 = vadd.f32 %v1014_v33, %v802_v49  ;;  %1885 = vmatmul.bf16.gmra.mxu0 %v1792_v26 }
 0x143   : > { %v1150_v24 = vpop.f32.mrf.mxu3  ;;  %v803_v43 = vpop.f32.mrf.mxu1 }
 0x144   : > { %v1169_v11 = vadd.f32 %v1150_v24, %v1033_v40  ;;  %v804_v22 = vadd.f32 %v803_v43, %v3493_v44 }
 0x146   : > { %v3585_v20 = vadd.f32 %v1308_v19, %v1169_v11 }
 0x147   : > { %v1310_v28 = vpop.f32.mrf.mxu0 }
 0x149   : > { %v1016_v61 = vpop.f32.mrf.mxu2 }
 0x14a   : > { %v1034_v15 = vadd.f32 %v1016_v61, %v804_v22 }
 0x14b   : > { %v1152_v57 = vpop.f32.mrf.mxu3  ;;  %v1415_v3 = vpop.f32.mrf.mxu1 }
 0x14c   : > { %v1170_v63 = vadd.f32 %v1152_v57, %v1034_v15  ;;  %v1455_v37 = vadd.f32 %v1415_v3, %v3499_v25 }
 0x14e   : > { %v3590_v16 = vadd.f32 %v1310_v28, %v1170_v63 }
 0x14f   : > { %v1851_v42 = vpop.f32.mrf.mxu0 }
 0x151   : > { %v1551_v1 = vpop.f32.mrf.mxu2 }
 0x152   : > { %v1591_v60 = vadd.f32 %v1551_v1, %v1455_v37 }
 0x153   : > { %v1709_v29 = vpop.f32.mrf.mxu3  ;;  %v1417_v44 = vpop.f32.mrf.mxu1 }
 0x154   : > { %v1749_v18 = vadd.f32 %v1709_v29, %v1591_v60  ;;  %v1456_v47 = vadd.f32 %v1417_v44, %v3503_v59 }
 0x156   : > { %v1891_v36 = vadd.f32 %v1851_v42, %v1749_v18 }
 0x157   : > { %v1853_v6 = vpop.f32.mrf.mxu0 }
 0x158   : > { %v1961_v41 = vmul.f32 %v1891_v36, %v1891_v36 }
 0x159   : > { %v1553_v21 = vpop.f32.mrf.mxu2 }
 0x15a   : > { %v1592_v12 = vadd.f32 %v1553_v21, %v1456_v47 }
 0x15b   : > { %v1711_v48 = vpop.f32.mrf.mxu3  ;;  %v1420_v30 = vpop.f32.mrf.mxu1 }
 0x15c   : > { %v1750_v25 = vadd.f32 %v1711_v48, %v1592_v12  ;;  %v1457_v7 = vadd.f32 %v1420_v30, %v3507_v52 }
 0x15e   : > { %v1892_v32 = vadd.f32 %v1853_v6, %v1750_v25 }
 0x15f   : > { %v1856_v0 = vpop.f32.mrf.mxu0 }
 0x160   : > { %v2723_v51 = vpack.c.bf16 %v1892_v32, %v1891_v36  ;;  %v1939_v14 = vadd.f32 %v1892_v32, %v1891_v36  ;;  %v1962_v59 = vmul.f32 %v1892_v32, %v1892_v32 }
 0x161   : > { %v1556_v5 = vpop.f32.mrf.mxu2 }
 0x162   : > { %2724 = vst [vmem:[%s3598_s22] sm:$0xff] %v2723_v51   ;;  %v1977_v23 = vadd.f32 %v1962_v59, %v1961_v41  ;;  %v1593_v55 = vadd.f32 %v1556_v5, %v1457_v7 }
 0x163   : > { %v1714_v17 = vpop.f32.mrf.mxu3  ;;  %v1422_v38 = vpop.f32.mrf.mxu1 }
 0x164   : > { %v1751_v31 = vadd.f32 %v1714_v17, %v1593_v55  ;;  %v1458_v10 = vadd.f32 %v1422_v38, %v3512_v53 }
 0x166   : > { %v1893_v56 = vadd.f32 %v1856_v0, %v1751_v31 }
 0x167   : > { %v1858_v35 = vpop.f32.mrf.mxu0 }
 0x168   : > { %v1940_v39 = vadd.f32 %v1939_v14, %v1893_v56  ;;  %v1963_v9 = vmul.f32 %v1893_v56, %v1893_v56 }
 0x169   : > { %v1558_v58 = vpop.f32.mrf.mxu2 }
 0x16a   : > { %v1978_v50 = vadd.f32 %v1977_v23, %v1963_v9  ;;  %v1594_v49 = vadd.f32 %v1558_v58, %v1458_v10 }
 0x16b   : > { %v1716_v26 = vpop.f32.mrf.mxu3  ;;  %v1425_v52 = vpop.f32.mrf.mxu1 }
 0x16c   : > { %v1752_v19 = vadd.f32 %v1716_v26, %v1594_v49  ;;  %v1459_v11 = vadd.f32 %v1425_v52, %v3517_v27 }
 0x16e   : > { %v1894_v33 = vadd.f32 %v1858_v35, %v1752_v19 }
 0x16f   : > { %v1861_v22 = vpop.f32.mrf.mxu0 }
 0x170   : > { %v2728_v40 = vpack.c.bf16 %v1894_v33, %v1893_v56  ;;  %v1941_v24 = vadd.f32 %v1940_v39, %v1894_v33  ;;  %v1964_v43 = vmul.f32 %v1894_v33, %v1894_v33 }
 0x171   : > { %v1561_v28 = vpop.f32.mrf.mxu2 }
 0x172   : > { %2760 = vst [vmem:[%s3598_s22 + $0x8] sm:$0xff] %v2728_v40   ;;  %v1979_v61 = vadd.f32 %v1978_v50, %v1964_v43  ;;  %v1595_v15 = vadd.f32 %v1561_v28, %v1459_v11 }
 0x173   : > { %v1719_v57 = vpop.f32.mrf.mxu3  ;;  %v1427_v53 = vpop.f32.mrf.mxu1 }
 0x174   : > { %v1753_v3 = vadd.f32 %v1719_v57, %v1595_v15  ;;  %v1460_v1 = vadd.f32 %v1427_v53, %v3522_v8 }
 0x176   : > { %v1895_v63 = vadd.f32 %v1861_v22, %v1753_v3 }
 0x177   : > { %v1863_v60 = vpop.f32.mrf.mxu0 }
 0x178   : > { %v1942_v37 = vadd.f32 %v1941_v24, %v1895_v63  ;;  %v1965_v42 = vmul.f32 %v1895_v63, %v1895_v63 }
 0x179   : > { %v1563_v29 = vpop.f32.mrf.mxu2 }
 0x17a   : > { %v1980_v44 = vadd.f32 %v1979_v61, %v1965_v42  ;;  %v1596_v18 = vadd.f32 %v1563_v29, %v1460_v1 }
 0x17b   : > { %v1721_v47 = vpop.f32.mrf.mxu3  ;;  %v1430_v27 = vpop.f32.mrf.mxu1 }
 0x17c   : > { %v1754_v6 = vadd.f32 %v1721_v47, %v1596_v18  ;;  %v1461_v30 = vadd.f32 %v1430_v27, %v3527_v34 }
 0x17e   : > { %v1896_v21 = vadd.f32 %v1863_v60, %v1754_v6 }
 0x17f   : > { %v1866_v25 = vpop.f32.mrf.mxu0 }
 0x180   : > { %v2733_v12 = vpack.c.bf16 %v1896_v21, %v1895_v63  ;;  %v1943_v36 = vadd.f32 %v1942_v37, %v1896_v21  ;;  %v1966_v48 = vmul.f32 %v1896_v21, %v1896_v21 }
 0x181   : > { %v1566_v32 = vpop.f32.mrf.mxu2 }
 0x182   : > { %2761 = vst [vmem:[%s3598_s22 + $0x10] sm:$0xff] %v2733_v12   ;;  %v1981_v41 = vadd.f32 %v1980_v44, %v1966_v48  ;;  %v1597_v51 = vadd.f32 %v1566_v32, %v1461_v30 }
 0x183   : > { %v1724_v14 = vpop.f32.mrf.mxu3  ;;  %v1432_v8 = vpop.f32.mrf.mxu1 }
 0x184   : > { %v1755_v59 = vadd.f32 %v1724_v14, %v1597_v51  ;;  %v1462_v23 = vadd.f32 %v1432_v8, %v3531_v54 }
 0x186   : > { %v1897_v7 = vadd.f32 %v1866_v25, %v1755_v59 }
 0x187   : > { %v1868_v55 = vpop.f32.mrf.mxu0 }
 0x188   : > { %v1944_v0 = vadd.f32 %v1943_v36, %v1897_v7  ;;  %v1967_v5 = vmul.f32 %v1897_v7, %v1897_v7 }
 0x189   : > { %v1568_v17 = vpop.f32.mrf.mxu2 }
 0x18a   : > { %v1982_v38 = vadd.f32 %v1981_v41, %v1967_v5  ;;  %v1598_v31 = vadd.f32 %v1568_v17, %v1462_v23 }
 0x18b   : > { %v1726_v56 = vpop.f32.mrf.mxu3  ;;  %v1435_v34 = vpop.f32.mrf.mxu1 }
 0x18c   : > { %v1756_v39 = vadd.f32 %v1726_v56, %v1598_v31  ;;  %v1463_v50 = vadd.f32 %v1435_v34, %v3536_v13 }
 0x18e   : > { %v1898_v9 = vadd.f32 %v1868_v55, %v1756_v39 }
 0x18f   : > { %v1871_v49 = vpop.f32.mrf.mxu0 }
 0x190   : > { %v2738_v10 = vpack.c.bf16 %v1898_v9, %v1897_v7  ;;  %v1945_v35 = vadd.f32 %v1944_v0, %v1898_v9  ;;  %v1968_v58 = vmul.f32 %v1898_v9, %v1898_v9 }
 0x191   : > { %v1571_v26 = vpop.f32.mrf.mxu2 }
 0x192   : > { %2762 = vst [vmem:[%s3598_s22 + $0x18] sm:$0xff] %v2738_v10   ;;  %v1983_v52 = vadd.f32 %v1982_v38, %v1968_v58  ;;  %v1599_v19 = vadd.f32 %v1571_v26, %v1463_v50 }
 0x193   : > { %v1729_v33 = vpop.f32.mrf.mxu3  ;;  %v1437_v54 = vpop.f32.mrf.mxu1 }
 0x194   : > { %v1757_v40 = vadd.f32 %v1729_v33, %v1599_v19  ;;  %v1464_v22 = vadd.f32 %v1437_v54, %v3541_v4 }
 0x196   : > { %v1899_v24 = vadd.f32 %v1871_v49, %v1757_v40 }
 0x197   : > { %v1873_v28 = vpop.f32.mrf.mxu0 }
 0x198   : > { %v1946_v43 = vadd.f32 %v1945_v35, %v1899_v24  ;;  %v1969_v11 = vmul.f32 %v1899_v24, %v1899_v24 }
 0x199   : > { %v1573_v61 = vpop.f32.mrf.mxu2 }
 0x19a   : > { %v1984_v15 = vadd.f32 %v1983_v52, %v1969_v11  ;;  %v1600_v57 = vadd.f32 %v1573_v61, %v1464_v22 }
 0x19b   : > { %v1731_v53 = vpop.f32.mrf.mxu3  ;;  %v1440_v13 = vpop.f32.mrf.mxu1 }
 0x19c   : > { %v1758_v3 = vadd.f32 %v1731_v53, %v1600_v57  ;;  %v1465_v60 = vadd.f32 %v1440_v13, %v3555_v46 }
 0x19e   : > { %v1900_v63 = vadd.f32 %v1873_v28, %v1758_v3 }
 0x19f   : > { %v1876_v29 = vpop.f32.mrf.mxu0 }
 0x1a0   : > { %v2743_v37 = vpack.c.bf16 %v1900_v63, %v1899_v24  ;;  %v1947_v42 = vadd.f32 %v1946_v43, %v1900_v63  ;;  %v1970_v1 = vmul.f32 %v1900_v63, %v1900_v63 }
 0x1a1   : > { %v1576_v44 = vpop.f32.mrf.mxu2 }
 0x1a2   : > { %2763 = vst [vmem:[%s3598_s22 + $0x20] sm:$0xff] %v2743_v37   ;;  %v1985_v18 = vadd.f32 %v1984_v15, %v1970_v1  ;;  %v1601_v47 = vadd.f32 %v1576_v44, %v1465_v60 }
 0x1a3   : > { %v1734_v27 = vpop.f32.mrf.mxu3  ;;  %v1442_v4 = vpop.f32.mrf.mxu1 }
 0x1a4   : > { %v1759_v6 = vadd.f32 %v1734_v27, %v1601_v47  ;;  %v1466_v48 = vadd.f32 %v1442_v4, %v3565_v62 }
 0x1a6   : > { %v1901_v21 = vadd.f32 %v1876_v29, %v1759_v6 }
 0x1a7   : > { %v1878_v30 = vpop.f32.mrf.mxu0 }
 0x1a8   : > { %v1948_v12 = vadd.f32 %v1947_v42, %v1901_v21  ;;  %v1971_v36 = vmul.f32 %v1901_v21, %v1901_v21 }
 0x1a9   : > { %v1578_v25 = vpop.f32.mrf.mxu2 }
 0x1aa   : > { %v1986_v32 = vadd.f32 %v1985_v18, %v1971_v36  ;;  %v1602_v41 = vadd.f32 %v1578_v25, %v1466_v48 }
 0x1ab   : > { %v1736_v51 = vpop.f32.mrf.mxu3  ;;  %v1445_v46 = vpop.f32.mrf.mxu1 }
 0x1ac   : > { %v1760_v14 = vadd.f32 %v1736_v51, %v1602_v41  ;;  %v1467_v5 = vadd.f32 %v1445_v46, %v3574_v2 }
 0x1ae   : > { %v1902_v8 = vadd.f32 %v1878_v30, %v1760_v14 }
 0x1af   : > { %v1881_v23 = vpop.f32.mrf.mxu0 }
 0x1b0   : > { %v2748_v59 = vpack.c.bf16 %v1902_v8, %v1901_v21  ;;  %v1949_v7 = vadd.f32 %v1948_v12, %v1902_v8  ;;  %v1972_v0 = vmul.f32 %v1902_v8, %v1902_v8 }
 0x1b1   : > { %v1581_v55 = vpop.f32.mrf.mxu2 }
 0x1b2   : > { %2764 = vst [vmem:[%s3598_s22 + $0x28] sm:$0xff] %v2748_v59   ;;  %v1987_v17 = vadd.f32 %v1986_v32, %v1972_v0  ;;  %v1603_v38 = vadd.f32 %v1581_v55, %v1467_v5 }
 0x1b3   : > { %v1739_v31 = vpop.f32.mrf.mxu3  ;;  %v1447_v62 = vpop.f32.mrf.mxu1 }
 0x1b4   : > { %v1761_v56 = vadd.f32 %v1739_v31, %v1603_v38  ;;  %v1468_v10 = vadd.f32 %v1447_v62, %v3582_v45 }
 0x1b6   : > { %v1903_v34 = vadd.f32 %v1881_v23, %v1761_v56 }
 0x1b7   : > { %v1883_v35 = vpop.f32.mrf.mxu0 }
 0x1b8   : > { %v1950_v39 = vadd.f32 %v1949_v7, %v1903_v34  ;;  %v1973_v9 = vmul.f32 %v1903_v34, %v1903_v34 }
 0x1b9   : > { %v1583_v58 = vpop.f32.mrf.mxu2 }
 0x1ba   : > { %v1988_v50 = vadd.f32 %v1987_v17, %v1973_v9  ;;  %v1604_v49 = vadd.f32 %v1583_v58, %v1468_v10 }
 0x1bb   : > { %v1741_v26 = vpop.f32.mrf.mxu3  ;;  %v1450_v2 = vpop.f32.mrf.mxu1 }
 0x1bc   : > { %v1762_v52 = vadd.f32 %v1741_v26, %v1604_v49  ;;  %v1469_v24 = vadd.f32 %v1450_v2, %v3585_v20 }
 0x1be   : > { %v1904_v19 = vadd.f32 %v1883_v35, %v1762_v52 }
 0x1bf   : > { %v1886_v28 = vpop.f32.mrf.mxu0 }
 0x1c0   : > { %v2753_v33 = vpack.c.bf16 %v1904_v19, %v1903_v34  ;;  %v1951_v54 = vadd.f32 %v1950_v39, %v1904_v19  ;;  %v1974_v40 = vmul.f32 %v1904_v19, %v1904_v19 }
 0x1c1   : > { %v1586_v43 = vpop.f32.mrf.mxu2 }
 0x1c2   : > { %2765 = vst [vmem:[%s3598_s22 + $0x30] sm:$0xff] %v2753_v33   ;;  %v1989_v11 = vadd.f32 %v1988_v50, %v1974_v40  ;;  %v1605_v22 = vadd.f32 %v1586_v43, %v1469_v24 }
 0x1c3   : > { %v1744_v61 = vpop.f32.mrf.mxu3  ;;  %v1452_v15 = vpop.f32.mrf.mxu1 }
 0x1c4   : > { %v1763_v45 = vadd.f32 %v1744_v61, %v1605_v22  ;;  %v1470_v3 = vadd.f32 %v1452_v15, %v3590_v16 }
 0x1c6   : > { %v1905_v57 = vadd.f32 %v1886_v28, %v1763_v45 }
 0x1c7   : > { %v1888_v20 = vpop.f32.mrf.mxu0 }
 0x1c8   : > { %v1952_v53 = vadd.f32 %v1951_v54, %v1905_v57  ;;  %v1975_v13 = vmul.f32 %v1905_v57, %v1905_v57 }
 0x1c9   : > { %v1588_v63 = vpop.f32.mrf.mxu2 }
 0x1ca   : > { %v1990_v37 = vadd.f32 %v1989_v11, %v1975_v13  ;;  %v1606_v42 = vadd.f32 %v1588_v63, %v1470_v3 }
 0x1cb   : > { %v1746_v1 = vpop.f32.mrf.mxu3 }
 0x1cc   : > { %v1764_v60 = vadd.f32 %v1746_v1, %v1606_v42 }
 0x1ce   : > { %v1906_v29 = vadd.f32 %v1888_v20, %v1764_v60 }
 0x1d0   : > { %v2758_v44 = vpack.c.bf16 %v1906_v29, %v1905_v57  ;;  %v1953_v18 = vadd.f32 %v1952_v53, %v1906_v29  ;;  %v1976_v47 = vmul.f32 %v1906_v29, %v1906_v29 }
 0x1d2   : > { %2766 = vst [vmem:[%s3598_s22 + $0x38] sm:$0xff] %v2758_v44   ;;  %v1954_v27 = vrot.slane %v1953_v18, 4  ;;  %v1991_v4 = vadd.f32 %v1990_v37, %v1976_v47 }
 0x1d4   : > { %v1955_v6 = vadd.f32 %v1954_v27, %v1953_v18  ;;  %v1992_v21 = vrot.slane %v1991_v4, 4 }
 0x1d6   : > { %v1956_v12 = vrot.slane %v1955_v6, 2  ;;  %v1993_v36 = vadd.f32 %v1992_v21, %v1991_v4 }
 0x1d8   : > { %v1957_v16 = vadd.f32 %v1956_v12, %v1955_v6  ;;  %v1994_v48 = vrot.slane %v1993_v36, 2 }
 0x1da   : > { %v1958_v30 = vrot.slane %v1957_v16, 1  ;;  %v1995_v25 = vadd.f32 %v1994_v48, %v1993_v36 }
 0x1dc   : > { %v1959_v32 = vadd.f32 %v1958_v30, %v1957_v16  ;;  %v1996_v41 = vrot.slane %v1995_v25, 1 }
 0x1de   : > { %1960 = vst [vmem:[%s264_s24] sm:$0x1] %v1959_v32  ;;  %v1997_v51 = vadd.f32 %v1996_v41, %v1995_v25 }
 0x1e0   : > { %1998 = vst [vmem:[%s271_s28] sm:$0x1] %v1997_v51 }
 0x1e1 PF: > { %s15_s19 = sadd.s32 1, %s2870_s19   ;;  %s3654_s15 = smov %s2862_s17 }
 0x1e2   : > { %p12_p8 = scmp.ge.s32.totalorder %s15_s19, 6   ;;  %s3655_s16 = smov %s2866_s18 }
 0x1e3   : > { %s3656_s17 = smov %s3659_s20  ;;  %s3657_s18 = smov %s3663_s21 }
 0x1e4   :  { %14 = sbr.rel (!%p12_p8) target bundleno = 3 (0x3), region = 90 }

// kernel: basic_block_pallas.4
= control target key start
LH: loop header
LB: loop body
LE: loop exit
PB: predicated region body
PF: predicated region fallthrough
CT: control target
= control target key end

     0   :  { %s3178_s21 = smov 0   ;;  %s3180_s22 = smov 0   ;;  %s4091_s0 = inlined_call_operand.vmem [shape: bf16[4,10,18,128], index: 0, kind: input, shape index: {}]   ;;  %s4092_s1 = inlined_call_operand.vmem [shape: f32[1,128], index: 1, kind: input, shape index: {}]   ;;  %s4093_s2 = inlined_call_operand.vmem [shape: f32[1,128], index: 2, kind: input, shape index: {}]   ;;  %s4094_s3 = inlined_call_operand.vmem [shape: bf16[9,128,128], index: 3, kind: input, shape index: {}]   ;;  %s4095_s4 = inlined_call_operand.vmem [shape: bf16[2,16,16,128], index: 4, kind: output, shape index: {0}]   ;;  %s4096_s5 = inlined_call_operand.vmem [shape: f32[4,1,128], index: 5, kind: output, shape index: {1}]   ;;  %s4097_s6 = inlined_call_operand.vmem [shape: f32[4,1,128], index: 6, kind: output, shape index: {2}]  }
   0x1   :  { %s3182_s23 = smov 0   ;;  %s3184_s24 = smov 0  }
   0x2   :  { %s3186_s25 = smov 0  }
   0x3 LB: > { %s26_s26 = sadd.s32 1, %s3133_s23  ;;  %s29_s27 = sadd.s32 1, %s3137_s24  ;;  %s3141_s25 = sphi %s3186_s25, %s17_s25   ;;  %s3137_s24 = sphi %s3184_s24, %s4113_s24   ;;  %s3133_s23 = sphi %s3182_s23, %s4112_s23   ;;  %s3129_s22 = sphi %s3180_s22, %s4111_s22   ;;  %s3125_s21 = sphi %s3178_s21, %s4110_s21  }
   0x4   : > { %p27_p0 = scmp.ge.s32.totalorder %s26_s26, 2  ;;  %p2454_p1 = scmp.ge.s32.totalorder %s3141_s25, 1 }
   0x5   : > { %p247_p2 = scmp.lt.s32.totalorder %s3141_s25, 5 }
   0x6   : > { %s4115_s26 = smov (%p27_p0, %s26_s26), 0  ;;  %s4117_s27 = smov (!%p27_p0, %s29_s27), %s3137_s24 }
   0x7   : > { %p248_p3 = pnand %p2454_p1, %p247_p2  ;;  %p31_p4 = scmp.ge.s32.totalorder %s4117_s27, 2 }
   0x8   : > { %s2455_s30 = sshll.u32 (!%p248_p3), %s3129_s22, 1  ;;  %p499_p5 = scmp.gt.s32.totalorder (!%p248_p3), %s3125_s21, 0 }
   0x9   : > { %s4119_s27 = smov (%p31_p4, %s4117_s27), 0  ;;  %251 = sbr.rel (%p248_p3) target bundleno = 512 (0x200), region = 36 }
   0xa   : > { %s295_s7 = sadd.s32 (!%p248_p3), %s3125_s21, %s2455_s30  ;;  %p509_p7 = scmp.lt.s32.totalorder (!%p248_p3), %s3125_s21, 1 }
   0xb   : > { %p296_p6 = scmp.lt.s32.totalorder (!%p248_p3), %s295_s7, 3  ;;  %p304_p8 = scmp.lt.s32.totalorder (!%p248_p3), %s3129_s22, 1 }
   0xe   : > { %v2906_v0 = vld [vmem:[%s4094_s3 + $0x78] sm:$0xff]  ;;  %v486_v1 = vlaneseq  ;;  %v2905_v2 = vld [vmem:[%s4094_s3 + $0x70] sm:$0xff]  ;;  %s4121_s7 = smov (!%p296_p6, %s295_s7), 3  ;;  %v2904_v5 = vld [vmem:[%s4094_s3 + $0x68] sm:$0xff]  ;;  %vm613_vm2 = vsmask.f32 3328 }
   0xf   : > { %3034 = vmatpush.bf16.msra.mxu1 %v2906_v0  ;;  %3035 = vmatpush.bf16.msra.mxu2 %v2906_v0  ;;  %s3228_s10 = scalar_select %p499_p5, 1, 0  ;;  %v2903_v6 = vld [vmem:[%s4094_s3 + $0x60] sm:$0xff]  ;;  %v2902_v33 = vld [vmem:[%s4094_s3 + $0x58] sm:$0xff]  ;;  %vm614_vm3 = vsmask.f32 7440 }
  0x10   : > { %3036 = vmatpush.bf16.msra.mxu3 %v2906_v0  ;;  %905 = vmatpush.bf16.msra.mxu0 %v2906_v0  ;;  %v3221_v3 = vshrl.u32 %v486_v1, 7  ;;  %s3058_s13 = smul.u32 120, %s4121_s7  ;;  %v3245_v7 = vld [vmem:[%s4092_s1] ss:$0 sm:$0xff]  ;;  %v2901_v50 = vld [vmem:[%s4094_s3 + $0x50] sm:$0xff]  ;;  %vm3322_vm4 = vmor %vm613_vm2, %vm614_vm3  ;;  %vm1107_vm8 = vcmask 1042432   ;;  %s318_s28 = scalar_lea.vmem %s4096_s5, %s4121_s7 }
  0x11   : > { %v3250_v8 = vld [vmem:[%s4093_s2] ss:$0 sm:$0xff]  ;;  %v501_v12 = vstv %s3228_s10  ;;  %vm1108_vm9 = vcmask 1046532   ;;  %s4123_s22 = smov (!%p304_p8, %s3129_s22), 1  ;;  %s325_s8 = scalar_lea.vmem %s4097_s6, %s4121_s7 }
  0x12   : > { %v3226_v4 = vadd.s32 16, %v3221_v3  ;;  %s3240_s18 = scalar_lea.vmem %s4091_s0, %s3058_s13  ;;  %vm490_vm0 = vcmp.ge.s32.totalorder %v3221_v3, 1  ;;  %vm3334_vm5 = vcmp.eq.s32.totalorder %v501_v12, 1  ;;  %v2914_v12 = vld [vmem:[%s4094_s3 + $0xb8] sm:$0xff]  ;;  %vm3622_vm10 = vmor %vm1107_vm8, %vm1108_vm9 }
  0x13   : > { %3037 = vmatpush.bf16.msra.mxu1 %v2905_v2  ;;  %3038 = vmatpush.bf16.msra.mxu2 %v2905_v2  ;;  %v3023_v9 = vld [vmem:[%s3240_s18 + $0x18] sm:$0xff]   ;;  %v338_v10 = vld [vmem:[%s3240_s18 + $0x20] sm:$0x1]  ;;  %v3024_v11 = vld [vmem:[%s3240_s18 + $0x30] sm:$0xff]   ;;  %s510_s13 = scalar_select %p509_p7, 1, 0 }
  0x14   : > { %3039 = vmatpush.bf16.msra.mxu3 %v2905_v2  ;;  %906 = vmatpush.bf16.msra.mxu0 %v2905_v2  ;;  %vm495_vm1 = vcmp.le.s32.totalorder %v3226_v4, 16  ;;  %v2969_v13 = vunpack.c.l.bf16 %v3023_v9  ;;  %v2970_v14 = vunpack.c.h.bf16 %v3023_v9  ;;  %v368_v15 = vunpack.c.l.bf16 %v338_v10  ;;  %v344_v17 = vld [vmem:[%s3240_s18 + $0x38] sm:$0x1]  ;;  %v3025_v18 = vld [vmem:[%s3240_s18 + $0x48] sm:$0xff]   ;;  %v350_v19 = vld [vmem:[%s3240_s18 + $0x50] sm:$0x1] }
  0x15   : > { %v2973_v16 = vunpack.c.l.bf16 %v3024_v11  ;;  %v2974_v20 = vunpack.c.h.bf16 %v3024_v11  ;;  %v374_v21 = vunpack.c.l.bf16 %v344_v17  ;;  %v2977_v22 = vunpack.c.l.bf16 %v3025_v18  ;;  %v3262_v24 = vld [vmem:[%s3240_s18] sm:$0xff]   ;;  %vm3414_vm6 = vmand %vm490_vm0, %vm3334_vm5 }
  0x16   : > { %v2978_v23 = vunpack.c.h.bf16 %v3025_v18  ;;  %v399_v25 = vmul.f32 %v3245_v7, %v2969_v13  ;;  %v400_v26 = vmul.f32 %v3245_v7, %v2970_v14  ;;  %v401_v27 = vmul.f32 %v3245_v7, %v368_v15  ;;  %vm3425_vm7 = vmand %vm495_vm1, %vm3334_vm5 }
  0x17   : > { %3040 = vmatpush.bf16.msra.mxu1 %v2904_v5  ;;  %3041 = vmatpush.bf16.msra.mxu2 %v2904_v5  ;;  %v405_v28 = vmul.f32 %v3245_v7, %v2973_v16  ;;  %v406_v29 = vmul.f32 %v3245_v7, %v2974_v20  ;;  %v407_v30 = vmul.f32 %v3245_v7, %v374_v21  ;;  %v380_v31 = vunpack.c.l.bf16 %v350_v19 }
  0x18   : > { %3042 = vmatpush.bf16.msra.mxu3 %v2904_v5  ;;  %907 = vmatpush.bf16.msra.mxu0 %v2904_v5  ;;  %v411_v32 = vmul.f32 %v3245_v7, %v2977_v22  ;;  %v432_v34 = vadd.f32 %v3250_v8, %v399_v25  ;;  %v433_v35 = vadd.f32 %v3250_v8, %v400_v26  ;;  %v2965_v37 = vunpack.c.l.bf16 %v3262_v24  ;;  %v2900_v5 = vld [vmem:[%s4094_s3 + $0x48] sm:$0xff] }
  0x19   : > { %v434_v36 = vadd.f32 %v3250_v8, %v401_v27  ;;  %v438_v38 = vadd.f32 %v3250_v8, %v405_v28  ;;  %v439_v39 = vadd.f32 %v3250_v8, %v406_v29  ;;  %v440_v40 = vadd.f32 %v3250_v8, %v407_v30  ;;  %v2899_v27 = vld [vmem:[%s4094_s3 + $0x40] sm:$0xff] }
  0x1a   : > { %v2966_v41 = vunpack.c.h.bf16 %v3262_v24  ;;  %v462_v42 = vmax.f32 %v432_v34, 0.0  ;;  %v463_v43 = vmax.f32 %v433_v35, 0.0  ;;  %v412_v45 = vmul.f32 %v3245_v7, %v2978_v23 }
  0x1b   : > { %3043 = vmatpush.bf16.msra.mxu1 %v2903_v6  ;;  %3044 = vmatpush.bf16.msra.mxu2 %v2903_v6  ;;  %v464_v44 = vmax.f32 %v434_v36, 0.0  ;;  %v468_v46 = vmax.f32 %v438_v38, 0.0  ;;  %v469_v47 = vmax.f32 %v439_v39, 0.0  ;;  %v470_v48 = vmax.f32 %v440_v40, 0.0 }
  0x1c   : > { %3045 = vmatpush.bf16.msra.mxu3 %v2903_v6  ;;  %908 = vmatpush.bf16.msra.mxu0 %v2903_v6  ;;  %v413_v49 = vmul.f32 %v3245_v7, %v380_v31  ;;  %v543_v51 = vsel %vm490_vm0, %v462_v42, 0.0  ;;  %v3291_v53 = vpack.c.bf16 %v463_v43, %v463_v43  ;;  %v444_v54 = vadd.f32 %v3250_v8, %v411_v32  ;;  %v2898_v43 = vld [vmem:[%s4094_s3 + $0x38] sm:$0xff] }
  0x1d   : > { %v545_v52 = vsel %vm495_vm1, %v464_v44, 0.0  ;;  %v3294_v55 = vpack.c.bf16 %v543_v51, %v543_v51  ;;  %v549_v57 = vsel %vm490_vm0, %v468_v46, 0.0  ;;  %v551_v58 = vsel %vm495_vm1, %v470_v48, 0.0  ;;  %v2922_v48 = vld [vmem:[%s4094_s3 + $0xf8] sm:$0xff] }
  0x1e   : > { %v3296_v56 = vpack.c.bf16 %v545_v52, %v545_v52  ;;  %v674_v59 = vshll.u32 %v3291_v53, 16  ;;  %v678_v60 = vshrl.u32 %v3291_v53, 16  ;;  %v3304_v61 = vpack.c.bf16 %v549_v57, %v549_v57 }
  0x1f   : > { %3046 = vmatpush.bf16.msra.mxu1 %v2902_v33  ;;  %3047 = vmatpush.bf16.msra.mxu2 %v2902_v33  ;;  %v3306_v62 = vpack.c.bf16 %v469_v47, %v469_v47  ;;  %v665_v63 = vshrl.u32 %v3294_v55, 16  ;;  %v668_v0 = vshll.u32 %v3294_v55, 16  ;;  %v3311_v2 = vpack.c.bf16 %v551_v58, %v551_v58 }
  0x20   : > { %3048 = vmatpush.bf16.msra.mxu3 %v2902_v33  ;;  %909 = vmatpush.bf16.msra.mxu0 %v2902_v33  ;;  %v684_v1 = vshll.u32 %v3296_v56, 16  ;;  %v676_v6 = vrot.slane %v674_v59, 5  ;;  %v680_v9 = vrot.slane %v678_v60, 4  ;;  %v713_v10 = vshrl.u32 %v3304_v61, 16 }
  0x21   : > { %v716_v11 = vshll.u32 %v3304_v61, 16  ;;  %v667_v13 = vrot.slane %v665_v63, 4  ;;  %v670_v14 = vrot.slane %v668_v0, 5  ;;  %v722_v16 = vshll.u32 %v3306_v62, 16 }
  0x22   : > { %v686_v15 = vrot.slane %v684_v1, 5  ;;  %v681_v17 = vor.u32 %v680_v9, %v676_v6  ;;  %v715_v18 = vrot.slane %v713_v10, 4  ;;  %v726_v20 = vshrl.u32 %v3306_v62, 16  ;;  %v2913_v9 = vld [vmem:[%s4094_s3 + $0xb0] sm:$0xff] }
  0x23   : > { %3049 = vmatpush.bf16.msra.mxu1 %v2901_v50  ;;  %3050 = vmatpush.bf16.msra.mxu2 %v2901_v50  ;;  %v718_v19 = vrot.slane %v716_v11, 5  ;;  %v671_v22 = vor.u32 %v670_v14, %v667_v13  ;;  %v724_v23 = vrot.slane %v722_v16, 5  ;;  %v732_v25 = vshll.u32 %v3311_v2, 16  ;;  %v2897_v10 = vld [vmem:[%s4094_s3 + $0x30] sm:$0xff] }
  0x24   : > { %3051 = vmatpush.bf16.msra.mxu3 %v2901_v50  ;;  %910 = vmatpush.bf16.msra.mxu0 %v2901_v50  ;;  %v445_v26 = vadd.f32 %v3250_v8, %v412_v45  ;;  %v682_v28 = vrot.slane %v681_v17, 4  ;;  %v728_v30 = vrot.slane %v726_v20, 4  ;;  %v446_v31 = vadd.f32 %v3250_v8, %v413_v49  ;;  %v332_v49 = vld [vmem:[%s3240_s18 + $0x8] sm:$0x1]  ;;  %v2930_v50 = vld [vmem:[%s4094_s3 + $0x138] sm:$0xff]  ;;  %v2921_v16 = vld [vmem:[%s4094_s3 + $0xf0] sm:$0xff] }
  0x25   : > { %v719_v29 = vor.u32 %v718_v19, %v715_v18  ;;  %v672_v33 = vrot.slane %v671_v22, 4  ;;  %v734_v34 = vrot.slane %v732_v25, 5  ;;  %v474_v35 = vmax.f32 %v444_v54, 0.0  ;;  %v2929_v22 = vld [vmem:[%s4094_s3 + $0x130] sm:$0xff] }
  0x26   : > { %v475_v36 = vmax.f32 %v445_v26, 0.0  ;;  %v687_v38 = vsel %vm3322_vm4, %v682_v28, %v686_v15  ;;  %v729_v40 = vor.u32 %v728_v30, %v724_v23  ;;  %v476_v42 = vmax.f32 %v446_v31, 0.0 }
  0x27   : > { %3052 = vmatpush.bf16.msra.mxu1 %v2900_v5  ;;  %3053 = vmatpush.bf16.msra.mxu2 %v2900_v5  ;;  %v720_v39 = vrot.slane %v719_v29, 4  ;;  %v677_v44 = vsel %vm3322_vm4, %v672_v33, %v676_v6  ;;  %v830_v45 = vunpack.c.l.b16 %v687_v38  ;;  %v555_v46 = vsel %vm490_vm0, %v474_v35, 0.0  ;;  %v341_v29 = vld [vmem:[%s3240_s18 + $0x2c] sm:$0x1] }
  0x28   : > { %3054 = vmatpush.bf16.msra.mxu3 %v2900_v5  ;;  %911 = vmatpush.bf16.msra.mxu0 %v2900_v5  ;;  %v3350_v47 = vpack.c.bf16 %v475_v36, %v475_v36  ;;  %v829_v51 = vunpack.c.l.b16 %v677_v44  ;;  %v730_v54 = vrot.slane %v729_v40, 4  ;;  %v557_v57 = vsel %vm495_vm1, %v476_v42, 0.0  ;;  %v2896_v33 = vld [vmem:[%s4094_s3 + $0x28] sm:$0xff] }
  0x29   : > { %v725_v52 = vsel %vm3322_vm4, %v720_v39, %v724_v23  ;;  %v3363_v59 = vpack.c.bf16 %v555_v46, %v555_v46  ;;  %v3365_v60 = vpack.c.bf16 %v557_v57, %v557_v57  ;;  %v362_v6 = vunpack.c.l.bf16 %v332_v49  ;;  %v339_v23 = vld [vmem:[%s3240_s18 + $0x24] sm:$0xff]  }
  0x2a   : > { %v833_v58 = vunpack.c.l.b16 %v725_v52  ;;  %v770_v63 = vshll.u32 %v3350_v47, 16  ;;  %v3368_v0 = vpack.c.b16 %v830_v45, %v829_v51  ;;  %v735_v1 = vsel %vm3322_vm4, %v730_v54, %v734_v34  ;;  %v2920_v38 = vld [vmem:[%s4094_s3 + $0xe8] sm:$0xff] }
  0x2b   : > { %3055 = vmatpush.bf16.msra.mxu1 %v2899_v27  ;;  %3056 = vmatpush.bf16.msra.mxu2 %v2899_v27  ;;  %v774_v5 = vshrl.u32 %v3350_v47, 16  ;;  %v834_v11 = vunpack.c.l.b16 %v735_v1  ;;  %v761_v13 = vshrl.u32 %v3363_v59, 16  ;;  %v764_v14 = vshll.u32 %v3363_v59, 16  ;;  %v2928_v45 = vld [vmem:[%s4094_s3 + $0x128] sm:$0xff] }
  0x2c   : > { %3057 = vmatpush.bf16.msra.mxu3 %v2899_v27  ;;  %912 = vmatpush.bf16.msra.mxu0 %v2899_v27  ;;  %v772_v15 = vrot.slane %v770_v63, 5  ;;  %v780_v18 = vshll.u32 %v3365_v60, 16  ;;  %v393_v19 = vmul.f32 %v3245_v7, %v2965_v37  ;;  %v394_v20 = vmul.f32 %v3245_v7, %v2966_v41  ;;  %v2912_v41 = vld [vmem:[%s4094_s3 + $0xa8] sm:$0xff]  ;;  %v2895_v63 = vld [vmem:[%s4094_s3 + $0x20] sm:$0xff] }
  0x2d   : > { %v776_v17 = vrot.slane %v774_v5, 4  ;;  %v3396_v25 = vpack.c.b16 %v834_v11, %v833_v58  ;;  %v763_v26 = vrot.slane %v761_v13, 4  ;;  %v766_v27 = vrot.slane %v764_v14, 5  ;;  %v2911_v58 = vld [vmem:[%s4094_s3 + $0xa0] sm:$0xff] }
  0x2e   : > { %923 = vmatmul.bf16.vlgmr.msra.gmra.mxu1 %v3368_v0  ;;  %v395_v28 = vmul.f32 %v3245_v7, %v362_v6  ;;  %v782_v31 = vrot.slane %v780_v18, 5  ;;  %v426_v37 = vadd.f32 %v3250_v8, %v393_v19  ;;  %v427_v24 = vadd.f32 %v3250_v8, %v394_v20 }
  0x2f   : > { %1263 = vmatpush.bf16.msrb.mxu2 %v2914_v12  ;;  %1050 = vmatpush.bf16.msrb.mxu1 %v2898_v43  ;;  %v777_v30 = vor.u32 %v776_v17, %v772_v15  ;;  %v767_v34 = vor.u32 %v766_v27, %v763_v26  ;;  %v369_v39 = vunpack.c.l.bf16 %v339_v23  ;;  %v370_v40 = vunpack.c.h.bf16 %v339_v23 }
  0x30   : > { %1399 = vmatpush.bf16.msrb.mxu3 %v2922_v48  ;;  %1557 = vmatpush.bf16.msrb.mxu0 %v2930_v50  ;;  %v428_v35 = vadd.f32 %v3250_v8, %v395_v28  ;;  %v456_v12 = vmax.f32 %v426_v37, 0.0  ;;  %v457_v43 = vmax.f32 %v427_v24, 0.0  ;;  %v371_v46 = vunpack.c.l.bf16 %v341_v29  ;;  %v345_v28 = vld [vmem:[%s3240_s18 + $0x3c] sm:$0xff]  }
  0x31   : > { %933 = vmatmul.bf16.vlgmr.msra.gmra.mxu2 %v3396_v25  ;;  %v778_v42 = vrot.slane %v777_v30, 4  ;;  %v768_v48 = vrot.slane %v767_v34, 4  ;;  %v402_v50 = vmul.f32 %v3245_v7, %v369_v39  ;;  %v403_v51 = vmul.f32 %v3245_v7, %v370_v40 }
  0x32   : > { %v458_v49 = vmax.f32 %v428_v35, 0.0  ;;  %v537_v54 = vsel %vm3414_vm6, %v456_v12, 0.0  ;;  %v538_v57 = vsel %vm3334_vm5, %v457_v43, 0.0  ;;  %v404_v1 = vmul.f32 %v3245_v7, %v371_v46  ;;  %v347_v35 = vld [vmem:[%s3240_s18 + $0x44] sm:$0x1]  ;;  %v2894_v12 = vld [vmem:[%s4094_s3 + $0x18] sm:$0xff] }
  0x33   : > { %1264 = vmatpush.bf16.msrb.mxu2 %v2913_v9  ;;  %1051 = vmatpush.bf16.msrb.mxu1 %v2897_v10  ;;  %v783_v52 = vsel %vm3322_vm4, %v778_v42, %v782_v31  ;;  %v773_v5 = vsel %vm3322_vm4, %v768_v48, %v772_v15  ;;  %v3451_v9 = vpack.c.bf16 %v537_v54, %v537_v54  ;;  %v2919_v10 = vld [vmem:[%s4094_s3 + $0xe0] sm:$0xff]  ;;  %v375_v40 = vunpack.c.l.bf16 %v345_v28  ;;  %v2910_v42 = vld [vmem:[%s4094_s3 + $0x98] sm:$0xff] }
  0x34   : > { %1400 = vmatpush.bf16.msrb.mxu3 %v2921_v16  ;;  %1558 = vmatpush.bf16.msrb.mxu0 %v2929_v22  ;;  %v838_v6 = vunpack.c.l.b16 %v783_v52  ;;  %v539_v32 = vsel %vm3425_vm7, %v458_v49, 0.0  ;;  %v837_v11 = vunpack.c.l.b16 %v773_v5  ;;  %v3456_v13 = vpack.c.bf16 %v538_v57, %v538_v57  ;;  %v2927_v15 = vld [vmem:[%s4094_s3 + $0x120] sm:$0xff]  ;;  %v2918_v43 = vld [vmem:[%s4094_s3 + $0xd8] sm:$0xff] }
  0x35   : > { %v3458_v14 = vpack.c.bf16 %v539_v32, %v539_v32  ;;  %v435_v16 = vadd.f32 %v3250_v8, %v402_v50  ;;  %v617_v17 = vshrl.u32 %v3451_v9, 16  ;;  %v620_v18 = vshll.u32 %v3451_v9, 16 }
  0x36   : > { %v436_v19 = vadd.f32 %v3250_v8, %v403_v51  ;;  %v437_v20 = vadd.f32 %v3250_v8, %v404_v1  ;;  %v3468_v22 = vpack.c.b16 %v838_v6, %v837_v11  ;;  %v626_v23 = vshll.u32 %v3456_v13, 16 }
  0x37   : > { %1265 = vmatpush.bf16.msrb.mxu2 %v2912_v41  ;;  %1052 = vmatpush.bf16.msrb.mxu1 %v2896_v33  ;;  %v630_v26 = vshrl.u32 %v3456_v13, 16  ;;  %v636_v27 = vshll.u32 %v3458_v14, 16  ;;  %v619_v29 = vrot.slane %v617_v17, 4  ;;  %v622_v30 = vrot.slane %v620_v18, 5 }
  0x38   : > { %1401 = vmatpush.bf16.msrb.mxu3 %v2920_v38  ;;  %1559 = vmatpush.bf16.msrb.mxu0 %v2928_v45  ;;  %v465_v31 = vmax.f32 %v435_v16, 0.0  ;;  %v466_v37 = vmax.f32 %v436_v19, 0.0  ;;  %v628_v24 = vrot.slane %v626_v23, 5  ;;  %v467_v34 = vmax.f32 %v437_v20, 0.0 }
  0x39   : > { %943 = vmatmul.bf16.vlgmr.msra.gmra.mxu3 %v3468_v22  ;;  %v632_v41 = vrot.slane %v630_v26, 4  ;;  %v638_v33 = vrot.slane %v636_v27, 5  ;;  %v623_v36 = vor.u32 %v622_v30, %v619_v29  ;;  %v376_v48 = vunpack.c.h.bf16 %v345_v28  ;;  %v353_v26 = vld [vmem:[%s3240_s18 + $0x5c] sm:$0x1] }
  0x3a   : > { %v546_v38 = vsel %vm490_vm0, %v465_v31, 0.0  ;;  %v3478_v39 = vpack.c.bf16 %v466_v37, %v466_v37  ;;  %v548_v45 = vsel %vm495_vm1, %v467_v34, 0.0  ;;  %v408_v23 = vmul.f32 %v3245_v7, %v375_v40 }
  0x3b   : > { %1266 = vmatpush.bf16.msrb.mxu2 %v2911_v58  ;;  %1053 = vmatpush.bf16.msrb.mxu1 %v2895_v63  ;;  %v633_v44 = vor.u32 %v632_v41, %v628_v24  ;;  %v3491_v46 = vpack.c.bf16 %v546_v38, %v546_v38  ;;  %v624_v49 = vrot.slane %v623_v36, 4  ;;  %v3493_v50 = vpack.c.bf16 %v548_v45, %v548_v45 }
  0x3c   : > { %1402 = vmatpush.bf16.msrb.mxu3 %v2919_v10  ;;  %1560 = vmatpush.bf16.msrb.mxu0 %v2927_v15  ;;  %v698_v51 = vshll.u32 %v3478_v39, 16  ;;  %v702_v52 = vshrl.u32 %v3478_v39, 16  ;;  %v377_v63 = vunpack.c.l.bf16 %v347_v35  ;;  %v351_v10 = vld [vmem:[%s3240_s18 + $0x54] sm:$0xff]   ;;  %v409_v28 = vmul.f32 %v3245_v7, %v376_v48 }
  0x3d   : > { %v634_v54 = vrot.slane %v633_v44, 4  ;;  %v689_v57 = vshrl.u32 %v3491_v46, 16  ;;  %v692_v58 = vshll.u32 %v3491_v46, 16  ;;  %v629_v1 = vsel %vm3322_vm4, %v624_v49, %v628_v24 }
  0x3e   : > { %v700_v5 = vrot.slane %v698_v51, 5  ;;  %v704_v6 = vrot.slane %v702_v52, 4  ;;  %v708_v32 = vshll.u32 %v3493_v50, 16  ;;  %v825_v15 = vunpack.c.l.b16 %v629_v1 }
  0x3f   : > { %1267 = vmatpush.bf16.msrb.mxu2 %v2910_v42  ;;  %1054 = vmatpush.bf16.msrb.mxu1 %v2894_v12  ;;  %v639_v11 = vsel %vm3322_vm4, %v634_v54, %v638_v33  ;;  %v691_v16 = vrot.slane %v689_v57, 4  ;;  %v694_v17 = vrot.slane %v692_v58, 5  ;;  %v410_v29 = vmul.f32 %v3245_v7, %v377_v63 }
  0x40   : > { %1403 = vmatpush.bf16.msrb.mxu3 %v2918_v43  ;;  %v826_v18 = vunpack.c.l.b16 %v639_v11  ;;  %v705_v19 = vor.u32 %v704_v6, %v700_v5  ;;  %v710_v20 = vrot.slane %v708_v32, 5  ;;  %v381_v30 = vunpack.c.l.bf16 %v351_v10  ;;  %v3535_v11 = vld [vmem:[%s3240_s18 + $0xc] sm:$0xff]  }
  0x41   : > { %v695_v27 = vor.u32 %v694_v17, %v691_v16  ;;  %v441_v24 = vadd.f32 %v3250_v8, %v408_v23  ;;  %v382_v41 = vunpack.c.h.bf16 %v351_v10  ;;  %v442_v34 = vadd.f32 %v3250_v8, %v409_v28  ;;  %v2893_v23 = vld [vmem:[%s4094_s3 + $0x10] sm:$0xff] }
  0x42   : > { %v841_v31 = vpack.c.b16 %v826_v18, %v825_v15  ;;  %v706_v37 = vrot.slane %v705_v19, 4  ;;  %v443_v35 = vadd.f32 %v3250_v8, %v410_v29  ;;  %v383_v36 = vunpack.c.l.bf16 %v353_v26  ;;  %v2926_v15 = vld [vmem:[%s4094_s3 + $0x118] sm:$0xff] }
  0x43   : > { %v696_v33 = vrot.slane %v695_v27, 4  ;;  %v471_v40 = vmax.f32 %v441_v24, 0.0  ;;  %v414_v42 = vmul.f32 %v3245_v7, %v381_v30  ;;  %v415_v12 = vmul.f32 %v3245_v7, %v382_v41  ;;  %1561 = vmatpush.bf16.msrb.mxu0 %v2926_v15  ;;  %v2917_v30 = vld [vmem:[%s4094_s3 + $0xd0] sm:$0xff]  ;;  %1055 = vmatpush.bf16.msrb.mxu1 %v2893_v23 }
  0x44   : > { %913 = vmatmul.bf16.vlgmr.msra.gmra.mxu0 %v841_v31  ;;  %v711_v38 = vsel %vm3322_vm4, %v706_v37, %v710_v20  ;;  %v472_v45 = vmax.f32 %v442_v34, 0.0  ;;  %v473_v48 = vmax.f32 %v443_v35, 0.0  ;;  %v416_v52 = vmul.f32 %v3245_v7, %v383_v36  ;;  %v2909_v20 = vld [vmem:[%s4094_s3 + $0x90] sm:$0xff]  ;;  %v2908_v34 = vld [vmem:[%s4094_s3 + $0x88] sm:$0xff]  ;;  %1404 = vmatpush.bf16.msrb.mxu3 %v2917_v30 }
  0x45   : > { %v701_v43 = vsel %vm3322_vm4, %v696_v33, %v700_v5  ;;  %v832_v44 = vunpack.c.l.b16 %v711_v38  ;;  %v552_v51 = vsel %vm490_vm0, %v471_v40, 0.0  ;;  %v447_v54 = vadd.f32 %v3250_v8, %v414_v42  ;;  %v2925_v31 = vld [vmem:[%s4094_s3 + $0x110] sm:$0xff]  ;;  %1268 = vmatpush.bf16.msrb.mxu2 %v2909_v20  ;;  %v2892_v35 = vld [vmem:[%s4094_s3 + $0x8] sm:$0xff] }
  0x46   : > { %v831_v49 = vunpack.c.l.b16 %v701_v43  ;;  %v554_v57 = vsel %vm495_vm1, %v473_v48, 0.0  ;;  %v3524_v58 = vpack.c.bf16 %v552_v51, %v552_v51  ;;  %v3526_v63 = vpack.c.bf16 %v472_v45, %v472_v45  ;;  %v335_v48 = vld [vmem:[%s3240_s18 + $0x14] sm:$0x1] }
  0x47   : > { %v448_v1 = vadd.f32 %v3250_v8, %v415_v12  ;;  %v3531_v6 = vpack.c.bf16 %v554_v57, %v554_v57  ;;  %v449_v32 = vadd.f32 %v3250_v8, %v416_v52  ;;  %v477_v10 = vmax.f32 %v447_v54, 0.0  ;;  %v2916_v12 = vld [vmem:[%s4094_s3 + $0xc8] sm:$0xff]  ;;  %1562 = vmatpush.bf16.msrb.mxu0 %v2925_v31  ;;  %1056 = vmatpush.bf16.msrb.mxu1 %v2892_v35  ;;  %v2923_v35 = vld [vmem:[%s4094_s3 + $0x100] sm:$0xff] }
  0x48   : > { %v3529_v5 = vpack.c.b16 %v832_v44, %v831_v49  ;;  %v737_v16 = vshrl.u32 %v3524_v58, 16  ;;  %v740_v17 = vshll.u32 %v3524_v58, 16  ;;  %v746_v18 = vshll.u32 %v3526_v63, 16  ;;  %1405 = vmatpush.bf16.msrb.mxu3 %v2916_v12 }
  0x49   : > { %v750_v19 = vshrl.u32 %v3526_v63, 16  ;;  %v756_v26 = vshll.u32 %v3531_v6, 16  ;;  %v478_v27 = vmax.f32 %v448_v1, 0.0  ;;  %v479_v28 = vmax.f32 %v449_v32, 0.0  ;;  %v2924_v1 = vld [vmem:[%s4094_s3 + $0x108] sm:$0xff]  ;;  %1269 = vmatpush.bf16.msrb.mxu2 %v2908_v34 }
  0x4a   : > { %928 = vmatmul.bf16.gmra.mxu1 %v3529_v5  ;;  %v558_v29 = vsel %vm490_vm0, %v477_v10, 0.0  ;;  %v739_v37 = vrot.slane %v737_v16, 4  ;;  %v742_v24 = vrot.slane %v740_v17, 5  ;;  %v748_v41 = vrot.slane %v746_v18, 5  ;;  %v2907_v17 = vld [vmem:[%s4094_s3 + $0x80] sm:$0xff] }
  0x4b   : > { %v752_v33 = vrot.slane %v750_v19, 4  ;;  %v758_v36 = vrot.slane %v756_v26, 5  ;;  %v560_v38 = vsel %vm495_vm1, %v479_v28, 0.0  ;;  %v3568_v40 = vpack.c.bf16 %v558_v29, %v558_v29  ;;  %v2891_v18 = vld [vmem:[%s4094_s3] sm:$0xff]  ;;  %1563 = vmatpush.bf16.msrb.mxu0 %v2924_v1 }
  0x4c   : > { %v3570_v42 = vpack.c.bf16 %v478_v27, %v478_v27  ;;  %v743_v43 = vor.u32 %v742_v24, %v739_v37  ;;  %v3575_v45 = vpack.c.bf16 %v560_v38, %v560_v38  ;;  %v363_v49 = vunpack.c.l.bf16 %v3535_v11  ;;  %v2915_v27 = vld [vmem:[%s4094_s3 + $0xc0] sm:$0xff]  ;;  %1057 = vmatpush.bf16.msrb.mxu1 %v2891_v18 }
  0x4d   : > { %v753_v44 = vor.u32 %v752_v33, %v748_v41  ;;  %v785_v51 = vshrl.u32 %v3568_v40, 16  ;;  %v788_v52 = vshll.u32 %v3568_v40, 16  ;;  %v364_v16 = vunpack.c.h.bf16 %v3535_v11  ;;  %v2946_v11 = vld [vmem:[%s4094_s3 + $0x1b8] sm:$0xff]  ;;  %1270 = vmatpush.bf16.msrb.mxu2 %v2907_v17  ;;  %1406 = vmatpush.bf16.msrb.mxu3 %v2915_v27 }
  0x4e   : > { %v794_v54 = vshll.u32 %v3570_v42, 16  ;;  %v798_v57 = vshrl.u32 %v3570_v42, 16  ;;  %v744_v32 = vrot.slane %v743_v43, 4  ;;  %v804_v15 = vshll.u32 %v3575_v45, 16 }
  0x4f   : > { %v754_v10 = vrot.slane %v753_v44, 4  ;;  %v787_v19 = vrot.slane %v785_v51, 4  ;;  %v790_v20 = vrot.slane %v788_v52, 5  ;;  %v365_v31 = vunpack.c.l.bf16 %v335_v48  ;;  %1564 = vmatpush.bf16.msrb.mxu0 %v2923_v35 }
  0x50   : > { %v796_v23 = vrot.slane %v794_v54, 5  ;;  %v800_v26 = vrot.slane %v798_v57, 4  ;;  %v749_v28 = vsel %vm3322_vm4, %v744_v32, %v748_v41  ;;  %v806_v30 = vrot.slane %v804_v15, 5 }
  0x51   : > { %v759_v29 = vsel %vm3322_vm4, %v754_v10, %v758_v36  ;;  %v835_v37 = vunpack.c.l.b16 %v749_v28  ;;  %v791_v33 = vor.u32 %v790_v20, %v787_v19  ;;  %v396_v38 = vmul.f32 %v3245_v7, %v363_v49  ;;  %1835 = vmatpush.bf16.msra.mxu2 %v2946_v11  ;;  %v2954_v11 = vld [vmem:[%s4094_s3 + $0x1f8] sm:$0xff] }
  0x52   : > { %v836_v24 = vunpack.c.l.b16 %v759_v29  ;;  %v801_v34 = vor.u32 %v800_v26, %v796_v23  ;;  %v397_v12 = vmul.f32 %v3245_v7, %v364_v16  ;;  %v398_v41 = vmul.f32 %v3245_v7, %v365_v31  ;;  %v2938_v28 = vld [vmem:[%s4094_s3 + $0x178] sm:$0xff]  ;;  %1993 = vmatpush.bf16.msra.mxu3 %v2954_v11 }
  0x53   : > { %v970_v36 = vunpack.c.l.b16 %v3451_v9  ;;  %v792_v44 = vrot.slane %v791_v33, 4  ;;  %v971_v51 = vunpack.c.l.b16 %v3456_v13  ;;  %v429_v52 = vadd.f32 %v3250_v8, %v396_v38  ;;  %1699 = vmatpush.bf16.msra.mxu1 %v2938_v28  ;;  %v2945_v33 = vld [vmem:[%s4094_s3 + $0x1b0] sm:$0xff] }
  0x54   : > { %v3611_v43 = vpack.c.b16 %v836_v24, %v835_v37  ;;  %v802_v48 = vrot.slane %v801_v34, 4  ;;  %v430_v49 = vadd.f32 %v3250_v8, %v397_v12  ;;  %v431_v54 = vadd.f32 %v3250_v8, %v398_v41 }
  0x55   : > { %v797_v7 = vsel %vm3322_vm4, %v792_v44, %v796_v23  ;;  %v986_v1 = vpack.c.b16 %v971_v51, %v970_v36  ;;  %v459_v15 = vmax.f32 %v429_v52, 0.0  ;;  %v2543_v8 = vrot.slane %v3451_v9, 9  ;;  %v2962_v9 = vld [vmem:[%s4094_s3 + $0x238] sm:$0xff]  ;;  %1836 = vmatpush.bf16.msra.mxu2 %v2945_v33  ;;  %v2944_v33 = vld [vmem:[%s4094_s3 + $0x1a8] sm:$0xff] }
  0x56   : > { %938 = vmatmul.bf16.gmra.mxu2 %v3611_v43  ;;  %v807_v57 = vsel %vm3322_vm4, %v802_v48, %v806_v30  ;;  %v839_v32 = vunpack.c.l.b16 %v797_v7  ;;  %v460_v16 = vmax.f32 %v430_v49, 0.0  ;;  %v461_v17 = vmax.f32 %v431_v54, 0.0  ;;  %2135 = vmatpush.bf16.msra.mxu0 %v2962_v9 }
  0x57   : > { %v840_v10 = vunpack.c.l.b16 %v807_v57  ;;  %v1112_v19 = vrot.slane %v3456_v13, 5  ;;  %v1115_v20 = vrot.slane %v3458_v14, 5  ;;  %v540_v26 = vsel %vm490_vm0, %v459_v15, 0.0 }
  0x58   : > { %v571_v27 = vpack.c.bf16 %v460_v16, %v460_v16  ;;  %v542_v13 = vsel %vm495_vm1, %v461_v17, 0.0  ;;  %v570_v14 = vpack.c.bf16 %v540_v26, %v540_v26 }
  0x59   : > { %v3629_v23 = vpack.c.b16 %v840_v10, %v839_v32  ;;  %v1114_v29 = vrot.slane %v1112_v19, 4  ;;  %v572_v30 = vpack.c.bf16 %v542_v13, %v542_v13  ;;  %v1113_v24 = vsel %vm3622_vm10, %v2543_v8, %v1112_v19  ;;  %1837 = vmatpush.bf16.msra.mxu2 %v2944_v33  ;;  %v2934_v33 = vld [vmem:[%s4094_s3 + $0x158] sm:$0xff] }
  0x5a   : > { %1058 = vmatmul.bf16.vlgmr.msrb.gmra.mxu1 %v986_v1  ;;  %v650_v31 = vshll.u32 %v571_v27, 16  ;;  %v654_v37 = vshrl.u32 %v571_v27, 16  ;;  %v641_v34 = vshrl.u32 %v570_v14, 16  ;;  %v644_v35 = vshll.u32 %v570_v14, 16 }
  0x5b   : > { %948 = vmatmul.bf16.gmra.mxu3 %v3629_v23  ;;  %v1116_v38 = vsel %vm3622_vm10, %v1114_v29, %v1115_v20  ;;  %v660_v36 = vshll.u32 %v572_v30, 16  ;;  %v1183_v51 = vunpack.c.l.b16 %v1113_v24  ;;  %v972_v15 = vunpack.c.l.b16 %v570_v14  ;;  %v2953_v29 = vld [vmem:[%s4094_s3 + $0x1f0] sm:$0xff] }
  0x5c   : > { %v652_v12 = vrot.slane %v650_v31, 5  ;;  %v656_v41 = vrot.slane %v654_v37, 4  ;;  %v643_v44 = vrot.slane %v641_v34, 4  ;;  %v646_v48 = vrot.slane %v644_v35, 5  ;;  %v2961_v31 = vld [vmem:[%s4094_s3 + $0x230] sm:$0xff]  ;;  %1994 = vmatpush.bf16.msra.mxu3 %v2953_v29 }
  0x5d   : > { %v1184_v52 = vunpack.c.l.b16 %v1116_v38  ;;  %v662_v54 = vrot.slane %v660_v36, 5  ;;  %v973_v16 = vunpack.c.l.b16 %v571_v27  ;;  %v1119_v17 = vrot.slane %v571_v27, 5  ;;  %v2937_v27 = vld [vmem:[%s4094_s3 + $0x170] sm:$0xff]  ;;  %2136 = vmatpush.bf16.msra.mxu0 %v2961_v31 }
  0x5e   : > { %v657_v49 = vor.u32 %v656_v41, %v652_v12  ;;  %v647_v7 = vor.u32 %v646_v48, %v643_v44  ;;  %v2544_v26 = vrot.slane %v570_v14, 9  ;;  %v1122_v13 = vrot.slane %v572_v30, 5  ;;  %1700 = vmatpush.bf16.msra.mxu1 %v2937_v27 }
  0x5f   : > { %v1199_v32 = vpack.c.b16 %v1184_v52, %v1183_v51  ;;  %v987_v28 = vpack.c.b16 %v973_v16, %v972_v15  ;;  %v1121_v9 = vrot.slane %v1119_v17, 4  ;;  %v976_v37 = vunpack.c.l.b16 %v3491_v46 }
  0x60   : > { %v658_v57 = vrot.slane %v657_v49, 4  ;;  %v648_v1 = vrot.slane %v647_v7, 4  ;;  %v977_v14 = vunpack.c.l.b16 %v3478_v39  ;;  %v1120_v30 = vsel %vm3622_vm10, %v2544_v26, %v1119_v17  ;;  %v2936_v7 = vld [vmem:[%s4094_s3 + $0x168] sm:$0xff]  ;;  %v2951_v26 = vld [vmem:[%s4094_s3 + $0x1e0] sm:$0xff] }
  0x61   : > { %v1123_v24 = vsel %vm3622_vm10, %v1121_v9, %v1122_v13  ;;  %v1185_v35 = vunpack.c.l.b16 %v1120_v30  ;;  %v974_v41 = vunpack.c.l.b16 %v3294_v55  ;;  %v975_v36 = vunpack.c.l.b16 %v3291_v53  ;;  %v2942_v9 = vld [vmem:[%s4094_s3 + $0x198] sm:$0xff] }
  0x62   : > { %v663_v10 = vsel %vm3322_vm4, %v658_v57, %v662_v54  ;;  %v653_v8 = vsel %vm3322_vm4, %v648_v1, %v652_v12  ;;  %v3674_v34 = vpack.c.b16 %v977_v14, %v976_v37  ;;  %v1186_v38 = vunpack.c.l.b16 %v1123_v24  ;;  %v2952_v54 = vld [vmem:[%s4094_s3 + $0x1e8] sm:$0xff]  ;;  %1701 = vmatpush.bf16.msra.mxu1 %v2936_v7  ;;  %v2950_v24 = vld [vmem:[%s4094_s3 + $0x1d8] sm:$0xff] }
  0x63   : > { %v828_v19 = vunpack.c.l.b16 %v663_v10  ;;  %v827_v20 = vunpack.c.l.b16 %v653_v8  ;;  %v1126_v44 = vrot.slane %v3291_v53, 5  ;;  %v3682_v48 = vpack.c.b16 %v975_v36, %v974_v41  ;;  %v2960_v53 = vld [vmem:[%s4094_s3 + $0x228] sm:$0xff]  ;;  %1995 = vmatpush.bf16.msra.mxu3 %v2952_v54 }
  0x64   : > { %v3676_v12 = vpack.c.b16 %v1186_v38, %v1185_v35  ;;  %v2545_v51 = vrot.slane %v3294_v55, 9  ;;  %v1129_v49 = vrot.slane %v3296_v56, 5  ;;  %v2546_v57 = vrot.slane %v3491_v46, 9  ;;  %2137 = vmatpush.bf16.msra.mxu0 %v2960_v53  ;;  %v2941_v35 = vld [vmem:[%s4094_s3 + $0x190] sm:$0xff] }
  0x65   : > { %v842_v11 = vpack.c.b16 %v828_v19, %v827_v20  ;;  %v1128_v52 = vrot.slane %v1126_v44, 4  ;;  %v1133_v55 = vrot.slane %v3478_v39, 5  ;;  %v1136_v1 = vrot.slane %v3493_v50, 5  ;;  %v2943_v39 = vld [vmem:[%s4094_s3 + $0x1a0] sm:$0xff] }
  0x66   : > { %1271 = vmatmul.bf16.vlgmr.msrb.gmra.mxu2 %v1199_v32  ;;  %v1127_v56 = vsel %vm3622_vm10, %v2545_v51, %v1126_v44  ;;  %v978_v13 = vunpack.c.l.b16 %v3304_v61  ;;  %v979_v29 = vunpack.c.l.b16 %v3306_v62  ;;  %v1140_v27 = vrot.slane %v3306_v62, 5  ;;  %v2958_v62 = vld [vmem:[%s4094_s3 + $0x218] sm:$0xff] }
  0x67   : > { %918 = vmatmul.bf16.gmra.mxu0 %v842_v11  ;;  %v1130_v32 = vsel %vm3622_vm10, %v1128_v52, %v1129_v49  ;;  %v1134_v10 = vsel %vm3622_vm10, %v2546_v57, %v1133_v55  ;;  %v1135_v15 = vrot.slane %v1133_v55, 4  ;;  %1838 = vmatpush.bf16.msra.mxu2 %v2943_v39  ;;  %v1187_v16 = vunpack.c.l.b16 %v1127_v56  ;;  %v2949_v57 = vld [vmem:[%s4094_s3 + $0x1d0] sm:$0xff] }
  0x68   : > { %v1189_v46 = vunpack.c.l.b16 %v1134_v10  ;;  %v1188_v17 = vunpack.c.l.b16 %v1130_v32  ;;  %1996 = vmatpush.bf16.msra.mxu3 %v2951_v26  ;;  %v3735_v31 = vpack.c.b16 %v979_v29, %v978_v13  ;;  %v2547_v37 = vrot.slane %v3304_v61, 9  ;;  %v2933_v55 = vld [vmem:[%s4094_s3 + $0x150] sm:$0xff]  ;;  %v2956_v13 = vld [vmem:[%s4094_s3 + $0x208] sm:$0xff] }
  0x69   : > { %v1137_v50 = vsel %vm3622_vm10, %v1135_v15, %v1136_v1  ;;  %v1142_v14 = vrot.slane %v1140_v27, 4  ;;  %v1143_v30 = vrot.slane %v3311_v2, 5  ;;  %v980_v44 = vunpack.c.l.b16 %v3524_v58  ;;  %v2940_v1 = vld [vmem:[%s4094_s3 + $0x188] sm:$0xff] }
  0x6a   : > { %1063 = vmatmul.bf16.gmra.mxu1 %v987_v28  ;;  %v1190_v8 = vunpack.c.l.b16 %v1137_v50  ;;  %v3713_v20 = vpack.c.b16 %v1188_v17, %v1187_v16  ;;  %v1141_v61 = vsel %vm3622_vm10, %v2547_v37, %v1140_v27  ;;  %v981_v51 = vunpack.c.l.b16 %v3526_v63  ;;  %v3026_v16 = vld [vmem:[%s3240_s18 + $0x60] sm:$0xff]  }
  0x6b   : > { %1407 = vmatmul.bf16.vlgmr.msrb.gmra.mxu3 %v987_v28  ;;  %v2959_v28 = vld [vmem:[%s4094_s3 + $0x220] sm:$0xff]  ;;  %1839 = vmatpush.bf16.msra.mxu2 %v2942_v9  ;;  %v1144_v2 = vsel %vm3622_vm10, %v1142_v14, %v1143_v30  ;;  %v1191_v38 = vunpack.c.l.b16 %v1141_v61  ;;  %v1147_v52 = vrot.slane %v3526_v63, 5  ;;  %v2548_v54 = vrot.slane %v3524_v58, 9  ;;  %v2957_v63 = vld [vmem:[%s4094_s3 + $0x210] sm:$0xff]  ;;  %v2948_v9 = vld [vmem:[%s4094_s3 + $0x1c8] sm:$0xff] }
  0x6c   : > { %v3711_v19 = vpack.c.b16 %v1190_v8, %v1189_v46  ;;  %2138 = vmatpush.bf16.msra.mxu0 %v2959_v28  ;;  %1997 = vmatpush.bf16.msra.mxu3 %v2950_v24  ;;  %v1192_v41 = vunpack.c.l.b16 %v1144_v2  ;;  %v3764_v49 = vpack.c.b16 %v981_v51, %v980_v44  ;;  %v1150_v53 = vrot.slane %v3531_v6, 5  ;;  %v356_v14 = vld [vmem:[%s3240_s18 + $0x68] sm:$0x1]  ;;  %v3829_v61 = vld [vmem:[%s4093_s2] ss:$0 sm:$0xff] }
  0x6d   : > { %v1149_v7 = vrot.slane %v1147_v52, 4  ;;  %v1148_v58 = vsel %vm3622_vm10, %v2548_v54, %v1147_v52  ;;  %v982_v15 = vunpack.c.l.b16 %v3363_v59  ;;  %v983_v39 = vunpack.c.l.b16 %v3350_v47 }
  0x6e   : > { %v3758_v36 = vpack.c.b16 %v1192_v41, %v1191_v38  ;;  %v1193_v56 = vunpack.c.l.b16 %v1148_v58  ;;  %v1154_v50 = vrot.slane %v3350_v47, 5  ;;  %v2981_v17 = vunpack.c.l.bf16 %v3026_v16  ;;  %v2932_v47 = vld [vmem:[%s4094_s3 + $0x148] sm:$0xff] }
  0x6f   : > { %1840 = vmatpush.bf16.msra.mxu2 %v2941_v35  ;;  %v1151_v6 = vsel %vm3622_vm10, %v1149_v7, %v1150_v53  ;;  %v3796_v8 = vpack.c.b16 %v983_v39, %v982_v15  ;;  %v2549_v26 = vrot.slane %v3363_v59, 9  ;;  %v1157_v28 = vrot.slane %v3365_v60, 5  ;;  %v3814_v59 = vld [vmem:[%s4092_s1] ss:$0 sm:$0xff] }
  0x70   : > { %2139 = vmatpush.bf16.msra.mxu0 %v2958_v62  ;;  %1998 = vmatpush.bf16.msra.mxu3 %v2949_v57  ;;  %v1194_v32 = vunpack.c.l.b16 %v1151_v6  ;;  %v2982_v29 = vunpack.c.h.bf16 %v3026_v16  ;;  %v417_v60 = vmul.f32 %v3814_v59, %v2981_v17  ;;  %v386_v35 = vunpack.c.l.bf16 %v356_v14  ;;  %v2931_v16 = vld [vmem:[%s4094_s3 + $0x140] sm:$0xff] }
  0x71   : > { %v1155_v27 = vsel %vm3622_vm10, %v2549_v26, %v1154_v50  ;;  %v984_v52 = vunpack.c.l.b16 %v3568_v40  ;;  %v985_v54 = vunpack.c.l.b16 %v3570_v42  ;;  %v1161_v7 = vrot.slane %v3570_v42, 5 }
  0x72   : > { %v3787_v10 = vpack.c.b16 %v1194_v32, %v1193_v56  ;;  %v418_v24 = vmul.f32 %v3814_v59, %v2982_v29  ;;  %v450_v2 = vadd.f32 %v3829_v61, %v417_v60  ;;  %v419_v51 = vmul.f32 %v3814_v59, %v386_v35 }
  0x73   : > { %1841 = vmatpush.bf16.msra.mxu2 %v2940_v1  ;;  %v3848_v6 = vpack.c.b16 %v985_v54, %v984_v52  ;;  %v2550_v42 = vrot.slane %v3568_v40, 9  ;;  %v1163_v56 = vrot.slane %v1161_v7, 4  ;;  %v1164_v32 = vrot.slane %v3575_v45, 5 }
  0x74   : > { %2140 = vmatpush.bf16.msra.mxu0 %v2957_v63  ;;  %1999 = vmatpush.bf16.msra.mxu3 %v2948_v9  ;;  %v451_v38 = vadd.f32 %v3829_v61, %v418_v24  ;;  %v480_v44 = vmax.f32 %v450_v2, 0.0  ;;  %v2939_v63 = vld [vmem:[%s4094_s3 + $0x180] sm:$0xff]  ;;  %v452_v58 = vadd.f32 %v3829_v61, %v419_v51 }
  0x75   : > { %v1162_v45 = vsel %vm3622_vm10, %v2550_v42, %v1161_v7  ;;  %v1165_v26 = vsel %vm3622_vm10, %v1163_v56, %v1164_v32 }
  0x76   : > { %1276 = vmatmul.bf16.gmra.mxu2 %v3676_v12  ;;  %v481_v57 = vmax.f32 %v451_v38, 0.0  ;;  %v482_v40 = vmax.f32 %v452_v58, 0.0 }
  0x77   : > { %1565 = vmatmul.bf16.vlgmr.msrb.gmra.mxu0 %v842_v11  ;;  %v2935_v11 = vld [vmem:[%s4094_s3 + $0x160] sm:$0xff]  ;;  %1842 = vmatpush.bf16.msra.mxu2 %v2939_v63 }
  0x78   : > { %1702 = vmatpush.bf16.msra.mxu1 %v2935_v11  ;;  %v1156_v11 = vrot.slane %v1154_v50, 4  ;;  %2141 = vmatpush.bf16.msra.mxu0 %v2956_v13  ;;  %v3857_v39 = vpack.c.bf16 %v481_v57, %v481_v57  ;;  %v2947_v50 = vld [vmem:[%s4094_s3 + $0x1c0] sm:$0xff]  ;;  %v1198_v13 = vunpack.c.l.b16 %v1165_v26  ;;  %v563_v29 = vsel %vm495_vm1, %v482_v40, 0.0 }
  0x79   : > { %2000 = vmatpush.bf16.msra.mxu3 %v2947_v50  ;;  %v3886_v24 = vpack.c.bf16 %v563_v29, %v563_v29 }
  0x7a   : > { %1068 = vmatmul.bf16.gmra.mxu1 %v3682_v48  ;;  %v1158_v37 = vsel %vm3622_vm10, %v1156_v11, %v1157_v28  ;;  %v1474_v9 = vshll.u32 %v3857_v39, 16  ;;  %v1478_v60 = vshrl.u32 %v3857_v39, 16  ;;  %v1348_v52 = vunpack.c.l.b16 %v3857_v39 }
  0x7b   : > { %1412 = vmatmul.bf16.gmra.mxu3 %v3682_v48  ;;  %v1196_v62 = vunpack.c.l.b16 %v1158_v37 }
  0x7c   : > { %1703 = vmatpush.bf16.msra.mxu1 %v2934_v33  ;;  %v1195_v33 = vunpack.c.l.b16 %v1155_v27  ;;  %v2955_v27 = vld [vmem:[%s4094_s3 + $0x200] sm:$0xff]  ;;  %v1476_v38 = vrot.slane %v1474_v9, 5 }
  0x7d   : > { %2142 = vmatpush.bf16.msra.mxu0 %v2955_v27 }
  0x7e   : > { %v3833_v41 = vpack.c.b16 %v1196_v62, %v1195_v33 }
  0x80   : > { %1704 = vmatpush.bf16.msra.mxu1 %v2933_v55  ;;  %v561_v55 = vsel %vm490_vm0, %v480_v44, 0.0  ;;  %v1480_v44 = vrot.slane %v1478_v60, 4 }
  0x81   : > { %v3855_v15 = vpack.c.bf16 %v561_v55, %v561_v55  ;;  %v1484_v55 = vshll.u32 %v3886_v24, 16 }
  0x82   : > { %v1481_v57 = vor.u32 %v1480_v44, %v1476_v38 }
  0x83   : > { %v1465_v11 = vshrl.u32 %v3855_v15, 16  ;;  %v1468_v28 = vshll.u32 %v3855_v15, 16  ;;  %v1347_v51 = vunpack.c.l.b16 %v3855_v15  ;;  %v2695_v3 = vrot.slane %v3855_v15, 9 }
  0x84   : > { %1705 = vmatpush.bf16.msra.mxu1 %v2932_v47  ;;  %v1197_v47 = vunpack.c.l.b16 %v1162_v45  ;;  %v1482_v50 = vrot.slane %v1481_v57, 4 }
  0x85   : > { %v1467_v33 = vrot.slane %v1465_v11, 4  ;;  %v1470_v35 = vrot.slane %v1468_v28, 5  ;;  %v3896_v63 = vpack.c.b16 %v1348_v52, %v1347_v51 }
  0x86   : > { %1281 = vmatmul.bf16.gmra.mxu2 %v3713_v20  ;;  %v3888_v2 = vpack.c.b16 %v1198_v13, %v1197_v47 }
  0x87   : > { %1570 = vmatmul.bf16.gmra.mxu0 %v3368_v0  ;;  %v1471_v7 = vor.u32 %v1470_v35, %v1467_v33 }
  0x88   : > { %1706 = vmatpush.bf16.msra.mxu1 %v2931_v16  ;;  %v1486_v16 = vrot.slane %v1484_v55, 5 }
  0x89   : > { %v1472_v32 = vrot.slane %v1471_v7, 4 }
  0x8a   : > { %1073 = vmatmul.bf16.gmra.mxu1 %v3674_v34  ;;  %v1487_v26 = vsel %vm3322_vm4, %v1482_v50, %v1486_v16 }
  0x8b   : > { %1417 = vmatmul.bf16.gmra.mxu3 %v3674_v34  ;;  %v1477_v45 = vsel %vm3322_vm4, %v1472_v32, %v1476_v38  ;;  %v1506_v13 = vunpack.c.l.b16 %v1487_v26 }
  0x8c   : > { %v1505_v47 = vunpack.c.l.b16 %v1477_v45 }
  0x8e   : > { %v3911_v60 = vpack.c.b16 %v1506_v13, %v1505_v47 }
  0x96   : > { %1286 = vmatmul.bf16.gmra.mxu2 %v3711_v19 }
  0x97   : > { %1575 = vmatmul.bf16.gmra.mxu0 %v3529_v5 }
  0x9a   : > { %1078 = vmatmul.bf16.gmra.mxu1 %v3735_v31 }
  0x9b   : > { %1422 = vmatmul.bf16.gmra.mxu3 %v3735_v31 }
  0xa6   : > { %1291 = vmatmul.bf16.gmra.mxu2 %v3758_v36 }
  0xa7   : > { %1580 = vmatmul.bf16.gmra.mxu0 %v3396_v25 }
  0xaa   : > { %1083 = vmatmul.bf16.gmra.mxu1 %v3764_v49 }
  0xab   : > { %1427 = vmatmul.bf16.gmra.mxu3 %v3764_v49  ;;  %v3791_v46 = vpop.f32.mrf.mxu1 }
  0xb3   : > { %v3823_v30 = vpop.f32.mrf.mxu1 }
  0xb4   : > { %v3839_v53 = vpop.f32.mrf.mxu2 }
  0xb6   : > { %1296 = vmatmul.bf16.gmra.mxu2 %v3787_v10 }
  0xb7   : > { %1585 = vmatmul.bf16.gmra.mxu0 %v3611_v43 }
  0xba   : > { %1088 = vmatmul.bf16.gmra.mxu1 %v3796_v8 }
  0xbb   : > { %1432 = vmatmul.bf16.gmra.mxu3 %v3796_v8 }
  0xbc   : > { %v3865_v17 = vpop.f32.mrf.mxu3  ;;  %v3882_v37 = vpop.f32.mrf.mxu2 }
  0xc1   : > { %v914_v62 = vpop.f32.mrf.mxu0 }
  0xc4   : > { %v3892_v54 = vpop.f32.mrf.mxu3 }
  0xc6   : > { %1301 = vmatmul.bf16.gmra.mxu2 %v3833_v41 }
  0xc7   : > { %v3850_v1 = vpop.f32.mrf.mxu1  ;;  %1590 = vmatmul.bf16.gmra.mxu0 %v3468_v22 }
  0xc9   : > { %v916_v40 = vpop.f32.mrf.mxu0 }
  0xca   : > { %1093 = vmatmul.bf16.gmra.mxu1 %v3848_v6 }
  0xcb   : > { %1437 = vmatmul.bf16.gmra.mxu3 %v3848_v6 }
  0xcf   : > { %v3884_v14 = vpop.f32.mrf.mxu1 }
  0xd6   : > { %1306 = vmatmul.bf16.gmra.mxu2 %v3888_v2 }
  0xd7   : > { %v1059_v58 = vpop.f32.mrf.mxu1  ;;  %1595 = vmatmul.bf16.gmra.mxu0 %v3629_v23 }
  0xd8   : > { %v1060_v42 = vadd.f32 %v1059_v58, %v914_v62 }
  0xd9   : > { %v3899_v56 = vpop.f32.mrf.mxu2 }
  0xda   : > { %1707 = vmatmul.bf16.vlgmr.msra.gmra.mxu1 %v3676_v12 }
  0xdb   : > { %1442 = vmatmul.bf16.gmra.mxu3 %v3896_v63 }
  0xde   : > { %v3907_v11 = vpop.f32.mrf.mxu3 }
  0xdf   : > { %v1061_v28 = vpop.f32.mrf.mxu1 }
  0xe0   : > { %v1062_v9 = vadd.f32 %v1061_v28, %v916_v40 }
  0xe1   : > { %v3909_v29 = vpop.f32.mrf.mxu2 }
  0xe4   : > { %v919_v12 = vpop.f32.mrf.mxu0 }
  0xe6   : > { %v3913_v27 = vpop.f32.mrf.mxu3  ;;  %1843 = vmatmul.bf16.vlgmr.msra.gmra.mxu2 %v3682_v48 }
  0xe7   : > { %v1064_v33 = vpop.f32.mrf.mxu1  ;;  %1600 = vmatmul.bf16.gmra.mxu0 %v3911_v60 }
  0xe8   : > { %v1065_v62 = vadd.f32 %v1064_v33, %v919_v12 }
  0xe9   : > { %v1272_v35 = vpop.f32.mrf.mxu2 }
  0xea   : > { %v1312_v38 = vadd.f32 %v1272_v35, %v1060_v42  ;;  %1712 = vmatmul.bf16.gmra.mxu1 %v3713_v20 }
  0xeb   : > { %2001 = vmatmul.bf16.vlgmr.msra.gmra.mxu3 %v3368_v0 }
  0xec   : > { %v921_v44 = vpop.f32.mrf.mxu0 }
  0xee   : > { %v1408_v51 = vpop.f32.mrf.mxu3 }
  0xef   : > { %v1448_v52 = vadd.f32 %v1408_v51, %v1312_v38  ;;  %v1066_v7 = vpop.f32.mrf.mxu1 }
  0xf0   : > { %v1067_v57 = vadd.f32 %v1066_v7, %v921_v44 }
  0xf1   : > { %v1274_v55 = vpop.f32.mrf.mxu2 }
  0xf2   : > { %v1313_v58 = vadd.f32 %v1274_v55, %v1062_v9 }
  0xf4   : > { %v1566_v32 = vpop.f32.mrf.mxu0 }
  0xf5   : > { %v3920_v40 = vadd.f32 %v1566_v32, %v1448_v52 }
  0xf6   : > { %v1410_v50 = vpop.f32.mrf.mxu3  ;;  %1848 = vmatmul.bf16.gmra.mxu2 %v3674_v34 }
  0xf7   : > { %v1449_v48 = vadd.f32 %v1410_v50, %v1313_v58  ;;  %v1069_v16 = vpop.f32.mrf.mxu1  ;;  %2143 = vmatmul.bf16.vlgmr.msra.gmra.mxu0 %v3713_v20 }
  0xf8   : > { %v1070_v42 = vadd.f32 %v1069_v16, %v3791_v46 }
  0xf9   : > { %v1277_v0 = vpop.f32.mrf.mxu2 }
  0xfa   : > { %v1314_v45 = vadd.f32 %v1277_v0, %v1065_v62  ;;  %1717 = vmatmul.bf16.gmra.mxu1 %v3711_v19 }
  0xfb   : > { %2006 = vmatmul.bf16.gmra.mxu3 %v3529_v5 }
  0xfc   : > { %v1568_v26 = vpop.f32.mrf.mxu0 }
  0xfd   : > { %v3926_v13 = vadd.f32 %v1568_v26, %v1449_v48 }
  0xfe   : > { %v1413_v28 = vpop.f32.mrf.mxu3 }
  0xff   : > { %v1450_v9 = vadd.f32 %v1413_v28, %v1314_v45  ;;  %v1071_v47 = vpop.f32.mrf.mxu1 }
 0x100   : > { %v1072_v34 = vadd.f32 %v1071_v47, %v3823_v30 }
 0x101   : > { %v1279_v12 = vpop.f32.mrf.mxu2 }
 0x102   : > { %v1315_v33 = vadd.f32 %v1279_v12, %v1067_v57 }
 0x104   : > { %v1571_v35 = vpop.f32.mrf.mxu0 }
 0x105   : > { %v3930_v38 = vadd.f32 %v1571_v35, %v1450_v9 }
 0x106   : > { %v1415_v46 = vpop.f32.mrf.mxu3  ;;  %1853 = vmatmul.bf16.gmra.mxu2 %v3735_v31 }
 0x107   : > { %v1451_v20 = vadd.f32 %v1415_v46, %v1315_v33  ;;  %v1074_v62 = vpop.f32.mrf.mxu1  ;;  %2148 = vmatmul.bf16.gmra.mxu0 %v3711_v19 }
 0x108   : > { %v1075_v5 = vadd.f32 %v1074_v62, %v3850_v1 }
 0x109   : > { %v1282_v44 = vpop.f32.mrf.mxu2 }
 0x10a   : > { %v1316_v51 = vadd.f32 %v1282_v44, %v1070_v42  ;;  %1722 = vmatmul.bf16.gmra.mxu1 %v3758_v36 }
 0x10b   : > { %2011 = vmatmul.bf16.gmra.mxu3 %v3396_v25 }
 0x10c   : > { %v1573_v30 = vpop.f32.mrf.mxu0 }
 0x10d   : > { %v3936_v55 = vadd.f32 %v1573_v30, %v1451_v20 }
 0x10e   : > { %v1418_v52 = vpop.f32.mrf.mxu3 }
 0x10f   : > { %v1452_v7 = vadd.f32 %v1418_v52, %v1316_v51  ;;  %v1076_v57 = vpop.f32.mrf.mxu1 }
 0x110   : > { %v1077_v31 = vadd.f32 %v1076_v57, %v3884_v14 }
 0x111   : > { %v1284_v58 = vpop.f32.mrf.mxu2 }
 0x112   : > { %v1317_v32 = vadd.f32 %v1284_v58, %v1072_v34 }
 0x114   : > { %v1576_v50 = vpop.f32.mrf.mxu0 }
 0x115   : > { %v3940_v16 = vadd.f32 %v1576_v50, %v1452_v7 }
 0x116   : > { %v1420_v1 = vpop.f32.mrf.mxu3  ;;  %1858 = vmatmul.bf16.gmra.mxu2 %v3764_v49 }
 0x117   : > { %v1453_v19 = vadd.f32 %v1420_v1, %v1317_v32  ;;  %v1079_v48 = vpop.f32.mrf.mxu1  ;;  %2153 = vmatmul.bf16.gmra.mxu0 %v3758_v36  ;;  %v511_v1 = vstv %s510_s13 }
 0x118   : > { %vm3965_vm11 = vcmp.eq.s32.totalorder %v511_v1, 1 }
 0x119   : > { %v1287_v25 = vpop.f32.mrf.mxu2  ;;  %vm516_vm12 = vmand %vm490_vm0, %vm3965_vm11 }
 0x11a   : > { %v1318_v42 = vadd.f32 %v1287_v25, %v1075_v5  ;;  %1727 = vmatmul.bf16.gmra.mxu1 %v3787_v10  ;;  %v357_v5 = vld [vmem:[%s3240_s18 + $0x6c] sm:$0xff]   ;;  %vm518_vm13 = vmand %vm495_vm1, %vm3965_vm11 }
 0x11b   : > { %2016 = vmatmul.bf16.gmra.mxu3 %v3611_v43  ;;  %v1080_v43 = vadd.f32 %v1079_v48, %v3839_v53  ;;  %v387_v51 = vunpack.c.l.bf16 %v357_v5  ;;  %v388_v30 = vunpack.c.h.bf16 %v357_v5 }
 0x11c   : > { %v1578_v0 = vpop.f32.mrf.mxu0 }
 0x11d   : > { %v3945_v28 = vadd.f32 %v1578_v0, %v1453_v19  ;;  %v420_v7 = vmul.f32 %v3814_v59, %v387_v51  ;;  %v421_v57 = vmul.f32 %v3814_v59, %v388_v30 }
 0x11e   : > { %v1423_v14 = vpop.f32.mrf.mxu3 }
 0x11f   : > { %v1454_v45 = vadd.f32 %v1423_v14, %v1318_v42  ;;  %v1081_v26 = vpop.f32.mrf.mxu1  ;;  %v453_v58 = vadd.f32 %v3829_v61, %v420_v7  ;;  %v454_v32 = vadd.f32 %v3829_v61, %v421_v57 }
 0x120   : > { %v1082_v53 = vadd.f32 %v1081_v26, %v3882_v37 }
 0x121   : > { %v1289_v49 = vpop.f32.mrf.mxu2  ;;  %v483_v19 = vmax.f32 %v453_v58, 0.0  ;;  %v484_v48 = vmax.f32 %v454_v32, 0.0 }
 0x122   : > { %v1319_v9 = vadd.f32 %v1289_v49, %v1077_v31  ;;  %v359_v31 = vld [vmem:[%s3240_s18 + $0x74] sm:$0x1]  ;;  %s2457_s18 = sshll.u32 %s3125_s21, 3  ;;  %s2459_s21 = sshll.u32 %s4123_s22, 5 }
 0x123   : > { %v389_v50 = vunpack.c.l.bf16 %v359_v31  ;;  %p306_p9 = scmp.lt.s32.totalorder %s2457_s18, 15 }
 0x124   : > { %v1581_v47 = vpop.f32.mrf.mxu0 }
 0x125   : > { %v3948_v33 = vadd.f32 %v1581_v47, %v1454_v45  ;;  %v422_v0 = vmul.f32 %v3814_v59, %v389_v50  ;;  %v564_v59 = vsel %vm516_vm12, %v483_v19, 0.0  ;;  %s4125_s18 = smov (!%p306_p9, %s2457_s18), 15 }
 0x126   : > { %v1425_v34 = vpop.f32.mrf.mxu3  ;;  %1863 = vmatmul.bf16.gmra.mxu2 %v3796_v8  ;;  %s2458_s14 = sshll.u32 %s4125_s18, 1 }
 0x127   : > { %v1455_v36 = vadd.f32 %v1425_v34, %v1319_v9  ;;  %v1084_v12 = vpop.f32.mrf.mxu1  ;;  %2158 = vmatmul.bf16.gmra.mxu0 %v3787_v10  ;;  %v1625_v9 = vrot.slane %v3857_v39, 5  ;;  %v455_v34 = vadd.f32 %v3829_v61, %v422_v0  ;;  %v1628_v39 = vrot.slane %v3886_v24, 5  ;;  %s310_s15 = sadd.s32 %s2459_s21, %s2458_s14 }
 0x128   : > { %v1085_v49 = vadd.f32 %v1084_v12, %v3899_v56  ;;  %v3988_v12 = vpack.c.bf16 %v564_v59, %v564_v59  ;;  %s2460_s16 = sshll.u32 %s310_s15, 2 }
 0x129   : > { %v1292_v35 = vpop.f32.mrf.mxu2  ;;  %v1627_v56 = vrot.slane %v1625_v9, 4  ;;  %v1626_v61 = vsel %vm3622_vm10, %v2695_v3, %v1625_v9  ;;  %s4045_s19 = scalar_lea.vmem %s4095_s4, %s2460_s16 }
 0x12a   : > { %v1320_v46 = vadd.f32 %v1292_v35, %v1080_v43  ;;  %1732 = vmatmul.bf16.gmra.mxu1 %v3833_v41  ;;  %v485_v35 = vmax.f32 %v455_v34, 0.0 }
 0x12b   : > { %2021 = vmatmul.bf16.gmra.mxu3 %v3468_v22  ;;  %v1629_v5 = vsel %vm3622_vm10, %v1627_v56, %v1628_v39 }
 0x12c   : > { %v1583_v20 = vpop.f32.mrf.mxu0  ;;  %v566_v51 = vsel %vm518_vm13, %v485_v35, 0.0 }
 0x12d   : > { %v3956_v52 = vadd.f32 %v1583_v20, %v1455_v36  ;;  %v596_v57 = vpack.c.bf16 %v566_v51, %v566_v51 }
 0x12e   : > { %v1428_v62 = vpop.f32.mrf.mxu3 }
 0x12f   : > { %v1456_v8 = vadd.f32 %v1428_v62, %v1320_v46  ;;  %v1086_v44 = vpop.f32.mrf.mxu1 }
 0x130   : > { %v1087_v20 = vadd.f32 %v1086_v44, %v3909_v29  ;;  %v1904_v29 = vshll.u32 %v3988_v12, 16 }
 0x131   : > { %v1294_v10 = vpop.f32.mrf.mxu2 }
 0x132   : > { %v1321_v22 = vadd.f32 %v1294_v10, %v1082_v53  ;;  %v1647_v53 = vunpack.c.l.b16 %v1626_v61  ;;  %v1648_v10 = vunpack.c.l.b16 %v1629_v5  ;;  %v1906_v31 = vrot.slane %v1904_v29, 5 }
 0x134   : > { %v1586_v25 = vpop.f32.mrf.mxu0  ;;  %v1649_v19 = vpack.c.b16 %v1648_v10, %v1647_v53 }
 0x135   : > { %v3974_v26 = vadd.f32 %v1586_v25, %v1456_v8  ;;  %v1901_v8 = vshrl.u32 %v3988_v12, 16 }
 0x136   : > { %v1430_v42 = vpop.f32.mrf.mxu3  ;;  %1868 = vmatmul.bf16.gmra.mxu2 %v3848_v6  ;;  %v565_v6 = vsel %vm3965_vm11, %v484_v48, 0.0 }
 0x137   : > { %v1457_v14 = vadd.f32 %v1430_v42, %v1321_v22  ;;  %v1089_v45 = vpop.f32.mrf.mxu1  ;;  %2163 = vmatmul.bf16.gmra.mxu0 %v3833_v41  ;;  %v3985_v43 = vpack.c.bf16 %v565_v6, %v565_v6  ;;  %v1903_v22 = vrot.slane %v1901_v8, 4 }
 0x138   : > { %v1090_v42 = vadd.f32 %v1089_v45, %v3865_v17 }
 0x139   : > { %v1297_v47 = vpop.f32.mrf.mxu2  ;;  %v1910_v62 = vshll.u32 %v3985_v43, 16  ;;  %v1914_v44 = vshrl.u32 %v3985_v43, 16  ;;  %v1907_v37 = vor.u32 %v1906_v31, %v1903_v22  ;;  %v1784_v3 = vunpack.c.l.b16 %v3985_v43 }
 0x13a   : > { %v1322_v36 = vadd.f32 %v1297_v47, %v1085_v49  ;;  %1737 = vmatmul.bf16.gmra.mxu1 %v3888_v2  ;;  %v2061_v5 = vrot.slane %v3985_v43, 5 }
 0x13b   : > { %2026 = vmatmul.bf16.gmra.mxu3 %v3629_v23  ;;  %v1912_v7 = vrot.slane %v1910_v62, 5  ;;  %v1916_v58 = vrot.slane %v1914_v44, 4  ;;  %v1908_v6 = vrot.slane %v1907_v37, 4 }
 0x13c   : > { %v1588_v41 = vpop.f32.mrf.mxu0  ;;  %v2063_v51 = vrot.slane %v2061_v5, 4 }
 0x13d   : > { %v3998_v24 = vadd.f32 %v1588_v41, %v1457_v14  ;;  %v1917_v0 = vor.u32 %v1916_v58, %v1912_v7  ;;  %v1920_v14 = vshll.u32 %v596_v57, 16  ;;  %v1913_v39 = vsel %vm3322_vm4, %v1908_v6, %v1912_v7 }
 0x13e   : > { %v1433_v46 = vpop.f32.mrf.mxu3 }
 0x13f   : > { %v1458_v23 = vadd.f32 %v1433_v46, %v1322_v36  ;;  %v1091_v15 = vpop.f32.mrf.mxu1  ;;  %v1918_v47 = vrot.slane %v1917_v0, 4  ;;  %v1783_v36 = vunpack.c.l.b16 %v3988_v12 }
 0x141   : > { %v1299_v4 = vpop.f32.mrf.mxu2  ;;  %v1785_v46 = vpack.c.b16 %v1784_v3, %v1783_v36 }
 0x142   : > { %v1323_v30 = vadd.f32 %v1299_v4, %v1087_v20  ;;  %v1941_v20 = vunpack.c.l.b16 %v1913_v39  ;;  %v2840_v4 = vrot.slane %v3988_v12, 9 }
 0x144   : > { %v1591_v32 = vpop.f32.mrf.mxu0  ;;  %v2062_v7 = vsel %vm3622_vm10, %v2840_v4, %v2061_v5 }
 0x145   : > { %v4006_v25 = vadd.f32 %v1591_v32, %v1458_v23  ;;  %v2083_v12 = vunpack.c.l.b16 %v2062_v7 }
 0x146   : > { %v1435_v50 = vpop.f32.mrf.mxu3  ;;  %1873 = vmatmul.bf16.gmra.mxu2 %v3896_v63  ;;  %v1922_v63 = vrot.slane %v1920_v14, 5 }
 0x147   : > { %v1459_v1 = vadd.f32 %v1435_v50, %v1323_v30  ;;  %v1094_v48 = vpop.f32.mrf.mxu1  ;;  %2168 = vmatmul.bf16.gmra.mxu0 %v3888_v2  ;;  %v1092_v2 = vadd.f32 %v1091_v15, %v3892_v54  ;;  %v2064_v30 = vrot.slane %v596_v57, 5 }
 0x148   : > { %v1095_v15 = vadd.f32 %v1094_v48, %v3907_v11 }
 0x149   : > { %v1302_v49 = vpop.f32.mrf.mxu2  ;;  %v2065_v43 = vsel %vm3622_vm10, %v2063_v51, %v2064_v30 }
 0x14a   : > { %v1324_v9 = vadd.f32 %v1302_v49, %v1090_v42  ;;  %1742 = vmatmul.bf16.gmra.mxu1 %v1649_v19  ;;  %v2084_v57 = vunpack.c.l.b16 %v2065_v43 }
 0x14b   : > { %2031 = vmatmul.bf16.gmra.mxu3 %v3911_v60  ;;  %v1923_v60 = vsel %vm3322_vm4, %v1918_v47, %v1922_v63 }
 0x14c   : > { %v1593_v59 = vpop.f32.mrf.mxu0  ;;  %v1942_v23 = vunpack.c.l.b16 %v1923_v60 }
 0x14d   : > { %v4013_v56 = vadd.f32 %v1593_v59, %v1459_v1 }
 0x14e   : > { %v1438_v34 = vpop.f32.mrf.mxu3  ;;  %v1943_v29 = vpack.c.b16 %v1942_v23, %v1941_v20 }
 0x14f   : > { %v1460_v17 = vadd.f32 %v1438_v34, %v1324_v9  ;;  %v1096_v45 = vpop.f32.mrf.mxu1 }
 0x150   : > { %v1097_v32 = vadd.f32 %v1096_v45, %v3913_v27 }
 0x151   : > { %v1304_v35 = vpop.f32.mrf.mxu2 }
 0x152   : > { %v1325_v41 = vadd.f32 %v1304_v35, %v1092_v2 }
 0x154   : > { %v1596_v61 = vpop.f32.mrf.mxu0 }
 0x155   : > { %v4021_v54 = vadd.f32 %v1596_v61, %v1460_v17 }
 0x156   : > { %v1440_v62 = vpop.f32.mrf.mxu3  ;;  %1878 = vmatmul.bf16.gmra.mxu2 %v1785_v46 }
 0x157   : > { %v1461_v8 = vadd.f32 %v1440_v62, %v1325_v41  ;;  %v1708_v44 = vpop.f32.mrf.mxu1  ;;  %2173 = vmatmul.bf16.gmra.mxu0 %v1649_v19  ;;  %v2085_v19 = vpack.c.b16 %v2084_v57, %v2083_v12 }
 0x158   : > { %v1748_v63 = vadd.f32 %v1708_v44, %v3920_v40 }
 0x159   : > { %v1307_v21 = vpop.f32.mrf.mxu2 }
 0x15a   : > { %v1326_v53 = vadd.f32 %v1307_v21, %v1095_v15 }
 0x15b   : > { %2036 = vmatmul.bf16.gmra.mxu3 %v1943_v29 }
 0x15c   : > { %v1598_v10 = vpop.f32.mrf.mxu0 }
 0x15d   : > { %v4029_v11 = vadd.f32 %v1598_v10, %v1461_v8 }
 0x15e   : > { %v1443_v22 = vpop.f32.mrf.mxu3 }
 0x15f   : > { %v1462_v31 = vadd.f32 %v1443_v22, %v1326_v53  ;;  %v1710_v58 = vpop.f32.mrf.mxu1 }
 0x160   : > { %v1749_v34 = vadd.f32 %v1710_v58, %v3926_v13 }
 0x161   : > { %v1309_v50 = vpop.f32.mrf.mxu2 }
 0x162   : > { %v1327_v1 = vadd.f32 %v1309_v50, %v1097_v32 }
 0x164   : > { %v1601_v48 = vpop.f32.mrf.mxu0 }
 0x165   : > { %v4032_v0 = vadd.f32 %v1601_v48, %v1462_v31 }
 0x166   : > { %v1445_v42 = vpop.f32.mrf.mxu3 }
 0x167   : > { %v1463_v37 = vadd.f32 %v1445_v42, %v1327_v1  ;;  %v1713_v18 = vpop.f32.mrf.mxu1  ;;  %2178 = vmatmul.bf16.gmra.mxu0 %v2085_v19 }
 0x168   : > { %v1750_v41 = vadd.f32 %v1713_v18, %v3930_v38 }
 0x169   : > { %v1844_v14 = vpop.f32.mrf.mxu2 }
 0x16a   : > { %v1884_v59 = vadd.f32 %v1844_v14, %v1748_v63 }
 0x16c   : > { %v1603_v49 = vpop.f32.mrf.mxu0 }
 0x16d   : > { %v4036_v6 = vadd.f32 %v1603_v49, %v1463_v37 }
 0x16e   : > { %v2002_v9 = vpop.f32.mrf.mxu3 }
 0x16f   : > { %v1715_v27 = vpop.f32.mrf.mxu1  ;;  %v2042_v2 = vadd.f32 %v2002_v9, %v1884_v59 }
 0x170   : > { %v1751_v38 = vadd.f32 %v1715_v27, %v3936_v55 }
 0x171   : > { %v1846_v47 = vpop.f32.mrf.mxu2 }
 0x172   : > { %v1885_v17 = vadd.f32 %v1846_v47, %v1749_v34 }
 0x174   : > { %v2144_v36 = vpop.f32.mrf.mxu0 }
 0x175   : > { %v2184_v35 = vadd.f32 %v2144_v36, %v2042_v2 }
 0x176   : > { %v2004_v3 = vpop.f32.mrf.mxu3 }
 0x177   : > { %v1718_v45 = vpop.f32.mrf.mxu1  ;;  %v2043_v60 = vadd.f32 %v2004_v3, %v1885_v17  ;;  %v2254_v13 = vmul.f32 %v2184_v35, %v2184_v35 }
 0x178   : > { %v1752_v58 = vadd.f32 %v1718_v45, %v3940_v16 }
 0x179   : > { %v1849_v39 = vpop.f32.mrf.mxu2 }
 0x17a   : > { %v1886_v23 = vadd.f32 %v1849_v39, %v1750_v41 }
 0x17c   : > { %v2146_v46 = vpop.f32.mrf.mxu0 }
 0x17d   : > { %v2185_v20 = vadd.f32 %v2146_v46, %v2043_v60 }
 0x17e   : > { %v2007_v40 = vpop.f32.mrf.mxu3 }
 0x17f   : > { %v1720_v61 = vpop.f32.mrf.mxu1  ;;  %v2986_v62 = vpack.c.bf16 %v2185_v20, %v2184_v35  ;;  %v2232_v5 = vadd.f32 %v2185_v20, %v2184_v35  ;;  %v2255_v8 = vmul.f32 %v2185_v20, %v2185_v20  ;;  %v2044_v15 = vadd.f32 %v2007_v40, %v1886_v23 }
 0x180   : > { %v1753_v14 = vadd.f32 %v1720_v61, %v3945_v28 }
 0x181   : > { %v1851_v29 = vpop.f32.mrf.mxu2  ;;  %2987 = vst [vmem:[%s4045_s19] sm:$0xff] %v2986_v62   ;;  %v2270_v44 = vadd.f32 %v2255_v8, %v2254_v13 }
 0x182   : > { %v1887_v30 = vadd.f32 %v1851_v29, %v1751_v38 }
 0x184   : > { %v2149_v21 = vpop.f32.mrf.mxu0 }
 0x185   : > { %v2186_v51 = vadd.f32 %v2149_v21, %v2044_v15 }
 0x186   : > { %v2009_v4 = vpop.f32.mrf.mxu3 }
 0x187   : > { %v1723_v53 = vpop.f32.mrf.mxu1  ;;  %v2233_v10 = vadd.f32 %v2232_v5, %v2186_v51  ;;  %v2256_v7 = vmul.f32 %v2186_v51, %v2186_v51  ;;  %v2045_v31 = vadd.f32 %v2009_v4, %v1887_v30 }
 0x188   : > { %v1754_v17 = vadd.f32 %v1723_v53, %v3948_v33 }
 0x189   : > { %v1854_v43 = vpop.f32.mrf.mxu2  ;;  %v2271_v22 = vadd.f32 %v2270_v44, %v2256_v7 }
 0x18a   : > { %v1888_v50 = vadd.f32 %v1854_v43, %v1752_v58 }
 0x18c   : > { %v2151_v32 = vpop.f32.mrf.mxu0 }
 0x18d   : > { %v2187_v57 = vadd.f32 %v2151_v32, %v2045_v31 }
 0x18e   : > { %v2012_v12 = vpop.f32.mrf.mxu3 }
 0x18f   : > { %v2991_v1 = vpack.c.bf16 %v2187_v57, %v2186_v51  ;;  %v2234_v19 = vadd.f32 %v2233_v10, %v2187_v57  ;;  %v2257_v55 = vmul.f32 %v2187_v57, %v2187_v57  ;;  %v1725_v42 = vpop.f32.mrf.mxu1  ;;  %v2046_v18 = vadd.f32 %v2012_v12, %v1888_v50 }
 0x190   : > { %v1755_v23 = vadd.f32 %v1725_v42, %v3956_v52 }
 0x191   : > { %v1856_v48 = vpop.f32.mrf.mxu2  ;;  %3027 = vst [vmem:[%s4045_s19 + $0x8] sm:$0xff] %v2991_v1   ;;  %v2272_v37 = vadd.f32 %v2271_v22, %v2257_v55 }
 0x192   : > { %v1889_v47 = vadd.f32 %v1856_v48, %v1753_v14 }
 0x194   : > { %v2154_v49 = vpop.f32.mrf.mxu0 }
 0x195   : > { %v2188_v27 = vadd.f32 %v2154_v49, %v2046_v18 }
 0x196   : > { %v2014_v9 = vpop.f32.mrf.mxu3 }
 0x197   : > { %v2235_v16 = vadd.f32 %v2234_v19, %v2188_v27  ;;  %v2258_v63 = vmul.f32 %v2188_v27, %v2188_v27  ;;  %v2047_v36 = vadd.f32 %v2014_v9, %v1889_v47  ;;  %v1728_v3 = vpop.f32.mrf.mxu1 }
 0x198   : > { %v1756_v21 = vadd.f32 %v1728_v3, %v3974_v26 }
 0x199   : > { %v1859_v59 = vpop.f32.mrf.mxu2  ;;  %v2273_v34 = vadd.f32 %v2272_v37, %v2258_v63 }
 0x19a   : > { %v1890_v60 = vadd.f32 %v1859_v59, %v1754_v17 }
 0x19c   : > { %v2156_v45 = vpop.f32.mrf.mxu0 }
 0x19d   : > { %v2189_v39 = vadd.f32 %v2156_v45, %v2047_v36 }
 0x19e   : > { %v2017_v2 = vpop.f32.mrf.mxu3 }
 0x19f   : > { %v2996_v35 = vpack.c.bf16 %v2189_v39, %v2188_v27  ;;  %v2236_v41 = vadd.f32 %v2235_v16, %v2189_v39  ;;  %v2259_v28 = vmul.f32 %v2189_v39, %v2189_v39  ;;  %v2048_v20 = vadd.f32 %v2017_v2, %v1890_v60  ;;  %v1730_v61 = vpop.f32.mrf.mxu1 }
 0x1a0   : > { %v1757_v32 = vadd.f32 %v1730_v61, %v3998_v24 }
 0x1a1   : > { %v1861_v46 = vpop.f32.mrf.mxu2  ;;  %3028 = vst [vmem:[%s4045_s19 + $0x10] sm:$0xff] %v2996_v35   ;;  %v2274_v40 = vadd.f32 %v2273_v34, %v2259_v28 }
 0x1a2   : > { %v1891_v8 = vadd.f32 %v1861_v46, %v1755_v23 }
 0x1a4   : > { %v2159_v13 = vpop.f32.mrf.mxu0 }
 0x1a5   : > { %v2190_v5 = vadd.f32 %v2159_v13, %v2048_v20 }
 0x1a6   : > { %v2019_v62 = vpop.f32.mrf.mxu3 }
 0x1a7   : > { %v2237_v33 = vadd.f32 %v2236_v41, %v2190_v5  ;;  %v2260_v29 = vmul.f32 %v2190_v5, %v2190_v5  ;;  %v2049_v38 = vadd.f32 %v2019_v62, %v1891_v8  ;;  %v1733_v10 = vpop.f32.mrf.mxu1 }
 0x1a8   : > { %v1758_v18 = vadd.f32 %v1733_v10, %v4006_v25 }
 0x1a9   : > { %v1864_v44 = vpop.f32.mrf.mxu2  ;;  %v2275_v15 = vadd.f32 %v2274_v40, %v2260_v29 }
 0x1aa   : > { %v1892_v53 = vadd.f32 %v1864_v44, %v1756_v21 }
 0x1ac   : > { %v2161_v4 = vpop.f32.mrf.mxu0 }
 0x1ad   : > { %v2191_v30 = vadd.f32 %v2161_v4, %v2049_v38 }
 0x1ae   : > { %v2022_v51 = vpop.f32.mrf.mxu3 }
 0x1af   : > { %v3001_v7 = vpack.c.bf16 %v2191_v30, %v2190_v5  ;;  %v2238_v52 = vadd.f32 %v2237_v33, %v2191_v30  ;;  %v2261_v43 = vmul.f32 %v2191_v30, %v2191_v30  ;;  %v2050_v58 = vadd.f32 %v2022_v51, %v1892_v53  ;;  %v1735_v48 = vpop.f32.mrf.mxu1 }
 0x1b0   : > { %v1759_v3 = vadd.f32 %v1735_v48, %v4013_v56 }
 0x1b1   : > { %v1866_v22 = vpop.f32.mrf.mxu2  ;;  %3029 = vst [vmem:[%s4045_s19 + $0x18] sm:$0xff] %v3001_v7   ;;  %v2276_v31 = vadd.f32 %v2275_v15, %v2261_v43 }
 0x1b2   : > { %v1893_v1 = vadd.f32 %v1866_v22, %v1757_v32 }
 0x1b4   : > { %v2164_v12 = vpop.f32.mrf.mxu0 }
 0x1b5   : > { %v2192_v50 = vadd.f32 %v2164_v12, %v2050_v58 }
 0x1b6   : > { %v2024_v57 = vpop.f32.mrf.mxu3 }
 0x1b7   : > { %v2239_v26 = vadd.f32 %v2238_v52, %v2192_v50  ;;  %v2262_v19 = vmul.f32 %v2192_v50, %v2192_v50  ;;  %v2051_v37 = vadd.f32 %v2024_v57, %v1893_v1  ;;  %v1738_v36 = vpop.f32.mrf.mxu1 }
 0x1b8   : > { %v1760_v46 = vadd.f32 %v1738_v36, %v4021_v54 }
 0x1b9   : > { %v1869_v55 = vpop.f32.mrf.mxu2  ;;  %v2277_v42 = vadd.f32 %v2276_v31, %v2262_v19 }
 0x1ba   : > { %v1894_v27 = vadd.f32 %v1869_v55, %v1758_v18 }
 0x1bc   : > { %v2166_v14 = vpop.f32.mrf.mxu0 }
 0x1bd   : > { %v2193_v9 = vadd.f32 %v2166_v14, %v2051_v37 }
 0x1be   : > { %v2027_v49 = vpop.f32.mrf.mxu3 }
 0x1bf   : > { %v3006_v47 = vpack.c.bf16 %v2193_v9, %v2192_v50  ;;  %v2240_v16 = vadd.f32 %v2239_v26, %v2193_v9  ;;  %v2263_v24 = vmul.f32 %v2193_v9, %v2193_v9  ;;  %v2052_v34 = vadd.f32 %v2027_v49, %v1894_v27  ;;  %v1740_v40 = vpop.f32.mrf.mxu1 }
 0x1c0   : > { %v1761_v44 = vadd.f32 %v1740_v40, %v4029_v11 }
 0x1c1   : > { %v1871_v63 = vpop.f32.mrf.mxu2  ;;  %3030 = vst [vmem:[%s4045_s19 + $0x20] sm:$0xff] %v3006_v47   ;;  %v2278_v59 = vadd.f32 %v2277_v42, %v2263_v24 }
 0x1c2   : > { %v1895_v39 = vadd.f32 %v1871_v63, %v1759_v3 }
 0x1c4   : > { %v2169_v17 = vpop.f32.mrf.mxu0 }
 0x1c5   : > { %v2194_v2 = vadd.f32 %v2169_v17, %v2052_v34 }
 0x1c6   : > { %v2029_v45 = vpop.f32.mrf.mxu3 }
 0x1c7   : > { %v2241_v25 = vadd.f32 %v2240_v16, %v2194_v2  ;;  %v2264_v60 = vmul.f32 %v2194_v2, %v2194_v2  ;;  %v2053_v28 = vadd.f32 %v2029_v45, %v1895_v39  ;;  %v1743_v54 = vpop.f32.mrf.mxu1 }
 0x1c8   : > { %v1762_v52 = vadd.f32 %v1743_v54, %v4032_v0 }
 0x1c9   : > { %v1874_v35 = vpop.f32.mrf.mxu2  ;;  %v2279_v41 = vadd.f32 %v2278_v59, %v2264_v60 }
 0x1ca   : > { %v1896_v13 = vadd.f32 %v1874_v35, %v1760_v46 }
 0x1cc   : > { %v2171_v20 = vpop.f32.mrf.mxu0 }
 0x1cd   : > { %v2195_v61 = vadd.f32 %v2171_v20, %v2053_v28 }
 0x1ce   : > { %v2032_v23 = vpop.f32.mrf.mxu3 }
 0x1cf   : > { %v3011_v62 = vpack.c.bf16 %v2195_v61, %v2194_v2  ;;  %v2242_v5 = vadd.f32 %v2241_v25, %v2195_v61  ;;  %v2265_v56 = vmul.f32 %v2195_v61, %v2195_v61  ;;  %v2054_v29 = vadd.f32 %v2032_v23, %v1896_v13  ;;  %v1745_v57 = vpop.f32.mrf.mxu1 }
 0x1d0   : > { %v1763_v19 = vadd.f32 %v1745_v57, %v4036_v6 }
 0x1d1   : > { %v1876_v8 = vpop.f32.mrf.mxu2  ;;  %3031 = vst [vmem:[%s4045_s19 + $0x28] sm:$0xff] %v3011_v62   ;;  %v2280_v33 = vadd.f32 %v2279_v41, %v2265_v56 }
 0x1d2   : > { %v1897_v4 = vadd.f32 %v1876_v8, %v1761_v44 }
 0x1d4   : > { %v2174_v15 = vpop.f32.mrf.mxu0 }
 0x1d5   : > { %v2196_v21 = vadd.f32 %v2174_v15, %v2054_v29 }
 0x1d6   : > { %v2034_v38 = vpop.f32.mrf.mxu3 }
 0x1d7   : > { %v2243_v51 = vadd.f32 %v2242_v5, %v2196_v21  ;;  %v2266_v30 = vmul.f32 %v2196_v21, %v2196_v21  ;;  %v2055_v7 = vadd.f32 %v2034_v38, %v1897_v4 }
 0x1d9   : > { %v1879_v53 = vpop.f32.mrf.mxu2  ;;  %v2281_v10 = vadd.f32 %v2280_v33, %v2266_v30 }
 0x1da   : > { %v1898_v31 = vadd.f32 %v1879_v53, %v1762_v52 }
 0x1dc   : > { %v2176_v43 = vpop.f32.mrf.mxu0 }
 0x1dd   : > { %v2197_v22 = vadd.f32 %v2176_v43, %v2055_v7 }
 0x1de   : > { %v2037_v58 = vpop.f32.mrf.mxu3 }
 0x1df   : > { %v3016_v32 = vpack.c.bf16 %v2197_v22, %v2196_v21  ;;  %v2244_v12 = vadd.f32 %v2243_v51, %v2197_v22  ;;  %v2267_v11 = vmul.f32 %v2197_v22, %v2197_v22  ;;  %v2056_v1 = vadd.f32 %v2037_v58, %v1898_v31 }
 0x1e1   : > { %3032 = vst [vmem:[%s4045_s19 + $0x30] sm:$0xff] %v3016_v32   ;;  %v2282_v50 = vadd.f32 %v2281_v10, %v2267_v11  ;;  %v1881_v26 = vpop.f32.mrf.mxu2 }
 0x1e2   : > { %v1899_v42 = vadd.f32 %v1881_v26, %v1763_v19 }
 0x1e4   : > { %v2179_v55 = vpop.f32.mrf.mxu0 }
 0x1e5   : > { %v2198_v48 = vadd.f32 %v2179_v55, %v2056_v1 }
 0x1e6   : > { %v2039_v18 = vpop.f32.mrf.mxu3 }
 0x1e7   : > { %v2245_v37 = vadd.f32 %v2244_v12, %v2198_v48  ;;  %v2268_v0 = vmul.f32 %v2198_v48, %v2198_v48  ;;  %v2057_v49 = vadd.f32 %v2039_v18, %v1899_v42 }
 0x1e9   : > { %v2283_v14 = vadd.f32 %v2282_v50, %v2268_v0 }
 0x1ec   : > { %v2181_v9 = vpop.f32.mrf.mxu0 }
 0x1ed   : > { %v2199_v27 = vadd.f32 %v2181_v9, %v2057_v49 }
 0x1ef   : > { %v3021_v47 = vpack.c.bf16 %v2199_v27, %v2198_v48  ;;  %v2246_v16 = vadd.f32 %v2245_v37, %v2199_v27  ;;  %v2269_v24 = vmul.f32 %v2199_v27, %v2199_v27 }
 0x1f1   : > { %3033 = vst [vmem:[%s4045_s19 + $0x38] sm:$0xff] %v3021_v47   ;;  %v2247_v63 = vrot.slane %v2246_v16, 4  ;;  %v2284_v59 = vadd.f32 %v2283_v14, %v2269_v24 }
 0x1f3   : > { %v2248_v34 = vadd.f32 %v2247_v63, %v2246_v16  ;;  %v2285_v6 = vrot.slane %v2284_v59, 4 }
 0x1f5   : > { %v2249_v36 = vrot.slane %v2248_v34, 2  ;;  %v2286_v3 = vadd.f32 %v2285_v6, %v2284_v59 }
 0x1f7   : > { %v2250_v17 = vadd.f32 %v2249_v36, %v2248_v34  ;;  %v2287_v45 = vrot.slane %v2286_v3, 2 }
 0x1f9   : > { %v2251_v2 = vrot.slane %v2250_v17, 1  ;;  %v2288_v39 = vadd.f32 %v2287_v45, %v2286_v3 }
 0x1fb   : > { %v2252_v25 = vadd.f32 %v2251_v2, %v2250_v17  ;;  %v2289_v60 = vrot.slane %v2288_v39, 1 }
 0x1fd   : > { %2253 = vst [vmem:[%s318_s28] sm:$0x1] %v2252_v25  ;;  %v2290_v35 = vadd.f32 %v2289_v60, %v2288_v39 }
 0x1ff   : > { %2291 = vst [vmem:[%s325_s8] sm:$0x1] %v2290_v35 }
 0x200 PF: > { %s17_s25 = sadd.s32 1, %s3141_s25   ;;  %s4110_s21 = smov %s3133_s23 }
 0x201   : > { %p14_p10 = scmp.ge.s32.totalorder %s17_s25, 6   ;;  %s4111_s22 = smov %s3137_s24 }
 0x202   : > { %s4112_s23 = smov %s4115_s26  ;;  %s4113_s24 = smov %s4119_s27 }
 0x203   :  { %16 = sbr.rel (!%p14_p10) target bundleno = 3 (0x3), region = 98 }

</bundles_post_ra>
